<compile_context>
chip_gen: v5e
topology: v5e:2x2
jax: 0.10.0
libtpu: 0.0.40
codegen_flags: <defaults>
</compile_context>

<pallas_src>
import functools

import jax
import jax.numpy as jnp
from jax import lax
from jax.experimental import pallas as pl
from jax.experimental.pallas import tpu as pltpu


# Above the 32 MiB scoped default, below v7x's 64 MiB physical VMEM
# (and well below v5e/v6e's 128 MiB).
_VMEM_LIMIT_BYTES = 48 * 1024 * 1024

_VMEM = pl.BlockSpec(memory_space=pltpu.MemorySpace.VMEM)


def _round_up(x, m):
    return (x + m - 1) // m * m


# ---------------------------------------------------------------------------
# Kernel 1: one GRU layer over the full sequence (PyTorch gate order r, z, n)
# ---------------------------------------------------------------------------
def gru_layer_kernel(x_ref, tm_ref,
                     wir_ref, wiz_ref, win_ref,
                     whr_ref, whz_ref, whn_ref,
                     bir_ref, biz_ref, bin_ref,
                     bhr_ref, bhz_ref, bhn_ref,
                     h0_ref,
                     out_ref, hT_ref,
                     gir_s, giz_s, gin_s):
    # x_ref : (T, B, E_in) bf16     tm_ref : (T, B, 1) f32 {0,1}
    # w*_ref: (E_in or H, H) bf16   b*_ref : (1, H) f32    h0_ref: (B, H) f32
    # out_ref: (T, B, H) bf16       hT_ref : (B, H) f32
    # g*_s  : (T, B, H) f32 scratch (hoisted input projections per gate)
    T, B, E = x_ref.shape
    H = hT_ref.shape[1]

    # ---- hoisted input projection: one big MXU matmul per gate -------------
    x2 = x_ref[...].reshape(T * B, E)
    gir_s[...] = (jnp.dot(x2, wir_ref[...], preferred_element_type=jnp.float32)
                  + bir_ref[...]).reshape(T, B, H)
    giz_s[...] = (jnp.dot(x2, wiz_ref[...], preferred_element_type=jnp.float32)
                  + biz_ref[...]).reshape(T, B, H)
    gin_s[...] = (jnp.dot(x2, win_ref[...], preferred_element_type=jnp.float32)
                  + bin_ref[...]).reshape(T, B, H)

    # hoist weight / bias loads out of the recurrence
    w_hr = whr_ref[...]
    w_hz = whz_ref[...]
    w_hn = whn_ref[...]
    b_hr = bhr_ref[...]
    b_hz = bhz_ref[...]
    b_hn = bhn_ref[...]

    def step(t, h):
        hb = h.astype(jnp.bfloat16)
        gh_r = jnp.dot(hb, w_hr, preferred_element_type=jnp.float32) + b_hr
        gh_z = jnp.dot(hb, w_hz, preferred_element_type=jnp.float32) + b_hz
        gh_n = jnp.dot(hb, w_hn, preferred_element_type=jnp.float32) + b_hn
        r = jax.nn.sigmoid(gir_s[t] + gh_r)
        z = jax.nn.sigmoid(giz_s[t] + gh_z)
        n = jnp.tanh(gin_s[t] + r * gh_n)
        h_new = (1.0 - z) * n + z * h
        m = tm_ref[t] > 0.0                                    # (B, 1) bool
        out_ref[t] = jnp.where(m, h_new, 0.0).astype(out_ref.dtype)  # pad -> 0
        return jnp.where(m, h_new, h)                          # freeze past len

    unroll = True if T <= 16 else 4      # short fixed loops: give LLO visibility
    h_final = lax.fori_loop(0, T, step, h0_ref[...], unroll=unroll)
    hT_ref[...] = h_final


def gru_layer(x_tbe, tm_tb1, w_ih, w_hh, b_ih, b_hh, h0_bh):
    T, B, _ = x_tbe.shape
    H = h0_bh.shape[1]

    def split_w(w):      # (3H, in) -> three (in, H) bf16 (gate order r, z, n)
        return [w[i * H:(i + 1) * H].T.astype(jnp.bfloat16) for i in range(3)]

    def split_b(b):      # (3H,) -> three (1, H) f32
        return [b[i * H:(i + 1) * H].reshape(1, H).astype(jnp.float32)
                for i in range(3)]

    wir, wiz, win = split_w(w_ih)
    whr, whz, whn = split_w(w_hh)
    bir, biz, bin_ = split_b(b_ih)
    bhr, bhz, bhn = split_b(b_hh)

    out_shape = (jax.ShapeDtypeStruct((T, B, H), jnp.bfloat16),   # gru_out
                 jax.ShapeDtypeStruct((B, H), jnp.float32))       # final hidden
    return pl.pallas_call(
        gru_layer_kernel,
        out_shape=out_shape,
        in_specs=[_VMEM] * 15,
        out_specs=(_VMEM, _VMEM),
        scratch_shapes=[pltpu.VMEM((T, B, H), jnp.float32)] * 3,
        compiler_params=pltpu.CompilerParams(
            vmem_limit_bytes=_VMEM_LIMIT_BYTES),
    )(x_tbe, tm_tb1, wir, wiz, win, whr, whz, whn,
      bir, biz, bin_, bhr, bhz, bhn, h0_bh)


# ---------------------------------------------------------------------------
# Kernel 2: attention (A1/A2/v_t), guarded masked softmax, context vector
# ---------------------------------------------------------------------------
def attention_kernel(g_ref, ht_ref, am_ref, a1T_ref, a2T_ref, v_ref, attn_ref):
    # g_ref: (T,B,H) bf16  ht_ref: (B,H) f32  am_ref: (T,B) f32 {0,1}
    # a1T/a2T: (H,H) bf16  v_ref: (1,H) f32   attn_ref: (B,H) f32
    T, B, H = g_ref.shape
    g = g_ref[...]

    q1 = jnp.dot(g.reshape(T * B, H), a2T_ref[...],
                 preferred_element_type=jnp.float32).reshape(T, B, H)
    q2 = jnp.dot(ht_ref[...].astype(jnp.bfloat16), a1T_ref[...],
                 preferred_element_type=jnp.float32)            # (B, H)
    s = jax.nn.sigmoid(q1 + q2[None, :, :])                     # (T, B, H)

    # alpha = s @ v as VPU mul + lane reduce (avoids 1-lane-wide MXU output)
    alpha = jnp.sum(s * v_ref[...], axis=-1)                    # (T, B)

    valid = am_ref[...] > 0.0
    alpha = jnp.where(valid, alpha, -1e30)                      # finite mask
    mx = jnp.max(alpha, axis=0, keepdims=True)
    e = jnp.where(valid, jnp.exp(alpha - mx), 0.0)
    denom = jnp.maximum(jnp.sum(e, axis=0, keepdims=True), 1e-30)
    p = e * pl.reciprocal(denom, approx=True)                   # (T, B)

    # Weighted sum over T (T is small; a batched MXU contraction would need a
    # (B, T, H) transpose of the time-major g).
    attn_ref[...] = jnp.sum(p[:, :, None] * g.astype(jnp.float32), axis=0)


def attention(g_tbh, ht_bh, am_tb, a1, a2, v_t):
    _, B, H = g_tbh.shape
    return pl.pallas_call(
        attention_kernel,
        out_shape=jax.ShapeDtypeStruct((B, H), jnp.float32),
        in_specs=[_VMEM] * 6,
        out_specs=_VMEM,
        compiler_params=pltpu.CompilerParams(
            vmem_limit_bytes=_VMEM_LIMIT_BYTES),
    )(g_tbh, ht_bh, am_tb,
      a1.T.astype(jnp.bfloat16), a2.T.astype(jnp.bfloat16),
      v_t.astype(jnp.float32))


# ---------------------------------------------------------------------------
# Kernel 3: item decode + logits, tiled over the item dimension N
# ---------------------------------------------------------------------------
def decode_logits_kernel(ht_ref, attn_ref, item_ref, bwaT_ref, bwbT_ref,
                         bba_ref, bbb_ref, logits_ref):
    items = item_ref[...]                                       # (TN, E) bf16
    dec_a = (jnp.dot(items, bwaT_ref[...],
                     preferred_element_type=jnp.float32)
             + bba_ref[...]).astype(jnp.bfloat16)               # (TN, H)
    dec_b = (jnp.dot(items, bwbT_ref[...],
                     preferred_element_type=jnp.float32)
             + bbb_ref[...]).astype(jnp.bfloat16)               # (TN, H)
    # logits = [ht, attn_out] @ decoded.T, split to avoid concat / transpose
    logits_ref[...] = (
        lax.dot_general(ht_ref[...], dec_a, (((1,), (1,)), ((), ())),
                        preferred_element_type=jnp.float32)
        + lax.dot_general(attn_ref[...], dec_b, (((1,), (1,)), ((), ())),
                          preferred_element_type=jnp.float32))


def decode_logits(ht_bh, attn_bh, item_embs, b_w, b_b, *, tile_n=512):
    Bp, H = ht_bh.shape
    N, E = item_embs.shape
    TN = min(tile_n, _round_up(N, 128))       # lane-dense logits tiles
    Np = _round_up(N, TN)
    items = jnp.pad(item_embs.astype(jnp.bfloat16), ((0, Np - N), (0, 0)))

    bwaT = b_w[:H].T.astype(jnp.bfloat16)     # (E, H) -> pairs with ht
    bwbT = b_w[H:].T.astype(jnp.bfloat16)     # (E, H) -> pairs with attn_out
    bba = b_b[:H].reshape(1, H).astype(jnp.float32)
    bbb = b_b[H:].reshape(1, H).astype(jnp.float32)

    logits = pl.pallas_call(
        decode_logits_kernel,
        out_shape=jax.ShapeDtypeStruct((Bp, Np), jnp.float32),
        grid_spec=pltpu.PrefetchScalarGridSpec(
            num_scalar_prefetch=0,
            grid=(Np // TN,),
            in_specs=[
                pl.BlockSpec((Bp, H), lambda n: (0, 0)),    # ht
                pl.BlockSpec((Bp, H), lambda n: (0, 0)),    # attn_out
                pl.BlockSpec((TN, E), lambda n: (n, 0)),    # item tile
                pl.BlockSpec((E, H), lambda n: (0, 0)),     # B_w[:H].T
                pl.BlockSpec((E, H), lambda n: (0, 0)),     # B_w[H:].T
                pl.BlockSpec((1, H), lambda n: (0, 0)),     # B_b[:H]
                pl.BlockSpec((1, H), lambda n: (0, 0)),     # B_b[H:]
            ],
            out_specs=pl.BlockSpec((Bp, TN), lambda n: (0, n)),
        ),
        compiler_params=pltpu.CompilerParams(
            dimension_semantics=("parallel",),   # sharded over v7x's 2 TCs
            vmem_limit_bytes=_VMEM_LIMIT_BYTES),
    )(ht_bh.astype(jnp.bfloat16), attn_bh.astype(jnp.bfloat16),
      items, bwaT, bwbT, bba, bbb)
    return logits[:, :N]


# ---------------------------------------------------------------------------
# Full NARM forward (glue in plain JAX, hot paths in the kernels above)
# ---------------------------------------------------------------------------
def narm_forward(params, sequences, lengths, *, n_items, padding_idx,
                 hidden_size, n_gru_layers):
    B, T = sequences.shape
    H = hidden_size
    Bp = _round_up(B, 8)                                     # sublane-aligned

    emb_w = params["emb"]                                    # (n_items+1, E)
    embs = jnp.take(emb_w, sequences, axis=0)                # (B, T, E)
    x = jnp.transpose(embs, (1, 0, 2)).astype(jnp.bfloat16)  # (T, B, E)

    seq_t = sequences.T                                      # (T, B)
    t_idx = jnp.arange(T, dtype=jnp.int32)[:, None]
    time_mask = (t_idx < lengths[None, :]).astype(jnp.float32)   # (T, B)
    attn_mask = (seq_t != padding_idx).astype(jnp.float32)       # (T, B)

    if Bp != B:                                              # pad batch rows
        x = jnp.pad(x, ((0, 0), (0, Bp - B), (0, 0)))
        time_mask = jnp.pad(time_mask, ((0, 0), (0, Bp - B)))
        attn_mask = jnp.pad(attn_mask, ((0, 0), (0, Bp - B)))
    tm = time_mask[:, :, None]                               # (T, Bp, 1)

    # TODO(synk): the GRU stack is one pallas_call per layer (bf16 inter-layer
    # activations); fusing all layers into one kernel would also remove the
    # (T, B, H) HBM round-trip per layer boundary.
    h = x
    hT = None
    for layer in range(n_gru_layers):
        h0 = jnp.broadcast_to(params["h0"][layer], (Bp, H)).astype(jnp.float32)
        h, hT = gru_layer(h, tm,
                          params[f"w_ih_{layer}"], params[f"w_hh_{layer}"],
                          params[f"b_ih_{layer}"], params[f"b_hh_{layer}"],
                          h0)
    gru_out = h                                              # (T, Bp, H) bf16
    ht = hT                                                  # (Bp, H)  f32

    attn_out = attention(gru_out, ht, attn_mask,
                         params["A1"], params["A2"], params["v_t"])

    item_embs = emb_w[:n_items]                              # (N, E)
    logits = decode_logits(ht, attn_out, item_embs,
                           params["B_w"], params["B_b"])
    return logits[:B]                                        # (B, n_items)


# ---------------------------------------------------------------------------
# Deterministic parameter construction (same shapes as the PyTorch module)
# ---------------------------------------------------------------------------
def make_params(key, *, n_items, embedding_dim, hidden_size, n_gru_layers,
                padding_idx):
    E, H, L = embedding_dim, hidden_size, n_gru_layers
    keys = jax.random.split(key, 8 + 4 * L)
    ki = iter(keys)

    def rnd(k, shape):
        return (0.1 * jax.random.normal(k, shape)).astype(jnp.float32)

    params = {}
    emb = rnd(next(ki), (n_items + 1, E))
    params["emb"] = emb.at[padding_idx].set(0.0)             # padding row zero
    params["h0"] = jnp.zeros((L, 1, H), jnp.float32)         # nn.Parameter(zeros)
    for layer in range(L):
        in_dim = E if layer == 0 else H
        params[f"w_ih_{layer}"] = rnd(next(ki), (3 * H, in_dim))
        params[f"w_hh_{layer}"] = rnd(next(ki), (3 * H, H))
        params[f"b_ih_{layer}"] = rnd(next(ki), (3 * H,))
        params[f"b_hh_{layer}"] = rnd(next(ki), (3 * H,))
    params["A1"] = rnd(next(ki), (H, H))                     # Linear(H,H,bias=False)
    params["A2"] = rnd(next(ki), (H, H))
    params["v_t"] = rnd(next(ki), (1, H))                    # Linear(H,1,bias=False)
    params["B_w"] = rnd(next(ki), (2 * H, E))                # Linear(E,2H).weight
    params["B_b"] = rnd(next(ki), (2 * H,))                  # Linear(E,2H).bias
    return params


if __name__ == "__main__":
    # Small deterministic configuration.
    n_items = 20
    embedding_dim = 16
    hidden_size = 32
    n_gru_layers = 2
    padding_idx = n_items
    B, T = 2, 8

    key = jax.random.PRNGKey(0)
    k_param, k_seq = jax.random.split(key)

    params = make_params(k_param, n_items=n_items, embedding_dim=embedding_dim,
                         hidden_size=hidden_size, n_gru_layers=n_gru_layers,
                         padding_idx=padding_idx)

    lengths = jnp.array([5, 8], dtype=jnp.int32)
    raw = jax.random.randint(k_seq, (B, T), 0, n_items, dtype=jnp.int32)
    pos = jnp.arange(T, dtype=jnp.int32)[None, :]
    sequences = jnp.where(pos < lengths[:, None], raw, padding_idx)

    fwd = jax.jit(functools.partial(
        narm_forward, n_items=n_items, padding_idx=padding_idx,
        hidden_size=hidden_size, n_gru_layers=n_gru_layers))

    logits = fwd(params, sequences, lengths)
    logits = jax.block_until_ready(logits)

    assert logits.shape == (B, n_items), logits.shape
    assert bool(jnp.all(jnp.isfinite(logits)))
    print("KERNEL_OK")
</pallas_src>

<mosaic_0001>
module attributes {stable_mosaic.version = 11 : i64} {
  func.func @attention_kernel(%arg0: memref<8x8x32xbf16, #tpu.memory_space<vmem>>, %arg1: memref<8x32xf32, #tpu.memory_space<vmem>>, %arg2: memref<8x8xf32, #tpu.memory_space<vmem>>, %arg3: memref<32x32xbf16, #tpu.memory_space<vmem>>, %arg4: memref<32x32xbf16, #tpu.memory_space<vmem>>, %arg5: memref<1x32xf32, #tpu.memory_space<vmem>>, %arg6: memref<8x32xf32, #tpu.memory_space<vmem>>) attributes {dimension_semantics = [], scalar_prefetch = 0 : i64, scratch_operands = 0 : i64, tpu.core_type = #tpu.core_type<tc>} {
    %c0 = arith.constant 0 : index
    %c0_0 = arith.constant 0 : index
    %c0_1 = arith.constant 0 : index
    %0 = vector.load %arg0[%c0, %c0_0, %c0_1] : memref<8x8x32xbf16, #tpu.memory_space<vmem>>, vector<8x8x32xbf16>
    %1 = vector.shape_cast %0 : vector<8x8x32xbf16> to vector<64x32xbf16>
    %c0_2 = arith.constant 0 : index
    %c0_3 = arith.constant 0 : index
    %2 = vector.load %arg4[%c0_2, %c0_3] : memref<32x32xbf16, #tpu.memory_space<vmem>>, vector<32x32xbf16>
    %cst = arith.constant dense<0.000000e+00> : vector<64x32xf32>
    %3 = tpu.matmul %1, %2, %cst {dimension_numbers = #tpu.dot_dimension_numbers<[1], [0], [0], [1], [0, 0, 1, 1], [], []>} : vector<64x32xbf16>, vector<32x32xbf16>, vector<64x32xf32> -> vector<64x32xf32>
    %4 = vector.shape_cast %3 : vector<64x32xf32> to vector<8x8x32xf32>
    %c0_4 = arith.constant 0 : index
    %c0_5 = arith.constant 0 : index
    %5 = vector.load %arg1[%c0_4, %c0_5] : memref<8x32xf32, #tpu.memory_space<vmem>>, vector<8x32xf32>
    %6 = arith.truncf %5 : vector<8x32xf32> to vector<8x32xbf16>
    %c0_6 = arith.constant 0 : index
    %c0_7 = arith.constant 0 : index
    %7 = vector.load %arg3[%c0_6, %c0_7] : memref<32x32xbf16, #tpu.memory_space<vmem>>, vector<32x32xbf16>
    %cst_8 = arith.constant dense<0.000000e+00> : vector<8x32xf32>
    %8 = tpu.matmul %6, %7, %cst_8 {dimension_numbers = #tpu.dot_dimension_numbers<[1], [0], [0], [1], [0, 0, 1, 1], [], []>} : vector<8x32xbf16>, vector<32x32xbf16>, vector<8x32xf32> -> vector<8x32xf32>
    %9 = vector.shape_cast %8 : vector<8x32xf32> to vector<1x8x32xf32>
    %10 = vector.broadcast %9 : vector<1x8x32xf32> to vector<8x8x32xf32>
    %11 = arith.addf %4, %10 : vector<8x8x32xf32>
    %12 = arith.negf %11 : vector<8x8x32xf32>
    %13 = math.exp %12 : vector<8x8x32xf32>
    %cst_9 = arith.constant 1.000000e+00 : f32
    %14 = vector.broadcast %cst_9 : f32 to vector<8x8x32xf32>
    %15 = arith.addf %14, %13 : vector<8x8x32xf32>
    %16 = arith.divf %14, %15 : vector<8x8x32xf32>
    %c0_10 = arith.constant 0 : index
    %c0_11 = arith.constant 0 : index
    %17 = vector.load %arg5[%c0_10, %c0_11] : memref<1x32xf32, #tpu.memory_space<vmem>>, vector<1x32xf32>
    %18 = vector.shape_cast %17 : vector<1x32xf32> to vector<1x1x32xf32>
    %19 = vector.broadcast %18 : vector<1x1x32xf32> to vector<8x8x32xf32>
    %20 = arith.mulf %16, %19 : vector<8x8x32xf32>
    %cst_12 = arith.constant dense<0.000000e+00> : vector<8x8xf32>
    %21 = vector.multi_reduction <add>, %20, %cst_12 [2] : vector<8x8x32xf32> to vector<8x8xf32>
    %c0_13 = arith.constant 0 : index
    %c0_14 = arith.constant 0 : index
    %22 = vector.load %arg2[%c0_13, %c0_14] : memref<8x8xf32, #tpu.memory_space<vmem>>, vector<8x8xf32>
    %cst_15 = arith.constant 0.000000e+00 : f32
    %23 = vector.broadcast %cst_15 : f32 to vector<8x8xf32>
    %24 = arith.cmpf ogt, %22, %23 : vector<8x8xf32>
    %cst_16 = arith.constant -1.000000e+30 : f32
    %25 = vector.broadcast %cst_16 : f32 to vector<8x8xf32>
    %26 = arith.select %24, %21, %25 : vector<8x8xi1>, vector<8x8xf32>
    %cst_17 = arith.constant dense<0xFF800000> : vector<8xf32>
    %27 = vector.multi_reduction <maximumf>, %26, %cst_17 [0] : vector<8x8xf32> to vector<8xf32>
    %28 = vector.shape_cast %27 : vector<8xf32> to vector<1x8xf32>
    %29 = vector.broadcast %28 : vector<1x8xf32> to vector<8x8xf32>
    %30 = arith.subf %26, %29 : vector<8x8xf32>
    %31 = math.exp %30 : vector<8x8xf32>
    %cst_18 = arith.constant 0.000000e+00 : f32
    %32 = vector.broadcast %cst_18 : f32 to vector<8x8xf32>
    %33 = arith.select %24, %31, %32 : vector<8x8xi1>, vector<8x8xf32>
    %cst_19 = arith.constant dense<0.000000e+00> : vector<8xf32>
    %34 = vector.multi_reduction <add>, %33, %cst_19 [0] : vector<8x8xf32> to vector<8xf32>
    %35 = vector.shape_cast %34 : vector<8xf32> to vector<1x8xf32>
    %cst_20 = arith.constant 1.000000e-30 : f32
    %36 = vector.broadcast %cst_20 : f32 to vector<1x8xf32>
    %37 = arith.maximumf %35, %36 : vector<1x8xf32>
    %38 = tpu.reciprocal %37 {approx = true} : vector<1x8xf32> -> vector<1x8xf32>
    %39 = vector.broadcast %38 : vector<1x8xf32> to vector<8x8xf32>
    %40 = arith.mulf %33, %39 : vector<8x8xf32>
    %41 = vector.shape_cast %40 : vector<8x8xf32> to vector<8x8x1xf32>
    %42 = arith.extf %0 : vector<8x8x32xbf16> to vector<8x8x32xf32>
    %43 = vector.broadcast %41 : vector<8x8x1xf32> to vector<8x8x32xf32>
    %44 = arith.mulf %43, %42 : vector<8x8x32xf32>
    %cst_21 = arith.constant dense<0.000000e+00> : vector<8x32xf32>
    %45 = vector.multi_reduction <add>, %44, %cst_21 [0] : vector<8x8x32xf32> to vector<8x32xf32>
    %c0_22 = arith.constant 0 : index
    %c0_23 = arith.constant 0 : index
    %46 = vector.load %arg6[%c0_22, %c0_23] : memref<8x32xf32, #tpu.memory_space<vmem>>, vector<8x32xf32>
    tpu.vector_store %arg6[%c0_22, %c0_23], %45 {strides = array<i32>} : memref<8x32xf32, #tpu.memory_space<vmem>>, vector<8x32xf32>,
    return
  }
}

module attributes {stable_mosaic.version = 11 : i64} {
  func.func @gru_layer_kernel(%arg0: memref<8x8x32xbf16, #tpu.memory_space<vmem>>, %arg1: memref<8x8x1xf32, #tpu.memory_space<vmem>>, %arg2: memref<32x32xbf16, #tpu.memory_space<vmem>>, %arg3: memref<32x32xbf16, #tpu.memory_space<vmem>>, %arg4: memref<32x32xbf16, #tpu.memory_space<vmem>>, %arg5: memref<32x32xbf16, #tpu.memory_space<vmem>>, %arg6: memref<32x32xbf16, #tpu.memory_space<vmem>>, %arg7: memref<32x32xbf16, #tpu.memory_space<vmem>>, %arg8: memref<1x32xf32, #tpu.memory_space<vmem>>, %arg9: memref<1x32xf32, #tpu.memory_space<vmem>>, %arg10: memref<1x32xf32, #tpu.memory_space<vmem>>, %arg11: memref<1x32xf32, #tpu.memory_space<vmem>>, %arg12: memref<1x32xf32, #tpu.memory_space<vmem>>, %arg13: memref<1x32xf32, #tpu.memory_space<vmem>>, %arg14: memref<8x32xf32, #tpu.memory_space<vmem>>, %arg15: memref<8x8x32xbf16, #tpu.memory_space<vmem>>, %arg16: memref<8x32xf32, #tpu.memory_space<vmem>>, %arg17: memref<8x8x32xf32, #tpu.memory_space<vmem>>, %arg18: memref<8x8x32xf32, #tpu.memory_space<vmem>>, %arg19: memref<8x8x32xf32, #tpu.memory_space<vmem>>) attributes {dimension_semantics = [], scalar_prefetch = 0 : i64, scratch_operands = 3 : i64, tpu.core_type = #tpu.core_type<tc>} {
    %c0 = arith.constant 0 : index
    %c0_0 = arith.constant 0 : index
    %c0_1 = arith.constant 0 : index
    %0 = vector.load %arg0[%c0, %c0_0, %c0_1] : memref<8x8x32xbf16, #tpu.memory_space<vmem>>, vector<8x8x32xbf16>
    %1 = vector.shape_cast %0 : vector<8x8x32xbf16> to vector<64x32xbf16>
    %c0_2 = arith.constant 0 : index
    %c0_3 = arith.constant 0 : index
    %2 = vector.load %arg2[%c0_2, %c0_3] : memref<32x32xbf16, #tpu.memory_space<vmem>>, vector<32x32xbf16>
    %cst = arith.constant dense<0.000000e+00> : vector<64x32xf32>
    %3 = tpu.matmul %1, %2, %cst {dimension_numbers = #tpu.dot_dimension_numbers<[1], [0], [0], [1], [0, 0, 1, 1], [], []>} : vector<64x32xbf16>, vector<32x32xbf16>, vector<64x32xf32> -> vector<64x32xf32>
    %c0_4 = arith.constant 0 : index
    %c0_5 = arith.constant 0 : index
    %4 = vector.load %arg8[%c0_4, %c0_5] : memref<1x32xf32, #tpu.memory_space<vmem>>, vector<1x32xf32>
    %5 = vector.broadcast %4 : vector<1x32xf32> to vector<64x32xf32>
    %6 = arith.addf %3, %5 : vector<64x32xf32>
    %7 = vector.shape_cast %6 : vector<64x32xf32> to vector<8x8x32xf32>
    %c0_6 = arith.constant 0 : index
    %c0_7 = arith.constant 0 : index
    %c0_8 = arith.constant 0 : index
    %8 = vector.load %arg17[%c0_6, %c0_7, %c0_8] : memref<8x8x32xf32, #tpu.memory_space<vmem>>, vector<8x8x32xf32>
    tpu.vector_store %arg17[%c0_6, %c0_7, %c0_8], %7 {strides = array<i32>} : memref<8x8x32xf32, #tpu.memory_space<vmem>>, vector<8x8x32xf32>,
    %c0_9 = arith.constant 0 : index
    %c0_10 = arith.constant 0 : index
    %9 = vector.load %arg3[%c0_9, %c0_10] : memref<32x32xbf16, #tpu.memory_space<vmem>>, vector<32x32xbf16>
    %cst_11 = arith.constant dense<0.000000e+00> : vector<64x32xf32>
    %10 = tpu.matmul %1, %9, %cst_11 {dimension_numbers = #tpu.dot_dimension_numbers<[1], [0], [0], [1], [0, 0, 1, 1], [], []>} : vector<64x32xbf16>, vector<32x32xbf16>, vector<64x32xf32> -> vector<64x32xf32>
    %c0_12 = arith.constant 0 : index
    %c0_13 = arith.constant 0 : index
    %11 = vector.load %arg9[%c0_12, %c0_13] : memref<1x32xf32, #tpu.memory_space<vmem>>, vector<1x32xf32>
    %12 = vector.broadcast %11 : vector<1x32xf32> to vector<64x32xf32>
    %13 = arith.addf %10, %12 : vector<64x32xf32>
    %14 = vector.shape_cast %13 : vector<64x32xf32> to vector<8x8x32xf32>
    %c0_14 = arith.constant 0 : index
    %c0_15 = arith.constant 0 : index
    %c0_16 = arith.constant 0 : index
    %15 = vector.load %arg18[%c0_14, %c0_15, %c0_16] : memref<8x8x32xf32, #tpu.memory_space<vmem>>, vector<8x8x32xf32>
    tpu.vector_store %arg18[%c0_14, %c0_15, %c0_16], %14 {strides = array<i32>} : memref<8x8x32xf32, #tpu.memory_space<vmem>>, vector<8x8x32xf32>,
    %c0_17 = arith.constant 0 : index
    %c0_18 = arith.constant 0 : index
    %16 = vector.load %arg4[%c0_17, %c0_18] : memref<32x32xbf16, #tpu.memory_space<vmem>>, vector<32x32xbf16>
    %cst_19 = arith.constant dense<0.000000e+00> : vector<64x32xf32>
    %17 = tpu.matmul %1, %16, %cst_19 {dimension_numbers = #tpu.dot_dimension_numbers<[1], [0], [0], [1], [0, 0, 1, 1], [], []>} : vector<64x32xbf16>, vector<32x32xbf16>, vector<64x32xf32> -> vector<64x32xf32>
    %c0_20 = arith.constant 0 : index
    %c0_21 = arith.constant 0 : index
    %18 = vector.load %arg10[%c0_20, %c0_21] : memref<1x32xf32, #tpu.memory_space<vmem>>, vector<1x32xf32>
    %19 = vector.broadcast %18 : vector<1x32xf32> to vector<64x32xf32>
    %20 = arith.addf %17, %19 : vector<64x32xf32>
    %21 = vector.shape_cast %20 : vector<64x32xf32> to vector<8x8x32xf32>
    %c0_22 = arith.constant 0 : index
    %c0_23 = arith.constant 0 : index
    %c0_24 = arith.constant 0 : index
    %22 = vector.load %arg19[%c0_22, %c0_23, %c0_24] : memref<8x8x32xf32, #tpu.memory_space<vmem>>, vector<8x8x32xf32>
    tpu.vector_store %arg19[%c0_22, %c0_23, %c0_24], %21 {strides = array<i32>} : memref<8x8x32xf32, #tpu.memory_space<vmem>>, vector<8x8x32xf32>,
    %c0_25 = arith.constant 0 : index
    %c0_26 = arith.constant 0 : index
    %23 = vector.load %arg5[%c0_25, %c0_26] : memref<32x32xbf16, #tpu.memory_space<vmem>>, vector<32x32xbf16>
    %c0_27 = arith.constant 0 : index
    %c0_28 = arith.constant 0 : index
    %24 = vector.load %arg6[%c0_27, %c0_28] : memref<32x32xbf16, #tpu.memory_space<vmem>>, vector<32x32xbf16>
    %c0_29 = arith.constant 0 : index
    %c0_30 = arith.constant 0 : index
    %25 = vector.load %arg7[%c0_29, %c0_30] : memref<32x32xbf16, #tpu.memory_space<vmem>>, vector<32x32xbf16>
    %c0_31 = arith.constant 0 : index
    %c0_32 = arith.constant 0 : index
    %26 = vector.load %arg11[%c0_31, %c0_32] : memref<1x32xf32, #tpu.memory_space<vmem>>, vector<1x32xf32>
    %c0_33 = arith.constant 0 : index
    %c0_34 = arith.constant 0 : index
    %27 = vector.load %arg12[%c0_33, %c0_34] : memref<1x32xf32, #tpu.memory_space<vmem>>, vector<1x32xf32>
    %c0_35 = arith.constant 0 : index
    %c0_36 = arith.constant 0 : index
    %28 = vector.load %arg13[%c0_35, %c0_36] : memref<1x32xf32, #tpu.memory_space<vmem>>, vector<1x32xf32>
    %c0_37 = arith.constant 0 : index
    %c0_38 = arith.constant 0 : index
    %29 = vector.load %arg14[%c0_37, %c0_38] : memref<8x32xf32, #tpu.memory_space<vmem>>, vector<8x32xf32>
    %c0_i32 = arith.constant 0 : i32
    %30 = arith.truncf %29 : vector<8x32xf32> to vector<8x32xbf16>
    %cst_39 = arith.constant dense<0.000000e+00> : vector<8x32xf32>
    %31 = tpu.matmul %30, %23, %cst_39 {dimension_numbers = #tpu.dot_dimension_numbers<[1], [0], [0], [1], [0, 0, 1, 1], [], []>} : vector<8x32xbf16>, vector<32x32xbf16>, vector<8x32xf32> -> vector<8x32xf32>
    %32 = vector.broadcast %26 : vector<1x32xf32> to vector<8x32xf32>
    %33 = arith.addf %31, %32 : vector<8x32xf32>
    %cst_40 = arith.constant dense<0.000000e+00> : vector<8x32xf32>
    %34 = tpu.matmul %30, %24, %cst_40 {dimension_numbers = #tpu.dot_dimension_numbers<[1], [0], [0], [1], [0, 0, 1, 1], [], []>} : vector<8x32xbf16>, vector<32x32xbf16>, vector<8x32xf32> -> vector<8x32xf32>
    %35 = vector.broadcast %27 : vector<1x32xf32> to vector<8x32xf32>
    %36 = arith.addf %34, %35 : vector<8x32xf32>
    %cst_41 = arith.constant dense<0.000000e+00> : vector<8x32xf32>
    %37 = tpu.matmul %30, %25, %cst_41 {dimension_numbers = #tpu.dot_dimension_numbers<[1], [0], [0], [1], [0, 0, 1, 1], [], []>} : vector<8x32xbf16>, vector<32x32xbf16>, vector<8x32xf32> -> vector<8x32xf32>
    %38 = vector.broadcast %28 : vector<1x32xf32> to vector<8x32xf32>
    %39 = arith.addf %37, %38 : vector<8x32xf32>
    %40 = arith.index_cast %c0_i32 : i32 to index
    %c0_42 = arith.constant 0 : index
    %c0_43 = arith.constant 0 : index
    %41 = vector.load %arg17[%40, %c0_42, %c0_43] : memref<8x8x32xf32, #tpu.memory_space<vmem>>, vector<1x8x32xf32>
    %42 = vector.shape_cast %41 : vector<1x8x32xf32> to vector<8x32xf32>
    %43 = arith.addf %42, %33 : vector<8x32xf32>
    %44 = arith.negf %43 : vector<8x32xf32>
    %45 = math.exp %44 : vector<8x32xf32>
    %cst_44 = arith.constant 1.000000e+00 : f32
    %46 = vector.broadcast %cst_44 : f32 to vector<8x32xf32>
    %47 = arith.addf %46, %45 : vector<8x32xf32>
    %48 = arith.divf %46, %47 : vector<8x32xf32>
    %49 = arith.index_cast %c0_i32 : i32 to index
    %c0_45 = arith.constant 0 : index
    %c0_46 = arith.constant 0 : index
    %50 = vector.load %arg18[%49, %c0_45, %c0_46] : memref<8x8x32xf32, #tpu.memory_space<vmem>>, vector<1x8x32xf32>
    %51 = vector.shape_cast %50 : vector<1x8x32xf32> to vector<8x32xf32>
    %52 = arith.addf %51, %36 : vector<8x32xf32>
    %53 = arith.negf %52 : vector<8x32xf32>
    %54 = math.exp %53 : vector<8x32xf32>
    %cst_47 = arith.constant 1.000000e+00 : f32
    %55 = vector.broadcast %cst_47 : f32 to vector<8x32xf32>
    %56 = arith.addf %55, %54 : vector<8x32xf32>
    %57 = arith.divf %55, %56 : vector<8x32xf32>
    %58 = arith.index_cast %c0_i32 : i32 to index
    %c0_48 = arith.constant 0 : index
    %c0_49 = arith.constant 0 : index
    %59 = vector.load %arg19[%58, %c0_48, %c0_49] : memref<8x8x32xf32, #tpu.memory_space<vmem>>, vector<1x8x32xf32>
    %60 = vector.shape_cast %59 : vector<1x8x32xf32> to vector<8x32xf32>
    %61 = arith.mulf %48, %39 : vector<8x32xf32>
    %62 = arith.addf %60, %61 : vector<8x32xf32>
    %63 = math.tanh %62 : vector<8x32xf32>
    %cst_50 = arith.constant 1.000000e+00 : f32
    %64 = vector.broadcast %cst_50 : f32 to vector<8x32xf32>
    %65 = arith.subf %64, %57 : vector<8x32xf32>
    %66 = arith.mulf %65, %63 : vector<8x32xf32>
    %67 = arith.mulf %57, %29 : vector<8x32xf32>
    %68 = arith.addf %66, %67 : vector<8x32xf32>
    %69 = arith.index_cast %c0_i32 : i32 to index
    %c0_51 = arith.constant 0 : index
    %c0_52 = arith.constant 0 : index
    %70 = vector.load %arg1[%69, %c0_51, %c0_52] : memref<8x8x1xf32, #tpu.memory_space<vmem>>, vector<1x8x1xf32>
    %71 = vector.shape_cast %70 : vector<1x8x1xf32> to vector<8x1xf32>
    %cst_53 = arith.constant 0.000000e+00 : f32
    %72 = vector.broadcast %cst_53 : f32 to vector<8x1xf32>
    %73 = arith.cmpf ogt, %71, %72 : vector<8x1xf32>
    %cst_54 = arith.constant 0.000000e+00 : f32
    %74 = vector.shape_cast %73 : vector<8x1xi1> to vector<8x1xi1>
    %75 = vector.broadcast %74 : vector<8x1xi1> to vector<8x32xi1>
    %76 = vector.broadcast %cst_54 : f32 to vector<8x32xf32>
    %77 = arith.select %75, %68, %76 : vector<8x32xi1>, vector<8x32xf32>
    %78 = arith.truncf %77 : vector<8x32xf32> to vector<8x32xbf16>
    %79 = arith.index_cast %c0_i32 : i32 to index
    %c0_55 = arith.constant 0 : index
    %c0_56 = arith.constant 0 : index
    %80 = vector.load %arg15[%79, %c0_55, %c0_56] : memref<8x8x32xbf16, #tpu.memory_space<vmem>>, vector<1x8x32xbf16>
    %81 = vector.shape_cast %80 : vector<1x8x32xbf16> to vector<8x32xbf16>
    %82 = vector.shape_cast %78 : vector<8x32xbf16> to vector<1x8x32xbf16>
    tpu.vector_store %arg15[%79, %c0_55, %c0_56], %82 {strides = array<i32>} : memref<8x8x32xbf16, #tpu.memory_space<vmem>>, vector<1x8x32xbf16>,
    %83 = vector.shape_cast %73 : vector<8x1xi1> to vector<8x1xi1>
    %84 = vector.broadcast %83 : vector<8x1xi1> to vector<8x32xi1>
    %85 = arith.select %84, %68, %29 : vector<8x32xi1>, vector<8x32xf32>
    %c1_i32 = arith.constant 1 : i32
    %86 = arith.truncf %85 : vector<8x32xf32> to vector<8x32xbf16>
    %cst_57 = arith.constant dense<0.000000e+00> : vector<8x32xf32>
    %87 = tpu.matmul %86, %23, %cst_57 {dimension_numbers = #tpu.dot_dimension_numbers<[1], [0], [0], [1], [0, 0, 1, 1], [], []>} : vector<8x32xbf16>, vector<32x32xbf16>, vector<8x32xf32> -> vector<8x32xf32>
    %88 = vector.broadcast %26 : vector<1x32xf32> to vector<8x32xf32>
    %89 = arith.addf %87, %88 : vector<8x32xf32>
    %cst_58 = arith.constant dense<0.000000e+00> : vector<8x32xf32>
    %90 = tpu.matmul %86, %24, %cst_58 {dimension_numbers = #tpu.dot_dimension_numbers<[1], [0], [0], [1], [0, 0, 1, 1], [], []>} : vector<8x32xbf16>, vector<32x32xbf16>, vector<8x32xf32> -> vector<8x32xf32>
    %91 = vector.broadcast %27 : vector<1x32xf32> to vector<8x32xf32>
    %92 = arith.addf %90, %91 : vector<8x32xf32>
    %cst_59 = arith.constant dense<0.000000e+00> : vector<8x32xf32>
    %93 = tpu.matmul %86, %25, %cst_59 {dimension_numbers = #tpu.dot_dimension_numbers<[1], [0], [0], [1], [0, 0, 1, 1], [], []>} : vector<8x32xbf16>, vector<32x32xbf16>, vector<8x32xf32> -> vector<8x32xf32>
    %94 = vector.broadcast %28 : vector<1x32xf32> to vector<8x32xf32>
    %95 = arith.addf %93, %94 : vector<8x32xf32>
    %96 = arith.index_cast %c1_i32 : i32 to index
    %c0_60 = arith.constant 0 : index
    %c0_61 = arith.constant 0 : index
    %97 = vector.load %arg17[%96, %c0_60, %c0_61] : memref<8x8x32xf32, #tpu.memory_space<vmem>>, vector<1x8x32xf32>
    %98 = vector.shape_cast %97 : vector<1x8x32xf32> to vector<8x32xf32>
    %99 = arith.addf %98, %89 : vector<8x32xf32>
    %100 = arith.negf %99 : vector<8x32xf32>
    %101 = math.exp %100 : vector<8x32xf32>
    %cst_62 = arith.constant 1.000000e+00 : f32
    %102 = vector.broadcast %cst_62 : f32 to vector<8x32xf32>
    %103 = arith.addf %102, %101 : vector<8x32xf32>
    %104 = arith.divf %102, %103 : vector<8x32xf32>
    %105 = arith.index_cast %c1_i32 : i32 to index
    %c0_63 = arith.constant 0 : index
    %c0_64 = arith.constant 0 : index
    %106 = vector.load %arg18[%105, %c0_63, %c0_64] : memref<8x8x32xf32, #tpu.memory_space<vmem>>, vector<1x8x32xf32>
    %107 = vector.shape_cast %106 : vector<1x8x32xf32> to vector<8x32xf32>
    %108 = arith.addf %107, %92 : vector<8x32xf32>
    %109 = arith.negf %108 : vector<8x32xf32>
    %110 = math.exp %109 : vector<8x32xf32>
    %cst_65 = arith.constant 1.000000e+00 : f32
    %111 = vector.broadcast %cst_65 : f32 to vector<8x32xf32>
    %112 = arith.addf %111, %110 : vector<8x32xf32>
    %113 = arith.divf %111, %112 : vector<8x32xf32>
    %114 = arith.index_cast %c1_i32 : i32 to index
    %c0_66 = arith.constant 0 : index
    %c0_67 = arith.constant 0 : index
    %115 = vector.load %arg19[%114, %c0_66, %c0_67] : memref<8x8x32xf32, #tpu.memory_space<vmem>>, vector<1x8x32xf32>
    %116 = vector.shape_cast %115 : vector<1x8x32xf32> to vector<8x32xf32>
    %117 = arith.mulf %104, %95 : vector<8x32xf32>
    %118 = arith.addf %116, %117 : vector<8x32xf32>
    %119 = math.tanh %118 : vector<8x32xf32>
    %cst_68 = arith.constant 1.000000e+00 : f32
    %120 = vector.broadcast %cst_68 : f32 to vector<8x32xf32>
    %121 = arith.subf %120, %113 : vector<8x32xf32>
    %122 = arith.mulf %121, %119 : vector<8x32xf32>
    %123 = arith.mulf %113, %85 : vector<8x32xf32>
    %124 = arith.addf %122, %123 : vector<8x32xf32>
    %125 = arith.index_cast %c1_i32 : i32 to index
    %c0_69 = arith.constant 0 : index
    %c0_70 = arith.constant 0 : index
    %126 = vector.load %arg1[%125, %c0_69, %c0_70] : memref<8x8x1xf32, #tpu.memory_space<vmem>>, vector<1x8x1xf32>
    %127 = vector.shape_cast %126 : vector<1x8x1xf32> to vector<8x1xf32>
    %cst_71 = arith.constant 0.000000e+00 : f32
    %128 = vector.broadcast %cst_71 : f32 to vector<8x1xf32>
    %129 = arith.cmpf ogt, %127, %128 : vector<8x1xf32>
    %cst_72 = arith.constant 0.000000e+00 : f32
    %130 = vector.shape_cast %129 : vector<8x1xi1> to vector<8x1xi1>
    %131 = vector.broadcast %130 : vector<8x1xi1> to vector<8x32xi1>
    %132 = vector.broadcast %cst_72 : f32 to vector<8x32xf32>
    %133 = arith.select %131, %124, %132 : vector<8x32xi1>, vector<8x32xf32>
    %134 = arith.truncf %133 : vector<8x32xf32> to vector<8x32xbf16>
    %135 = arith.index_cast %c1_i32 : i32 to index
    %c0_73 = arith.constant 0 : index
    %c0_74 = arith.constant 0 : index
    %136 = vector.load %arg15[%135, %c0_73, %c0_74] : memref<8x8x32xbf16, #tpu.memory_space<vmem>>, vector<1x8x32xbf16>
    %137 = vector.shape_cast %136 : vector<1x8x32xbf16> to vector<8x32xbf16>
    %138 = vector.shape_cast %134 : vector<8x32xbf16> to vector<1x8x32xbf16>
    tpu.vector_store %arg15[%135, %c0_73, %c0_74], %138 {strides = array<i32>} : memref<8x8x32xbf16, #tpu.memory_space<vmem>>, vector<1x8x32xbf16>,
    %139 = vector.shape_cast %129 : vector<8x1xi1> to vector<8x1xi1>
    %140 = vector.broadcast %139 : vector<8x1xi1> to vector<8x32xi1>
    %141 = arith.select %140, %124, %85 : vector<8x32xi1>, vector<8x32xf32>
    %c2_i32 = arith.constant 2 : i32
    %142 = arith.truncf %141 : vector<8x32xf32> to vector<8x32xbf16>
    %cst_75 = arith.constant dense<0.000000e+00> : vector<8x32xf32>
    %143 = tpu.matmul %142, %23, %cst_75 {dimension_numbers = #tpu.dot_dimension_numbers<[1], [0], [0], [1], [0, 0, 1, 1], [], []>} : vector<8x32xbf16>, vector<32x32xbf16>, vector<8x32xf32> -> vector<8x32xf32>
    %144 = vector.broadcast %26 : vector<1x32xf32> to vector<8x32xf32>
    %145 = arith.addf %143, %144 : vector<8x32xf32>
    %cst_76 = arith.constant dense<0.000000e+00> : vector<8x32xf32>
    %146 = tpu.matmul %142, %24, %cst_76 {dimension_numbers = #tpu.dot_dimension_numbers<[1], [0], [0], [1], [0, 0, 1, 1], [], []>} : vector<8x32xbf16>, vector<32x32xbf16>, vector<8x32xf32> -> vector<8x32xf32>
    %147 = vector.broadcast %27 : vector<1x32xf32> to vector<8x32xf32>
    %148 = arith.addf %146, %147 : vector<8x32xf32>
    %cst_77 = arith.constant dense<0.000000e+00> : vector<8x32xf32>
    %149 = tpu.matmul %142, %25, %cst_77 {dimension_numbers = #tpu.dot_dimension_numbers<[1], [0], [0], [1], [0, 0, 1, 1], [], []>} : vector<8x32xbf16>, vector<32x32xbf16>, vector<8x32xf32> -> vector<8x32xf32>
    %150 = vector.broadcast %28 : vector<1x32xf32> to vector<8x32xf32>
    %151 = arith.addf %149, %150 : vector<8x32xf32>
    %152 = arith.index_cast %c2_i32 : i32 to index
    %c0_78 = arith.constant 0 : index
    %c0_79 = arith.constant 0 : index
    %153 = vector.load %arg17[%152, %c0_78, %c0_79] : memref<8x8x32xf32, #tpu.memory_space<vmem>>, vector<1x8x32xf32>
    %154 = vector.shape_cast %153 : vector<1x8x32xf32> to vector<8x32xf32>
    %155 = arith.addf %154, %145 : vector<8x32xf32>
    %156 = arith.negf %155 : vector<8x32xf32>
    %157 = math.exp %156 : vector<8x32xf32>
    %cst_80 = arith.constant 1.000000e+00 : f32
    %158 = vector.broadcast %cst_80 : f32 to vector<8x32xf32>
    %159 = arith.addf %158, %157 : vector<8x32xf32>
    %160 = arith.divf %158, %159 : vector<8x32xf32>
    %161 = arith.index_cast %c2_i32 : i32 to index
    %c0_81 = arith.constant 0 : index
    %c0_82 = arith.constant 0 : index
    %162 = vector.load %arg18[%161, %c0_81, %c0_82] : memref<8x8x32xf32, #tpu.memory_space<vmem>>, vector<1x8x32xf32>
    %163 = vector.shape_cast %162 : vector<1x8x32xf32> to vector<8x32xf32>
    %164 = arith.addf %163, %148 : vector<8x32xf32>
    %165 = arith.negf %164 : vector<8x32xf32>
    %166 = math.exp %165 : vector<8x32xf32>
    %cst_83 = arith.constant 1.000000e+00 : f32
    %167 = vector.broadcast %cst_83 : f32 to vector<8x32xf32>
    %168 = arith.addf %167, %166 : vector<8x32xf32>
    %169 = arith.divf %167, %168 : vector<8x32xf32>
    %170 = arith.index_cast %c2_i32 : i32 to index
    %c0_84 = arith.constant 0 : index
    %c0_85 = arith.constant 0 : index
    %171 = vector.load %arg19[%170, %c0_84, %c0_85] : memref<8x8x32xf32, #tpu.memory_space<vmem>>, vector<1x8x32xf32>
    %172 = vector.shape_cast %171 : vector<1x8x32xf32> to vector<8x32xf32>
    %173 = arith.mulf %160, %151 : vector<8x32xf32>
    %174 = arith.addf %172, %173 : vector<8x32xf32>
    %175 = math.tanh %174 : vector<8x32xf32>
    %cst_86 = arith.constant 1.000000e+00 : f32
    %176 = vector.broadcast %cst_86 : f32 to vector<8x32xf32>
    %177 = arith.subf %176, %169 : vector<8x32xf32>
    %178 = arith.mulf %177, %175 : vector<8x32xf32>
    %179 = arith.mulf %169, %141 : vector<8x32xf32>
    %180 = arith.addf %178, %179 : vector<8x32xf32>
    %181 = arith.index_cast %c2_i32 : i32 to index
    %c0_87 = arith.constant 0 : index
    %c0_88 = arith.constant 0 : index
    %182 = vector.load %arg1[%181, %c0_87, %c0_88] : memref<8x8x1xf32, #tpu.memory_space<vmem>>, vector<1x8x1xf32>
    %183 = vector.shape_cast %182 : vector<1x8x1xf32> to vector<8x1xf32>
    %cst_89 = arith.constant 0.000000e+00 : f32
    %184 = vector.broadcast %cst_89 : f32 to vector<8x1xf32>
    %185 = arith.cmpf ogt, %183, %184 : vector<8x1xf32>
    %cst_90 = arith.constant 0.000000e+00 : f32
    %186 = vector.shape_cast %185 : vector<8x1xi1> to vector<8x1xi1>
    %187 = vector.broadcast %186 : vector<8x1xi1> to vector<8x32xi1>
    %188 = vector.broadcast %cst_90 : f32 to vector<8x32xf32>
    %189 = arith.select %187, %180, %188 : vector<8x32xi1>, vector<8x32xf32>
    %190 = arith.truncf %189 : vector<8x32xf32> to vector<8x32xbf16>
    %191 = arith.index_cast %c2_i32 : i32 to index
    %c0_91 = arith.constant 0 : index
    %c0_92 = arith.constant 0 : index
    %192 = vector.load %arg15[%191, %c0_91, %c0_92] : memref<8x8x32xbf16, #tpu.memory_space<vmem>>, vector<1x8x32xbf16>
    %193 = vector.shape_cast %192 : vector<1x8x32xbf16> to vector<8x32xbf16>
    %194 = vector.shape_cast %190 : vector<8x32xbf16> to vector<1x8x32xbf16>
    tpu.vector_store %arg15[%191, %c0_91, %c0_92], %194 {strides = array<i32>} : memref<8x8x32xbf16, #tpu.memory_space<vmem>>, vector<1x8x32xbf16>,
    %195 = vector.shape_cast %185 : vector<8x1xi1> to vector<8x1xi1>
    %196 = vector.broadcast %195 : vector<8x1xi1> to vector<8x32xi1>
    %197 = arith.select %196, %180, %141 : vector<8x32xi1>, vector<8x32xf32>
    %c3_i32 = arith.constant 3 : i32
    %198 = arith.truncf %197 : vector<8x32xf32> to vector<8x32xbf16>
    %cst_93 = arith.constant dense<0.000000e+00> : vector<8x32xf32>
    %199 = tpu.matmul %198, %23, %cst_93 {dimension_numbers = #tpu.dot_dimension_numbers<[1], [0], [0], [1], [0, 0, 1, 1], [], []>} : vector<8x32xbf16>, vector<32x32xbf16>, vector<8x32xf32> -> vector<8x32xf32>
    %200 = vector.broadcast %26 : vector<1x32xf32> to vector<8x32xf32>
    %201 = arith.addf %199, %200 : vector<8x32xf32>
    %cst_94 = arith.constant dense<0.000000e+00> : vector<8x32xf32>
    %202 = tpu.matmul %198, %24, %cst_94 {dimension_numbers = #tpu.dot_dimension_numbers<[1], [0], [0], [1], [0, 0, 1, 1], [], []>} : vector<8x32xbf16>, vector<32x32xbf16>, vector<8x32xf32> -> vector<8x32xf32>
    %203 = vector.broadcast %27 : vector<1x32xf32> to vector<8x32xf32>
    %204 = arith.addf %202, %203 : vector<8x32xf32>
    %cst_95 = arith.constant dense<0.000000e+00> : vector<8x32xf32>
    %205 = tpu.matmul %198, %25, %cst_95 {dimension_numbers = #tpu.dot_dimension_numbers<[1], [0], [0], [1], [0, 0, 1, 1], [], []>} : vector<8x32xbf16>, vector<32x32xbf16>, vector<8x32xf32> -> vector<8x32xf32>
    %206 = vector.broadcast %28 : vector<1x32xf32> to vector<8x32xf32>
    %207 = arith.addf %205, %206 : vector<8x32xf32>
    %208 = arith.index_cast %c3_i32 : i32 to index
    %c0_96 = arith.constant 0 : index
    %c0_97 = arith.constant 0 : index
    %209 = vector.load %arg17[%208, %c0_96, %c0_97] : memref<8x8x32xf32, #tpu.memory_space<vmem>>, vector<1x8x32xf32>
    %210 = vector.shape_cast %209 : vector<1x8x32xf32> to vector<8x32xf32>
    %211 = arith.addf %210, %201 : vector<8x32xf32>
    %212 = arith.negf %211 : vector<8x32xf32>
    %213 = math.exp %212 : vector<8x32xf32>
    %cst_98 = arith.constant 1.000000e+00 : f32
    %214 = vector.broadcast %cst_98 : f32 to vector<8x32xf32>
    %215 = arith.addf %214, %213 : vector<8x32xf32>
    %216 = arith.divf %214, %215 : vector<8x32xf32>
    %217 = arith.index_cast %c3_i32 : i32 to index
    %c0_99 = arith.constant 0 : index
    %c0_100 = arith.constant 0 : index
    %218 = vector.load %arg18[%217, %c0_99, %c0_100] : memref<8x8x32xf32, #tpu.memory_space<vmem>>, vector<1x8x32xf32>
    %219 = vector.shape_cast %218 : vector<1x8x32xf32> to vector<8x32xf32>
    %220 = arith.addf %219, %204 : vector<8x32xf32>
    %221 = arith.negf %220 : vector<8x32xf32>
    %222 = math.exp %221 : vector<8x32xf32>
    %cst_101 = arith.constant 1.000000e+00 : f32
    %223 = vector.broadcast %cst_101 : f32 to vector<8x32xf32>
    %224 = arith.addf %223, %222 : vector<8x32xf32>
    %225 = arith.divf %223, %224 : vector<8x32xf32>
    %226 = arith.index_cast %c3_i32 : i32 to index
    %c0_102 = arith.constant 0 : index
    %c0_103 = arith.constant 0 : index
    %227 = vector.load %arg19[%226, %c0_102, %c0_103] : memref<8x8x32xf32, #tpu.memory_space<vmem>>, vector<1x8x32xf32>
    %228 = vector.shape_cast %227 : vector<1x8x32xf32> to vector<8x32xf32>
    %229 = arith.mulf %216, %207 : vector<8x32xf32>
    %230 = arith.addf %228, %229 : vector<8x32xf32>
    %231 = math.tanh %230 : vector<8x32xf32>
    %cst_104 = arith.constant 1.000000e+00 : f32
    %232 = vector.broadcast %cst_104 : f32 to vector<8x32xf32>
    %233 = arith.subf %232, %225 : vector<8x32xf32>
    %234 = arith.mulf %233, %231 : vector<8x32xf32>
    %235 = arith.mulf %225, %197 : vector<8x32xf32>
    %236 = arith.addf %234, %235 : vector<8x32xf32>
    %237 = arith.index_cast %c3_i32 : i32 to index
    %c0_105 = arith.constant 0 : index
    %c0_106 = arith.constant 0 : index
    %238 = vector.load %arg1[%237, %c0_105, %c0_106] : memref<8x8x1xf32, #tpu.memory_space<vmem>>, vector<1x8x1xf32>
    %239 = vector.shape_cast %238 : vector<1x8x1xf32> to vector<8x1xf32>
    %cst_107 = arith.constant 0.000000e+00 : f32
    %240 = vector.broadcast %cst_107 : f32 to vector<8x1xf32>
    %241 = arith.cmpf ogt, %239, %240 : vector<8x1xf32>
    %cst_108 = arith.constant 0.000000e+00 : f32
    %242 = vector.shape_cast %241 : vector<8x1xi1> to vector<8x1xi1>
    %243 = vector.broadcast %242 : vector<8x1xi1> to vector<8x32xi1>
    %244 = vector.broadcast %cst_108 : f32 to vector<8x32xf32>
    %245 = arith.select %243, %236, %244 : vector<8x32xi1>, vector<8x32xf32>
    %246 = arith.truncf %245 : vector<8x32xf32> to vector<8x32xbf16>
    %247 = arith.index_cast %c3_i32 : i32 to index
    %c0_109 = arith.constant 0 : index
    %c0_110 = arith.constant 0 : index
    %248 = vector.load %arg15[%247, %c0_109, %c0_110] : memref<8x8x32xbf16, #tpu.memory_space<vmem>>, vector<1x8x32xbf16>
    %249 = vector.shape_cast %248 : vector<1x8x32xbf16> to vector<8x32xbf16>
    %250 = vector.shape_cast %246 : vector<8x32xbf16> to vector<1x8x32xbf16>
    tpu.vector_store %arg15[%247, %c0_109, %c0_110], %250 {strides = array<i32>} : memref<8x8x32xbf16, #tpu.memory_space<vmem>>, vector<1x8x32xbf16>,
    %251 = vector.shape_cast %241 : vector<8x1xi1> to vector<8x1xi1>
    %252 = vector.broadcast %251 : vector<8x1xi1> to vector<8x32xi1>
    %253 = arith.select %252, %236, %197 : vector<8x32xi1>, vector<8x32xf32>
    %c4_i32 = arith.constant 4 : i32
    %254 = arith.truncf %253 : vector<8x32xf32> to vector<8x32xbf16>
    %cst_111 = arith.constant dense<0.000000e+00> : vector<8x32xf32>
    %255 = tpu.matmul %254, %23, %cst_111 {dimension_numbers = #tpu.dot_dimension_numbers<[1], [0], [0], [1], [0, 0, 1, 1], [], []>} : vector<8x32xbf16>, vector<32x32xbf16>, vector<8x32xf32> -> vector<8x32xf32>
    %256 = vector.broadcast %26 : vector<1x32xf32> to vector<8x32xf32>
    %257 = arith.addf %255, %256 : vector<8x32xf32>
    %cst_112 = arith.constant dense<0.000000e+00> : vector<8x32xf32>
    %258 = tpu.matmul %254, %24, %cst_112 {dimension_numbers = #tpu.dot_dimension_numbers<[1], [0], [0], [1], [0, 0, 1, 1], [], []>} : vector<8x32xbf16>, vector<32x32xbf16>, vector<8x32xf32> -> vector<8x32xf32>
    %259 = vector.broadcast %27 : vector<1x32xf32> to vector<8x32xf32>
    %260 = arith.addf %258, %259 : vector<8x32xf32>
    %cst_113 = arith.constant dense<0.000000e+00> : vector<8x32xf32>
    %261 = tpu.matmul %254, %25, %cst_113 {dimension_numbers = #tpu.dot_dimension_numbers<[1], [0], [0], [1], [0, 0, 1, 1], [], []>} : vector<8x32xbf16>, vector<32x32xbf16>, vector<8x32xf32> -> vector<8x32xf32>
    %262 = vector.broadcast %28 : vector<1x32xf32> to vector<8x32xf32>
    %263 = arith.addf %261, %262 : vector<8x32xf32>
    %264 = arith.index_cast %c4_i32 : i32 to index
    %c0_114 = arith.constant 0 : index
    %c0_115 = arith.constant 0 : index
    %265 = vector.load %arg17[%264, %c0_114, %c0_115] : memref<8x8x32xf32, #tpu.memory_space<vmem>>, vector<1x8x32xf32>
    %266 = vector.shape_cast %265 : vector<1x8x32xf32> to vector<8x32xf32>
    %267 = arith.addf %266, %257 : vector<8x32xf32>
    %268 = arith.negf %267 : vector<8x32xf32>
    %269 = math.exp %268 : vector<8x32xf32>
    %cst_116 = arith.constant 1.000000e+00 : f32
    %270 = vector.broadcast %cst_116 : f32 to vector<8x32xf32>
    %271 = arith.addf %270, %269 : vector<8x32xf32>
    %272 = arith.divf %270, %271 : vector<8x32xf32>
    %273 = arith.index_cast %c4_i32 : i32 to index
    %c0_117 = arith.constant 0 : index
    %c0_118 = arith.constant 0 : index
    %274 = vector.load %arg18[%273, %c0_117, %c0_118] : memref<8x8x32xf32, #tpu.memory_space<vmem>>, vector<1x8x32xf32>
    %275 = vector.shape_cast %274 : vector<1x8x32xf32> to vector<8x32xf32>
    %276 = arith.addf %275, %260 : vector<8x32xf32>
    %277 = arith.negf %276 : vector<8x32xf32>
    %278 = math.exp %277 : vector<8x32xf32>
    %cst_119 = arith.constant 1.000000e+00 : f32
    %279 = vector.broadcast %cst_119 : f32 to vector<8x32xf32>
    %280 = arith.addf %279, %278 : vector<8x32xf32>
    %281 = arith.divf %279, %280 : vector<8x32xf32>
    %282 = arith.index_cast %c4_i32 : i32 to index
    %c0_120 = arith.constant 0 : index
    %c0_121 = arith.constant 0 : index
    %283 = vector.load %arg19[%282, %c0_120, %c0_121] : memref<8x8x32xf32, #tpu.memory_space<vmem>>, vector<1x8x32xf32>
    %284 = vector.shape_cast %283 : vector<1x8x32xf32> to vector<8x32xf32>
    %285 = arith.mulf %272, %263 : vector<8x32xf32>
    %286 = arith.addf %284, %285 : vector<8x32xf32>
    %287 = math.tanh %286 : vector<8x32xf32>
    %cst_122 = arith.constant 1.000000e+00 : f32
    %288 = vector.broadcast %cst_122 : f32 to vector<8x32xf32>
    %289 = arith.subf %288, %281 : vector<8x32xf32>
    %290 = arith.mulf %289, %287 : vector<8x32xf32>
    %291 = arith.mulf %281, %253 : vector<8x32xf32>
    %292 = arith.addf %290, %291 : vector<8x32xf32>
    %293 = arith.index_cast %c4_i32 : i32 to index
    %c0_123 = arith.constant 0 : index
    %c0_124 = arith.constant 0 : index
    %294 = vector.load %arg1[%293, %c0_123, %c0_124] : memref<8x8x1xf32, #tpu.memory_space<vmem>>, vector<1x8x1xf32>
    %295 = vector.shape_cast %294 : vector<1x8x1xf32> to vector<8x1xf32>
    %cst_125 = arith.constant 0.000000e+00 : f32
    %296 = vector.broadcast %cst_125 : f32 to vector<8x1xf32>
    %297 = arith.cmpf ogt, %295, %296 : vector<8x1xf32>
    %cst_126 = arith.constant 0.000000e+00 : f32
    %298 = vector.shape_cast %297 : vector<8x1xi1> to vector<8x1xi1>
    %299 = vector.broadcast %298 : vector<8x1xi1> to vector<8x32xi1>
    %300 = vector.broadcast %cst_126 : f32 to vector<8x32xf32>
    %301 = arith.select %299, %292, %300 : vector<8x32xi1>, vector<8x32xf32>
    %302 = arith.truncf %301 : vector<8x32xf32> to vector<8x32xbf16>
    %303 = arith.index_cast %c4_i32 : i32 to index
    %c0_127 = arith.constant 0 : index
    %c0_128 = arith.constant 0 : index
    %304 = vector.load %arg15[%303, %c0_127, %c0_128] : memref<8x8x32xbf16, #tpu.memory_space<vmem>>, vector<1x8x32xbf16>
    %305 = vector.shape_cast %304 : vector<1x8x32xbf16> to vector<8x32xbf16>
    %306 = vector.shape_cast %302 : vector<8x32xbf16> to vector<1x8x32xbf16>
    tpu.vector_store %arg15[%303, %c0_127, %c0_128], %306 {strides = array<i32>} : memref<8x8x32xbf16, #tpu.memory_space<vmem>>, vector<1x8x32xbf16>,
    %307 = vector.shape_cast %297 : vector<8x1xi1> to vector<8x1xi1>
    %308 = vector.broadcast %307 : vector<8x1xi1> to vector<8x32xi1>
    %309 = arith.select %308, %292, %253 : vector<8x32xi1>, vector<8x32xf32>
    %c5_i32 = arith.constant 5 : i32
    %310 = arith.truncf %309 : vector<8x32xf32> to vector<8x32xbf16>
    %cst_129 = arith.constant dense<0.000000e+00> : vector<8x32xf32>
    %311 = tpu.matmul %310, %23, %cst_129 {dimension_numbers = #tpu.dot_dimension_numbers<[1], [0], [0], [1], [0, 0, 1, 1], [], []>} : vector<8x32xbf16>, vector<32x32xbf16>, vector<8x32xf32> -> vector<8x32xf32>
    %312 = vector.broadcast %26 : vector<1x32xf32> to vector<8x32xf32>
    %313 = arith.addf %311, %312 : vector<8x32xf32>
    %cst_130 = arith.constant dense<0.000000e+00> : vector<8x32xf32>
    %314 = tpu.matmul %310, %24, %cst_130 {dimension_numbers = #tpu.dot_dimension_numbers<[1], [0], [0], [1], [0, 0, 1, 1], [], []>} : vector<8x32xbf16>, vector<32x32xbf16>, vector<8x32xf32> -> vector<8x32xf32>
    %315 = vector.broadcast %27 : vector<1x32xf32> to vector<8x32xf32>
    %316 = arith.addf %314, %315 : vector<8x32xf32>
    %cst_131 = arith.constant dense<0.000000e+00> : vector<8x32xf32>
    %317 = tpu.matmul %310, %25, %cst_131 {dimension_numbers = #tpu.dot_dimension_numbers<[1], [0], [0], [1], [0, 0, 1, 1], [], []>} : vector<8x32xbf16>, vector<32x32xbf16>, vector<8x32xf32> -> vector<8x32xf32>
    %318 = vector.broadcast %28 : vector<1x32xf32> to vector<8x32xf32>
    %319 = arith.addf %317, %318 : vector<8x32xf32>
    %320 = arith.index_cast %c5_i32 : i32 to index
    %c0_132 = arith.constant 0 : index
    %c0_133 = arith.constant 0 : index
    %321 = vector.load %arg17[%320, %c0_132, %c0_133] : memref<8x8x32xf32, #tpu.memory_space<vmem>>, vector<1x8x32xf32>
    %322 = vector.shape_cast %321 : vector<1x8x32xf32> to vector<8x32xf32>
    %323 = arith.addf %322, %313 : vector<8x32xf32>
    %324 = arith.negf %323 : vector<8x32xf32>
    %325 = math.exp %324 : vector<8x32xf32>
    %cst_134 = arith.constant 1.000000e+00 : f32
    %326 = vector.broadcast %cst_134 : f32 to vector<8x32xf32>
    %327 = arith.addf %326, %325 : vector<8x32xf32>
    %328 = arith.divf %326, %327 : vector<8x32xf32>
    %329 = arith.index_cast %c5_i32 : i32 to index
    %c0_135 = arith.constant 0 : index
    %c0_136 = arith.constant 0 : index
    %330 = vector.load %arg18[%329, %c0_135, %c0_136] : memref<8x8x32xf32, #tpu.memory_space<vmem>>, vector<1x8x32xf32>
    %331 = vector.shape_cast %330 : vector<1x8x32xf32> to vector<8x32xf32>
    %332 = arith.addf %331, %316 : vector<8x32xf32>
    %333 = arith.negf %332 : vector<8x32xf32>
    %334 = math.exp %333 : vector<8x32xf32>
    %cst_137 = arith.constant 1.000000e+00 : f32
    %335 = vector.broadcast %cst_137 : f32 to vector<8x32xf32>
    %336 = arith.addf %335, %334 : vector<8x32xf32>
    %337 = arith.divf %335, %336 : vector<8x32xf32>
    %338 = arith.index_cast %c5_i32 : i32 to index
    %c0_138 = arith.constant 0 : index
    %c0_139 = arith.constant 0 : index
    %339 = vector.load %arg19[%338, %c0_138, %c0_139] : memref<8x8x32xf32, #tpu.memory_space<vmem>>, vector<1x8x32xf32>
    %340 = vector.shape_cast %339 : vector<1x8x32xf32> to vector<8x32xf32>
    %341 = arith.mulf %328, %319 : vector<8x32xf32>
    %342 = arith.addf %340, %341 : vector<8x32xf32>
    %343 = math.tanh %342 : vector<8x32xf32>
    %cst_140 = arith.constant 1.000000e+00 : f32
    %344 = vector.broadcast %cst_140 : f32 to vector<8x32xf32>
    %345 = arith.subf %344, %337 : vector<8x32xf32>
    %346 = arith.mulf %345, %343 : vector<8x32xf32>
    %347 = arith.mulf %337, %309 : vector<8x32xf32>
    %348 = arith.addf %346, %347 : vector<8x32xf32>
    %349 = arith.index_cast %c5_i32 : i32 to index
    %c0_141 = arith.constant 0 : index
    %c0_142 = arith.constant 0 : index
    %350 = vector.load %arg1[%349, %c0_141, %c0_142] : memref<8x8x1xf32, #tpu.memory_space<vmem>>, vector<1x8x1xf32>
    %351 = vector.shape_cast %350 : vector<1x8x1xf32> to vector<8x1xf32>
    %cst_143 = arith.constant 0.000000e+00 : f32
    %352 = vector.broadcast %cst_143 : f32 to vector<8x1xf32>
    %353 = arith.cmpf ogt, %351, %352 : vector<8x1xf32>
    %cst_144 = arith.constant 0.000000e+00 : f32
    %354 = vector.shape_cast %353 : vector<8x1xi1> to vector<8x1xi1>
    %355 = vector.broadcast %354 : vector<8x1xi1> to vector<8x32xi1>
    %356 = vector.broadcast %cst_144 : f32 to vector<8x32xf32>
    %357 = arith.select %355, %348, %356 : vector<8x32xi1>, vector<8x32xf32>
    %358 = arith.truncf %357 : vector<8x32xf32> to vector<8x32xbf16>
    %359 = arith.index_cast %c5_i32 : i32 to index
    %c0_145 = arith.constant 0 : index
    %c0_146 = arith.constant 0 : index
    %360 = vector.load %arg15[%359, %c0_145, %c0_146] : memref<8x8x32xbf16, #tpu.memory_space<vmem>>, vector<1x8x32xbf16>
    %361 = vector.shape_cast %360 : vector<1x8x32xbf16> to vector<8x32xbf16>
    %362 = vector.shape_cast %358 : vector<8x32xbf16> to vector<1x8x32xbf16>
    tpu.vector_store %arg15[%359, %c0_145, %c0_146], %362 {strides = array<i32>} : memref<8x8x32xbf16, #tpu.memory_space<vmem>>, vector<1x8x32xbf16>,
    %363 = vector.shape_cast %353 : vector<8x1xi1> to vector<8x1xi1>
    %364 = vector.broadcast %363 : vector<8x1xi1> to vector<8x32xi1>
    %365 = arith.select %364, %348, %309 : vector<8x32xi1>, vector<8x32xf32>
    %c6_i32 = arith.constant 6 : i32
    %366 = arith.truncf %365 : vector<8x32xf32> to vector<8x32xbf16>
    %cst_147 = arith.constant dense<0.000000e+00> : vector<8x32xf32>
    %367 = tpu.matmul %366, %23, %cst_147 {dimension_numbers = #tpu.dot_dimension_numbers<[1], [0], [0], [1], [0, 0, 1, 1], [], []>} : vector<8x32xbf16>, vector<32x32xbf16>, vector<8x32xf32> -> vector<8x32xf32>
    %368 = vector.broadcast %26 : vector<1x32xf32> to vector<8x32xf32>
    %369 = arith.addf %367, %368 : vector<8x32xf32>
    %cst_148 = arith.constant dense<0.000000e+00> : vector<8x32xf32>
    %370 = tpu.matmul %366, %24, %cst_148 {dimension_numbers = #tpu.dot_dimension_numbers<[1], [0], [0], [1], [0, 0, 1, 1], [], []>} : vector<8x32xbf16>, vector<32x32xbf16>, vector<8x32xf32> -> vector<8x32xf32>
    %371 = vector.broadcast %27 : vector<1x32xf32> to vector<8x32xf32>
    %372 = arith.addf %370, %371 : vector<8x32xf32>
    %cst_149 = arith.constant dense<0.000000e+00> : vector<8x32xf32>
    %373 = tpu.matmul %366, %25, %cst_149 {dimension_numbers = #tpu.dot_dimension_numbers<[1], [0], [0], [1], [0, 0, 1, 1], [], []>} : vector<8x32xbf16>, vector<32x32xbf16>, vector<8x32xf32> -> vector<8x32xf32>
    %374 = vector.broadcast %28 : vector<1x32xf32> to vector<8x32xf32>
    %375 = arith.addf %373, %374 : vector<8x32xf32>
    %376 = arith.index_cast %c6_i32 : i32 to index
    %c0_150 = arith.constant 0 : index
    %c0_151 = arith.constant 0 : index
    %377 = vector.load %arg17[%376, %c0_150, %c0_151] : memref<8x8x32xf32, #tpu.memory_space<vmem>>, vector<1x8x32xf32>
    %378 = vector.shape_cast %377 : vector<1x8x32xf32> to vector<8x32xf32>
    %379 = arith.addf %378, %369 : vector<8x32xf32>
    %380 = arith.negf %379 : vector<8x32xf32>
    %381 = math.exp %380 : vector<8x32xf32>
    %cst_152 = arith.constant 1.000000e+00 : f32
    %382 = vector.broadcast %cst_152 : f32 to vector<8x32xf32>
    %383 = arith.addf %382, %381 : vector<8x32xf32>
    %384 = arith.divf %382, %383 : vector<8x32xf32>
    %385 = arith.index_cast %c6_i32 : i32 to index
    %c0_153 = arith.constant 0 : index
    %c0_154 = arith.constant 0 : index
    %386 = vector.load %arg18[%385, %c0_153, %c0_154] : memref<8x8x32xf32, #tpu.memory_space<vmem>>, vector<1x8x32xf32>
    %387 = vector.shape_cast %386 : vector<1x8x32xf32> to vector<8x32xf32>
    %388 = arith.addf %387, %372 : vector<8x32xf32>
    %389 = arith.negf %388 : vector<8x32xf32>
    %390 = math.exp %389 : vector<8x32xf32>
    %cst_155 = arith.constant 1.000000e+00 : f32
    %391 = vector.broadcast %cst_155 : f32 to vector<8x32xf32>
    %392 = arith.addf %391, %390 : vector<8x32xf32>
    %393 = arith.divf %391, %392 : vector<8x32xf32>
    %394 = arith.index_cast %c6_i32 : i32 to index
    %c0_156 = arith.constant 0 : index
    %c0_157 = arith.constant 0 : index
    %395 = vector.load %arg19[%394, %c0_156, %c0_157] : memref<8x8x32xf32, #tpu.memory_space<vmem>>, vector<1x8x32xf32>
    %396 = vector.shape_cast %395 : vector<1x8x32xf32> to vector<8x32xf32>
    %397 = arith.mulf %384, %375 : vector<8x32xf32>
    %398 = arith.addf %396, %397 : vector<8x32xf32>
    %399 = math.tanh %398 : vector<8x32xf32>
    %cst_158 = arith.constant 1.000000e+00 : f32
    %400 = vector.broadcast %cst_158 : f32 to vector<8x32xf32>
    %401 = arith.subf %400, %393 : vector<8x32xf32>
    %402 = arith.mulf %401, %399 : vector<8x32xf32>
    %403 = arith.mulf %393, %365 : vector<8x32xf32>
    %404 = arith.addf %402, %403 : vector<8x32xf32>
    %405 = arith.index_cast %c6_i32 : i32 to index
    %c0_159 = arith.constant 0 : index
    %c0_160 = arith.constant 0 : index
    %406 = vector.load %arg1[%405, %c0_159, %c0_160] : memref<8x8x1xf32, #tpu.memory_space<vmem>>, vector<1x8x1xf32>
    %407 = vector.shape_cast %406 : vector<1x8x1xf32> to vector<8x1xf32>
    %cst_161 = arith.constant 0.000000e+00 : f32
    %408 = vector.broadcast %cst_161 : f32 to vector<8x1xf32>
    %409 = arith.cmpf ogt, %407, %408 : vector<8x1xf32>
    %cst_162 = arith.constant 0.000000e+00 : f32
    %410 = vector.shape_cast %409 : vector<8x1xi1> to vector<8x1xi1>
    %411 = vector.broadcast %410 : vector<8x1xi1> to vector<8x32xi1>
    %412 = vector.broadcast %cst_162 : f32 to vector<8x32xf32>
    %413 = arith.select %411, %404, %412 : vector<8x32xi1>, vector<8x32xf32>
    %414 = arith.truncf %413 : vector<8x32xf32> to vector<8x32xbf16>
    %415 = arith.index_cast %c6_i32 : i32 to index
    %c0_163 = arith.constant 0 : index
    %c0_164 = arith.constant 0 : index
    %416 = vector.load %arg15[%415, %c0_163, %c0_164] : memref<8x8x32xbf16, #tpu.memory_space<vmem>>, vector<1x8x32xbf16>
    %417 = vector.shape_cast %416 : vector<1x8x32xbf16> to vector<8x32xbf16>
    %418 = vector.shape_cast %414 : vector<8x32xbf16> to vector<1x8x32xbf16>
    tpu.vector_store %arg15[%415, %c0_163, %c0_164], %418 {strides = array<i32>} : memref<8x8x32xbf16, #tpu.memory_space<vmem>>, vector<1x8x32xbf16>,
    %419 = vector.shape_cast %409 : vector<8x1xi1> to vector<8x1xi1>
    %420 = vector.broadcast %419 : vector<8x1xi1> to vector<8x32xi1>
    %421 = arith.select %420, %404, %365 : vector<8x32xi1>, vector<8x32xf32>
    %c7_i32 = arith.constant 7 : i32
    %422 = arith.truncf %421 : vector<8x32xf32> to vector<8x32xbf16>
    %cst_165 = arith.constant dense<0.000000e+00> : vector<8x32xf32>
    %423 = tpu.matmul %422, %23, %cst_165 {dimension_numbers = #tpu.dot_dimension_numbers<[1], [0], [0], [1], [0, 0, 1, 1], [], []>} : vector<8x32xbf16>, vector<32x32xbf16>, vector<8x32xf32> -> vector<8x32xf32>
    %424 = vector.broadcast %26 : vector<1x32xf32> to vector<8x32xf32>
    %425 = arith.addf %423, %424 : vector<8x32xf32>
    %cst_166 = arith.constant dense<0.000000e+00> : vector<8x32xf32>
    %426 = tpu.matmul %422, %24, %cst_166 {dimension_numbers = #tpu.dot_dimension_numbers<[1], [0], [0], [1], [0, 0, 1, 1], [], []>} : vector<8x32xbf16>, vector<32x32xbf16>, vector<8x32xf32> -> vector<8x32xf32>
    %427 = vector.broadcast %27 : vector<1x32xf32> to vector<8x32xf32>
    %428 = arith.addf %426, %427 : vector<8x32xf32>
    %cst_167 = arith.constant dense<0.000000e+00> : vector<8x32xf32>
    %429 = tpu.matmul %422, %25, %cst_167 {dimension_numbers = #tpu.dot_dimension_numbers<[1], [0], [0], [1], [0, 0, 1, 1], [], []>} : vector<8x32xbf16>, vector<32x32xbf16>, vector<8x32xf32> -> vector<8x32xf32>
    %430 = vector.broadcast %28 : vector<1x32xf32> to vector<8x32xf32>
    %431 = arith.addf %429, %430 : vector<8x32xf32>
    %432 = arith.index_cast %c7_i32 : i32 to index
    %c0_168 = arith.constant 0 : index
    %c0_169 = arith.constant 0 : index
    %433 = vector.load %arg17[%432, %c0_168, %c0_169] : memref<8x8x32xf32, #tpu.memory_space<vmem>>, vector<1x8x32xf32>
    %434 = vector.shape_cast %433 : vector<1x8x32xf32> to vector<8x32xf32>
    %435 = arith.addf %434, %425 : vector<8x32xf32>
    %436 = arith.negf %435 : vector<8x32xf32>
    %437 = math.exp %436 : vector<8x32xf32>
    %cst_170 = arith.constant 1.000000e+00 : f32
    %438 = vector.broadcast %cst_170 : f32 to vector<8x32xf32>
    %439 = arith.addf %438, %437 : vector<8x32xf32>
    %440 = arith.divf %438, %439 : vector<8x32xf32>
    %441 = arith.index_cast %c7_i32 : i32 to index
    %c0_171 = arith.constant 0 : index
    %c0_172 = arith.constant 0 : index
    %442 = vector.load %arg18[%441, %c0_171, %c0_172] : memref<8x8x32xf32, #tpu.memory_space<vmem>>, vector<1x8x32xf32>
    %443 = vector.shape_cast %442 : vector<1x8x32xf32> to vector<8x32xf32>
    %444 = arith.addf %443, %428 : vector<8x32xf32>
    %445 = arith.negf %444 : vector<8x32xf32>
    %446 = math.exp %445 : vector<8x32xf32>
    %cst_173 = arith.constant 1.000000e+00 : f32
    %447 = vector.broadcast %cst_173 : f32 to vector<8x32xf32>
    %448 = arith.addf %447, %446 : vector<8x32xf32>
    %449 = arith.divf %447, %448 : vector<8x32xf32>
    %450 = arith.index_cast %c7_i32 : i32 to index
    %c0_174 = arith.constant 0 : index
    %c0_175 = arith.constant 0 : index
    %451 = vector.load %arg19[%450, %c0_174, %c0_175] : memref<8x8x32xf32, #tpu.memory_space<vmem>>, vector<1x8x32xf32>
    %452 = vector.shape_cast %451 : vector<1x8x32xf32> to vector<8x32xf32>
    %453 = arith.mulf %440, %431 : vector<8x32xf32>
    %454 = arith.addf %452, %453 : vector<8x32xf32>
    %455 = math.tanh %454 : vector<8x32xf32>
    %cst_176 = arith.constant 1.000000e+00 : f32
    %456 = vector.broadcast %cst_176 : f32 to vector<8x32xf32>
    %457 = arith.subf %456, %449 : vector<8x32xf32>
    %458 = arith.mulf %457, %455 : vector<8x32xf32>
    %459 = arith.mulf %449, %421 : vector<8x32xf32>
    %460 = arith.addf %458, %459 : vector<8x32xf32>
    %461 = arith.index_cast %c7_i32 : i32 to index
    %c0_177 = arith.constant 0 : index
    %c0_178 = arith.constant 0 : index
    %462 = vector.load %arg1[%461, %c0_177, %c0_178] : memref<8x8x1xf32, #tpu.memory_space<vmem>>, vector<1x8x1xf32>
    %463 = vector.shape_cast %462 : vector<1x8x1xf32> to vector<8x1xf32>
    %cst_179 = arith.constant 0.000000e+00 : f32
    %464 = vector.broadcast %cst_179 : f32 to vector<8x1xf32>
    %465 = arith.cmpf ogt, %463, %464 : vector<8x1xf32>
    %cst_180 = arith.constant 0.000000e+00 : f32
    %466 = vector.shape_cast %465 : vector<8x1xi1> to vector<8x1xi1>
    %467 = vector.broadcast %466 : vector<8x1xi1> to vector<8x32xi1>
    %468 = vector.broadcast %cst_180 : f32 to vector<8x32xf32>
    %469 = arith.select %467, %460, %468 : vector<8x32xi1>, vector<8x32xf32>
    %470 = arith.truncf %469 : vector<8x32xf32> to vector<8x32xbf16>
    %471 = arith.index_cast %c7_i32 : i32 to index
    %c0_181 = arith.constant 0 : index
    %c0_182 = arith.constant 0 : index
    %472 = vector.load %arg15[%471, %c0_181, %c0_182] : memref<8x8x32xbf16, #tpu.memory_space<vmem>>, vector<1x8x32xbf16>
    %473 = vector.shape_cast %472 : vector<1x8x32xbf16> to vector<8x32xbf16>
    %474 = vector.shape_cast %470 : vector<8x32xbf16> to vector<1x8x32xbf16>
    tpu.vector_store %arg15[%471, %c0_181, %c0_182], %474 {strides = array<i32>} : memref<8x8x32xbf16, #tpu.memory_space<vmem>>, vector<1x8x32xbf16>,
    %475 = vector.shape_cast %465 : vector<8x1xi1> to vector<8x1xi1>
    %476 = vector.broadcast %475 : vector<8x1xi1> to vector<8x32xi1>
    %477 = arith.select %476, %460, %421 : vector<8x32xi1>, vector<8x32xf32>
    %c8_i32 = arith.constant 8 : i32
    %c0_183 = arith.constant 0 : index
    %c0_184 = arith.constant 0 : index
    %478 = vector.load %arg16[%c0_183, %c0_184] : memref<8x32xf32, #tpu.memory_space<vmem>>, vector<8x32xf32>
    tpu.vector_store %arg16[%c0_183, %c0_184], %477 {strides = array<i32>} : memref<8x32xf32, #tpu.memory_space<vmem>>, vector<8x32xf32>,
    return
  }
}

module attributes {stable_mosaic.version = 11 : i64} {
  func.func @decode_logits_kernel(%arg0: i32, %arg1: memref<8x32xbf16, #tpu.memory_space<vmem>>, %arg2: memref<8x32xbf16, #tpu.memory_space<vmem>>, %arg3: memref<128x16xbf16, #tpu.memory_space<vmem>>, %arg4: memref<16x32xbf16, #tpu.memory_space<vmem>>, %arg5: memref<16x32xbf16, #tpu.memory_space<vmem>>, %arg6: memref<1x32xf32, #tpu.memory_space<vmem>>, %arg7: memref<1x32xf32, #tpu.memory_space<vmem>>, %arg8: memref<8x128xf32, #tpu.memory_space<vmem>>) attributes {dimension_semantics = [#tpu.dimension_semantics<parallel>], iteration_bounds = array<i64: 1>, scalar_prefetch = 0 : i64, scratch_operands = 0 : i64, tpu.core_type = #tpu.core_type<tc>, window_params = [{pipeline_mode = #tpu.pipeline_mode<synchronous>, transform_indices = @transform_0, window_bounds = array<i64: 8, 32>}, {pipeline_mode = #tpu.pipeline_mode<synchronous>, transform_indices = @transform_1, window_bounds = array<i64: 8, 32>}, {transform_indices = @transform_2, window_bounds = array<i64: 128, 16>}, {pipeline_mode = #tpu.pipeline_mode<synchronous>, transform_indices = @transform_3, window_bounds = array<i64: 16, 32>}, {pipeline_mode = #tpu.pipeline_mode<synchronous>, transform_indices = @transform_4, window_bounds = array<i64: 16, 32>}, {pipeline_mode = #tpu.pipeline_mode<synchronous>, transform_indices = @transform_5, window_bounds = array<i64: 1, 32>}, {pipeline_mode = #tpu.pipeline_mode<synchronous>, transform_indices = @transform_6, window_bounds = array<i64: 1, 32>}, {transform_indices = @transform_7, window_bounds = array<i64: 8, 128>}]} {
    %c0 = arith.constant 0 : index
    %c0_0 = arith.constant 0 : index
    %0 = vector.load %arg3[%c0, %c0_0] : memref<128x16xbf16, #tpu.memory_space<vmem>>, vector<128x16xbf16>
    %c0_1 = arith.constant 0 : index
    %c0_2 = arith.constant 0 : index
    %1 = vector.load %arg4[%c0_1, %c0_2] : memref<16x32xbf16, #tpu.memory_space<vmem>>, vector<16x32xbf16>
    %cst = arith.constant dense<0.000000e+00> : vector<128x32xf32>
    %2 = tpu.matmul %0, %1, %cst {dimension_numbers = #tpu.dot_dimension_numbers<[1], [0], [0], [1], [0, 0, 1, 1], [], []>} : vector<128x16xbf16>, vector<16x32xbf16>, vector<128x32xf32> -> vector<128x32xf32>
    %c0_3 = arith.constant 0 : index
    %c0_4 = arith.constant 0 : index
    %3 = vector.load %arg6[%c0_3, %c0_4] : memref<1x32xf32, #tpu.memory_space<vmem>>, vector<1x32xf32>
    %4 = vector.broadcast %3 : vector<1x32xf32> to vector<128x32xf32>
    %5 = arith.addf %2, %4 : vector<128x32xf32>
    %6 = arith.truncf %5 : vector<128x32xf32> to vector<128x32xbf16>
    %c0_5 = arith.constant 0 : index
    %c0_6 = arith.constant 0 : index
    %7 = vector.load %arg5[%c0_5, %c0_6] : memref<16x32xbf16, #tpu.memory_space<vmem>>, vector<16x32xbf16>
    %cst_7 = arith.constant dense<0.000000e+00> : vector<128x32xf32>
    %8 = tpu.matmul %0, %7, %cst_7 {dimension_numbers = #tpu.dot_dimension_numbers<[1], [0], [0], [1], [0, 0, 1, 1], [], []>} : vector<128x16xbf16>, vector<16x32xbf16>, vector<128x32xf32> -> vector<128x32xf32>
    %c0_8 = arith.constant 0 : index
    %c0_9 = arith.constant 0 : index
    %9 = vector.load %arg7[%c0_8, %c0_9] : memref<1x32xf32, #tpu.memory_space<vmem>>, vector<1x32xf32>
    %10 = vector.broadcast %9 : vector<1x32xf32> to vector<128x32xf32>
    %11 = arith.addf %8, %10 : vector<128x32xf32>
    %12 = arith.truncf %11 : vector<128x32xf32> to vector<128x32xbf16>
    %c0_10 = arith.constant 0 : index
    %c0_11 = arith.constant 0 : index
    %13 = vector.load %arg1[%c0_10, %c0_11] : memref<8x32xbf16, #tpu.memory_space<vmem>>, vector<8x32xbf16>
    %cst_12 = arith.constant dense<0.000000e+00> : vector<8x128xf32>
    %14 = tpu.matmul %13, %6, %cst_12 {dimension_numbers = #tpu.dot_dimension_numbers<[1], [1], [0], [0], [0, 0, 1, 0], [], []>} : vector<8x32xbf16>, vector<128x32xbf16>, vector<8x128xf32> -> vector<8x128xf32>
    %c0_13 = arith.constant 0 : index
    %c0_14 = arith.constant 0 : index
    %15 = vector.load %arg2[%c0_13, %c0_14] : memref<8x32xbf16, #tpu.memory_space<vmem>>, vector<8x32xbf16>
    %cst_15 = arith.constant dense<0.000000e+00> : vector<8x128xf32>
    %16 = tpu.matmul %15, %12, %cst_15 {dimension_numbers = #tpu.dot_dimension_numbers<[1], [1], [0], [0], [0, 0, 1, 0], [], []>} : vector<8x32xbf16>, vector<128x32xbf16>, vector<8x128xf32> -> vector<8x128xf32>
    %17 = arith.addf %14, %16 : vector<8x128xf32>
    %c0_16 = arith.constant 0 : index
    %c0_17 = arith.constant 0 : index
    %18 = vector.load %arg8[%c0_16, %c0_17] : memref<8x128xf32, #tpu.memory_space<vmem>>, vector<8x128xf32>
    tpu.vector_store %arg8[%c0_16, %c0_17], %17 {strides = array<i32>} : memref<8x128xf32, #tpu.memory_space<vmem>>, vector<8x128xf32>,
    return
  }
  func.func @transform_0(%arg0: i32) -> (i32, i32) {
    %c0_i32 = arith.constant 0 : i32
    %c0_i32_0 = arith.constant 0 : i32
    %c0_i32_1 = arith.constant 0 : i32
    return %c0_i32, %c0_i32_0 : i32, i32
  }
  func.func @transform_1(%arg0: i32) -> (i32, i32) {
    %c0_i32 = arith.constant 0 : i32
    %c0_i32_0 = arith.constant 0 : i32
    %c0_i32_1 = arith.constant 0 : i32
    return %c0_i32, %c0_i32_0 : i32, i32
  }
  func.func @transform_2(%arg0: i32) -> (i32, i32) {
    %c0_i32 = arith.constant 0 : i32
    %c0_i32_0 = arith.constant 0 : i32
    return %arg0, %c0_i32 : i32, i32
  }
  func.func @transform_3(%arg0: i32) -> (i32, i32) {
    %c0_i32 = arith.constant 0 : i32
    %c0_i32_0 = arith.constant 0 : i32
    %c0_i32_1 = arith.constant 0 : i32
    return %c0_i32, %c0_i32_0 : i32, i32
  }
  func.func @transform_4(%arg0: i32) -> (i32, i32) {
    %c0_i32 = arith.constant 0 : i32
    %c0_i32_0 = arith.constant 0 : i32
    %c0_i32_1 = arith.constant 0 : i32
    return %c0_i32, %c0_i32_0 : i32, i32
  }
  func.func @transform_5(%arg0: i32) -> (i32, i32) {
    %c0_i32 = arith.constant 0 : i32
    %c0_i32_0 = arith.constant 0 : i32
    %c0_i32_1 = arith.constant 0 : i32
    return %c0_i32, %c0_i32_0 : i32, i32
  }
  func.func @transform_6(%arg0: i32) -> (i32, i32) {
    %c0_i32 = arith.constant 0 : i32
    %c0_i32_0 = arith.constant 0 : i32
    %c0_i32_1 = arith.constant 0 : i32
    return %c0_i32, %c0_i32_0 : i32, i32
  }
  func.func @transform_7(%arg0: i32) -> (i32, i32) {
    %c0_i32 = arith.constant 0 : i32
    %c0_i32_0 = arith.constant 0 : i32
    return %c0_i32, %arg0 : i32, i32
  }
}

module attributes {stable_mosaic.version = 11 : i64} {
  func.func @gru_layer_kernel(%arg0: memref<8x8x16xbf16, #tpu.memory_space<vmem>>, %arg1: memref<8x8x1xf32, #tpu.memory_space<vmem>>, %arg2: memref<16x32xbf16, #tpu.memory_space<vmem>>, %arg3: memref<16x32xbf16, #tpu.memory_space<vmem>>, %arg4: memref<16x32xbf16, #tpu.memory_space<vmem>>, %arg5: memref<32x32xbf16, #tpu.memory_space<vmem>>, %arg6: memref<32x32xbf16, #tpu.memory_space<vmem>>, %arg7: memref<32x32xbf16, #tpu.memory_space<vmem>>, %arg8: memref<1x32xf32, #tpu.memory_space<vmem>>, %arg9: memref<1x32xf32, #tpu.memory_space<vmem>>, %arg10: memref<1x32xf32, #tpu.memory_space<vmem>>, %arg11: memref<1x32xf32, #tpu.memory_space<vmem>>, %arg12: memref<1x32xf32, #tpu.memory_space<vmem>>, %arg13: memref<1x32xf32, #tpu.memory_space<vmem>>, %arg14: memref<8x32xf32, #tpu.memory_space<vmem>>, %arg15: memref<8x8x32xbf16, #tpu.memory_space<vmem>>, %arg16: memref<8x32xf32, #tpu.memory_space<vmem>>, %arg17: memref<8x8x32xf32, #tpu.memory_space<vmem>>, %arg18: memref<8x8x32xf32, #tpu.memory_space<vmem>>, %arg19: memref<8x8x32xf32, #tpu.memory_space<vmem>>) attributes {dimension_semantics = [], scalar_prefetch = 0 : i64, scratch_operands = 3 : i64, tpu.core_type = #tpu.core_type<tc>} {
    %c0 = arith.constant 0 : index
    %c0_0 = arith.constant 0 : index
    %c0_1 = arith.constant 0 : index
    %0 = vector.load %arg0[%c0, %c0_0, %c0_1] : memref<8x8x16xbf16, #tpu.memory_space<vmem>>, vector<8x8x16xbf16>
    %1 = vector.shape_cast %0 : vector<8x8x16xbf16> to vector<64x16xbf16>
    %c0_2 = arith.constant 0 : index
    %c0_3 = arith.constant 0 : index
    %2 = vector.load %arg2[%c0_2, %c0_3] : memref<16x32xbf16, #tpu.memory_space<vmem>>, vector<16x32xbf16>
    %cst = arith.constant dense<0.000000e+00> : vector<64x32xf32>
    %3 = tpu.matmul %1, %2, %cst {dimension_numbers = #tpu.dot_dimension_numbers<[1], [0], [0], [1], [0, 0, 1, 1], [], []>} : vector<64x16xbf16>, vector<16x32xbf16>, vector<64x32xf32> -> vector<64x32xf32>
    %c0_4 = arith.constant 0 : index
    %c0_5 = arith.constant 0 : index
    %4 = vector.load %arg8[%c0_4, %c0_5] : memref<1x32xf32, #tpu.memory_space<vmem>>, vector<1x32xf32>
    %5 = vector.broadcast %4 : vector<1x32xf32> to vector<64x32xf32>
    %6 = arith.addf %3, %5 : vector<64x32xf32>
    %7 = vector.shape_cast %6 : vector<64x32xf32> to vector<8x8x32xf32>
    %c0_6 = arith.constant 0 : index
    %c0_7 = arith.constant 0 : index
    %c0_8 = arith.constant 0 : index
    %8 = vector.load %arg17[%c0_6, %c0_7, %c0_8] : memref<8x8x32xf32, #tpu.memory_space<vmem>>, vector<8x8x32xf32>
    tpu.vector_store %arg17[%c0_6, %c0_7, %c0_8], %7 {strides = array<i32>} : memref<8x8x32xf32, #tpu.memory_space<vmem>>, vector<8x8x32xf32>,
    %c0_9 = arith.constant 0 : index
    %c0_10 = arith.constant 0 : index
    %9 = vector.load %arg3[%c0_9, %c0_10] : memref<16x32xbf16, #tpu.memory_space<vmem>>, vector<16x32xbf16>
    %cst_11 = arith.constant dense<0.000000e+00> : vector<64x32xf32>
    %10 = tpu.matmul %1, %9, %cst_11 {dimension_numbers = #tpu.dot_dimension_numbers<[1], [0], [0], [1], [0, 0, 1, 1], [], []>} : vector<64x16xbf16>, vector<16x32xbf16>, vector<64x32xf32> -> vector<64x32xf32>
    %c0_12 = arith.constant 0 : index
    %c0_13 = arith.constant 0 : index
    %11 = vector.load %arg9[%c0_12, %c0_13] : memref<1x32xf32, #tpu.memory_space<vmem>>, vector<1x32xf32>
    %12 = vector.broadcast %11 : vector<1x32xf32> to vector<64x32xf32>
    %13 = arith.addf %10, %12 : vector<64x32xf32>
    %14 = vector.shape_cast %13 : vector<64x32xf32> to vector<8x8x32xf32>
    %c0_14 = arith.constant 0 : index
    %c0_15 = arith.constant 0 : index
    %c0_16 = arith.constant 0 : index
    %15 = vector.load %arg18[%c0_14, %c0_15, %c0_16] : memref<8x8x32xf32, #tpu.memory_space<vmem>>, vector<8x8x32xf32>
    tpu.vector_store %arg18[%c0_14, %c0_15, %c0_16], %14 {strides = array<i32>} : memref<8x8x32xf32, #tpu.memory_space<vmem>>, vector<8x8x32xf32>,
    %c0_17 = arith.constant 0 : index
    %c0_18 = arith.constant 0 : index
    %16 = vector.load %arg4[%c0_17, %c0_18] : memref<16x32xbf16, #tpu.memory_space<vmem>>, vector<16x32xbf16>
    %cst_19 = arith.constant dense<0.000000e+00> : vector<64x32xf32>
    %17 = tpu.matmul %1, %16, %cst_19 {dimension_numbers = #tpu.dot_dimension_numbers<[1], [0], [0], [1], [0, 0, 1, 1], [], []>} : vector<64x16xbf16>, vector<16x32xbf16>, vector<64x32xf32> -> vector<64x32xf32>
    %c0_20 = arith.constant 0 : index
    %c0_21 = arith.constant 0 : index
    %18 = vector.load %arg10[%c0_20, %c0_21] : memref<1x32xf32, #tpu.memory_space<vmem>>, vector<1x32xf32>
    %19 = vector.broadcast %18 : vector<1x32xf32> to vector<64x32xf32>
    %20 = arith.addf %17, %19 : vector<64x32xf32>
    %21 = vector.shape_cast %20 : vector<64x32xf32> to vector<8x8x32xf32>
    %c0_22 = arith.constant 0 : index
    %c0_23 = arith.constant 0 : index
    %c0_24 = arith.constant 0 : index
    %22 = vector.load %arg19[%c0_22, %c0_23, %c0_24] : memref<8x8x32xf32, #tpu.memory_space<vmem>>, vector<8x8x32xf32>
    tpu.vector_store %arg19[%c0_22, %c0_23, %c0_24], %21 {strides = array<i32>} : memref<8x8x32xf32, #tpu.memory_space<vmem>>, vector<8x8x32xf32>,
    %c0_25 = arith.constant 0 : index
    %c0_26 = arith.constant 0 : index
    %23 = vector.load %arg5[%c0_25, %c0_26] : memref<32x32xbf16, #tpu.memory_space<vmem>>, vector<32x32xbf16>
    %c0_27 = arith.constant 0 : index
    %c0_28 = arith.constant 0 : index
    %24 = vector.load %arg6[%c0_27, %c0_28] : memref<32x32xbf16, #tpu.memory_space<vmem>>, vector<32x32xbf16>
    %c0_29 = arith.constant 0 : index
    %c0_30 = arith.constant 0 : index
    %25 = vector.load %arg7[%c0_29, %c0_30] : memref<32x32xbf16, #tpu.memory_space<vmem>>, vector<32x32xbf16>
    %c0_31 = arith.constant 0 : index
    %c0_32 = arith.constant 0 : index
    %26 = vector.load %arg11[%c0_31, %c0_32] : memref<1x32xf32, #tpu.memory_space<vmem>>, vector<1x32xf32>
    %c0_33 = arith.constant 0 : index
    %c0_34 = arith.constant 0 : index
    %27 = vector.load %arg12[%c0_33, %c0_34] : memref<1x32xf32, #tpu.memory_space<vmem>>, vector<1x32xf32>
    %c0_35 = arith.constant 0 : index
    %c0_36 = arith.constant 0 : index
    %28 = vector.load %arg13[%c0_35, %c0_36] : memref<1x32xf32, #tpu.memory_space<vmem>>, vector<1x32xf32>
    %c0_37 = arith.constant 0 : index
    %c0_38 = arith.constant 0 : index
    %29 = vector.load %arg14[%c0_37, %c0_38] : memref<8x32xf32, #tpu.memory_space<vmem>>, vector<8x32xf32>
    %c0_i32 = arith.constant 0 : i32
    %30 = arith.truncf %29 : vector<8x32xf32> to vector<8x32xbf16>
    %cst_39 = arith.constant dense<0.000000e+00> : vector<8x32xf32>
    %31 = tpu.matmul %30, %23, %cst_39 {dimension_numbers = #tpu.dot_dimension_numbers<[1], [0], [0], [1], [0, 0, 1, 1], [], []>} : vector<8x32xbf16>, vector<32x32xbf16>, vector<8x32xf32> -> vector<8x32xf32>
    %32 = vector.broadcast %26 : vector<1x32xf32> to vector<8x32xf32>
    %33 = arith.addf %31, %32 : vector<8x32xf32>
    %cst_40 = arith.constant dense<0.000000e+00> : vector<8x32xf32>
    %34 = tpu.matmul %30, %24, %cst_40 {dimension_numbers = #tpu.dot_dimension_numbers<[1], [0], [0], [1], [0, 0, 1, 1], [], []>} : vector<8x32xbf16>, vector<32x32xbf16>, vector<8x32xf32> -> vector<8x32xf32>
    %35 = vector.broadcast %27 : vector<1x32xf32> to vector<8x32xf32>
    %36 = arith.addf %34, %35 : vector<8x32xf32>
    %cst_41 = arith.constant dense<0.000000e+00> : vector<8x32xf32>
    %37 = tpu.matmul %30, %25, %cst_41 {dimension_numbers = #tpu.dot_dimension_numbers<[1], [0], [0], [1], [0, 0, 1, 1], [], []>} : vector<8x32xbf16>, vector<32x32xbf16>, vector<8x32xf32> -> vector<8x32xf32>
    %38 = vector.broadcast %28 : vector<1x32xf32> to vector<8x32xf32>
    %39 = arith.addf %37, %38 : vector<8x32xf32>
    %40 = arith.index_cast %c0_i32 : i32 to index
    %c0_42 = arith.constant 0 : index
    %c0_43 = arith.constant 0 : index
    %41 = vector.load %arg17[%40, %c0_42, %c0_43] : memref<8x8x32xf32, #tpu.memory_space<vmem>>, vector<1x8x32xf32>
    %42 = vector.shape_cast %41 : vector<1x8x32xf32> to vector<8x32xf32>
    %43 = arith.addf %42, %33 : vector<8x32xf32>
    %44 = arith.negf %43 : vector<8x32xf32>
    %45 = math.exp %44 : vector<8x32xf32>
    %cst_44 = arith.constant 1.000000e+00 : f32
    %46 = vector.broadcast %cst_44 : f32 to vector<8x32xf32>
    %47 = arith.addf %46, %45 : vector<8x32xf32>
    %48 = arith.divf %46, %47 : vector<8x32xf32>
    %49 = arith.index_cast %c0_i32 : i32 to index
    %c0_45 = arith.constant 0 : index
    %c0_46 = arith.constant 0 : index
    %50 = vector.load %arg18[%49, %c0_45, %c0_46] : memref<8x8x32xf32, #tpu.memory_space<vmem>>, vector<1x8x32xf32>
    %51 = vector.shape_cast %50 : vector<1x8x32xf32> to vector<8x32xf32>
    %52 = arith.addf %51, %36 : vector<8x32xf32>
    %53 = arith.negf %52 : vector<8x32xf32>
    %54 = math.exp %53 : vector<8x32xf32>
    %cst_47 = arith.constant 1.000000e+00 : f32
    %55 = vector.broadcast %cst_47 : f32 to vector<8x32xf32>
    %56 = arith.addf %55, %54 : vector<8x32xf32>
    %57 = arith.divf %55, %56 : vector<8x32xf32>
    %58 = arith.index_cast %c0_i32 : i32 to index
    %c0_48 = arith.constant 0 : index
    %c0_49 = arith.constant 0 : index
    %59 = vector.load %arg19[%58, %c0_48, %c0_49] : memref<8x8x32xf32, #tpu.memory_space<vmem>>, vector<1x8x32xf32>
    %60 = vector.shape_cast %59 : vector<1x8x32xf32> to vector<8x32xf32>
    %61 = arith.mulf %48, %39 : vector<8x32xf32>
    %62 = arith.addf %60, %61 : vector<8x32xf32>
    %63 = math.tanh %62 : vector<8x32xf32>
    %cst_50 = arith.constant 1.000000e+00 : f32
    %64 = vector.broadcast %cst_50 : f32 to vector<8x32xf32>
    %65 = arith.subf %64, %57 : vector<8x32xf32>
    %66 = arith.mulf %65, %63 : vector<8x32xf32>
    %67 = arith.mulf %57, %29 : vector<8x32xf32>
    %68 = arith.addf %66, %67 : vector<8x32xf32>
    %69 = arith.index_cast %c0_i32 : i32 to index
    %c0_51 = arith.constant 0 : index
    %c0_52 = arith.constant 0 : index
    %70 = vector.load %arg1[%69, %c0_51, %c0_52] : memref<8x8x1xf32, #tpu.memory_space<vmem>>, vector<1x8x1xf32>
    %71 = vector.shape_cast %70 : vector<1x8x1xf32> to vector<8x1xf32>
    %cst_53 = arith.constant 0.000000e+00 : f32
    %72 = vector.broadcast %cst_53 : f32 to vector<8x1xf32>
    %73 = arith.cmpf ogt, %71, %72 : vector<8x1xf32>
    %cst_54 = arith.constant 0.000000e+00 : f32
    %74 = vector.shape_cast %73 : vector<8x1xi1> to vector<8x1xi1>
    %75 = vector.broadcast %74 : vector<8x1xi1> to vector<8x32xi1>
    %76 = vector.broadcast %cst_54 : f32 to vector<8x32xf32>
    %77 = arith.select %75, %68, %76 : vector<8x32xi1>, vector<8x32xf32>
    %78 = arith.truncf %77 : vector<8x32xf32> to vector<8x32xbf16>
    %79 = arith.index_cast %c0_i32 : i32 to index
    %c0_55 = arith.constant 0 : index
    %c0_56 = arith.constant 0 : index
    %80 = vector.load %arg15[%79, %c0_55, %c0_56] : memref<8x8x32xbf16, #tpu.memory_space<vmem>>, vector<1x8x32xbf16>
    %81 = vector.shape_cast %80 : vector<1x8x32xbf16> to vector<8x32xbf16>
    %82 = vector.shape_cast %78 : vector<8x32xbf16> to vector<1x8x32xbf16>
    tpu.vector_store %arg15[%79, %c0_55, %c0_56], %82 {strides = array<i32>} : memref<8x8x32xbf16, #tpu.memory_space<vmem>>, vector<1x8x32xbf16>,
    %83 = vector.shape_cast %73 : vector<8x1xi1> to vector<8x1xi1>
    %84 = vector.broadcast %83 : vector<8x1xi1> to vector<8x32xi1>
    %85 = arith.select %84, %68, %29 : vector<8x32xi1>, vector<8x32xf32>
    %c1_i32 = arith.constant 1 : i32
    %86 = arith.truncf %85 : vector<8x32xf32> to vector<8x32xbf16>
    %cst_57 = arith.constant dense<0.000000e+00> : vector<8x32xf32>
    %87 = tpu.matmul %86, %23, %cst_57 {dimension_numbers = #tpu.dot_dimension_numbers<[1], [0], [0], [1], [0, 0, 1, 1], [], []>} : vector<8x32xbf16>, vector<32x32xbf16>, vector<8x32xf32> -> vector<8x32xf32>
    %88 = vector.broadcast %26 : vector<1x32xf32> to vector<8x32xf32>
    %89 = arith.addf %87, %88 : vector<8x32xf32>
    %cst_58 = arith.constant dense<0.000000e+00> : vector<8x32xf32>
    %90 = tpu.matmul %86, %24, %cst_58 {dimension_numbers = #tpu.dot_dimension_numbers<[1], [0], [0], [1], [0, 0, 1, 1], [], []>} : vector<8x32xbf16>, vector<32x32xbf16>, vector<8x32xf32> -> vector<8x32xf32>
    %91 = vector.broadcast %27 : vector<1x32xf32> to vector<8x32xf32>
    %92 = arith.addf %90, %91 : vector<8x32xf32>
    %cst_59 = arith.constant dense<0.000000e+00> : vector<8x32xf32>
    %93 = tpu.matmul %86, %25, %cst_59 {dimension_numbers = #tpu.dot_dimension_numbers<[1], [0], [0], [1], [0, 0, 1, 1], [], []>} : vector<8x32xbf16>, vector<32x32xbf16>, vector<8x32xf32> -> vector<8x32xf32>
    %94 = vector.broadcast %28 : vector<1x32xf32> to vector<8x32xf32>
    %95 = arith.addf %93, %94 : vector<8x32xf32>
    %96 = arith.index_cast %c1_i32 : i32 to index
    %c0_60 = arith.constant 0 : index
    %c0_61 = arith.constant 0 : index
    %97 = vector.load %arg17[%96, %c0_60, %c0_61] : memref<8x8x32xf32, #tpu.memory_space<vmem>>, vector<1x8x32xf32>
    %98 = vector.shape_cast %97 : vector<1x8x32xf32> to vector<8x32xf32>
    %99 = arith.addf %98, %89 : vector<8x32xf32>
    %100 = arith.negf %99 : vector<8x32xf32>
    %101 = math.exp %100 : vector<8x32xf32>
    %cst_62 = arith.constant 1.000000e+00 : f32
    %102 = vector.broadcast %cst_62 : f32 to vector<8x32xf32>
    %103 = arith.addf %102, %101 : vector<8x32xf32>
    %104 = arith.divf %102, %103 : vector<8x32xf32>
    %105 = arith.index_cast %c1_i32 : i32 to index
    %c0_63 = arith.constant 0 : index
    %c0_64 = arith.constant 0 : index
    %106 = vector.load %arg18[%105, %c0_63, %c0_64] : memref<8x8x32xf32, #tpu.memory_space<vmem>>, vector<1x8x32xf32>
    %107 = vector.shape_cast %106 : vector<1x8x32xf32> to vector<8x32xf32>
    %108 = arith.addf %107, %92 : vector<8x32xf32>
    %109 = arith.negf %108 : vector<8x32xf32>
    %110 = math.exp %109 : vector<8x32xf32>
    %cst_65 = arith.constant 1.000000e+00 : f32
    %111 = vector.broadcast %cst_65 : f32 to vector<8x32xf32>
    %112 = arith.addf %111, %110 : vector<8x32xf32>
    %113 = arith.divf %111, %112 : vector<8x32xf32>
    %114 = arith.index_cast %c1_i32 : i32 to index
    %c0_66 = arith.constant 0 : index
    %c0_67 = arith.constant 0 : index
    %115 = vector.load %arg19[%114, %c0_66, %c0_67] : memref<8x8x32xf32, #tpu.memory_space<vmem>>, vector<1x8x32xf32>
    %116 = vector.shape_cast %115 : vector<1x8x32xf32> to vector<8x32xf32>
    %117 = arith.mulf %104, %95 : vector<8x32xf32>
    %118 = arith.addf %116, %117 : vector<8x32xf32>
    %119 = math.tanh %118 : vector<8x32xf32>
    %cst_68 = arith.constant 1.000000e+00 : f32
    %120 = vector.broadcast %cst_68 : f32 to vector<8x32xf32>
    %121 = arith.subf %120, %113 : vector<8x32xf32>
    %122 = arith.mulf %121, %119 : vector<8x32xf32>
    %123 = arith.mulf %113, %85 : vector<8x32xf32>
    %124 = arith.addf %122, %123 : vector<8x32xf32>
    %125 = arith.index_cast %c1_i32 : i32 to index
    %c0_69 = arith.constant 0 : index
    %c0_70 = arith.constant 0 : index
    %126 = vector.load %arg1[%125, %c0_69, %c0_70] : memref<8x8x1xf32, #tpu.memory_space<vmem>>, vector<1x8x1xf32>
    %127 = vector.shape_cast %126 : vector<1x8x1xf32> to vector<8x1xf32>
    %cst_71 = arith.constant 0.000000e+00 : f32
    %128 = vector.broadcast %cst_71 : f32 to vector<8x1xf32>
    %129 = arith.cmpf ogt, %127, %128 : vector<8x1xf32>
    %cst_72 = arith.constant 0.000000e+00 : f32
    %130 = vector.shape_cast %129 : vector<8x1xi1> to vector<8x1xi1>
    %131 = vector.broadcast %130 : vector<8x1xi1> to vector<8x32xi1>
    %132 = vector.broadcast %cst_72 : f32 to vector<8x32xf32>
    %133 = arith.select %131, %124, %132 : vector<8x32xi1>, vector<8x32xf32>
    %134 = arith.truncf %133 : vector<8x32xf32> to vector<8x32xbf16>
    %135 = arith.index_cast %c1_i32 : i32 to index
    %c0_73 = arith.constant 0 : index
    %c0_74 = arith.constant 0 : index
    %136 = vector.load %arg15[%135, %c0_73, %c0_74] : memref<8x8x32xbf16, #tpu.memory_space<vmem>>, vector<1x8x32xbf16>
    %137 = vector.shape_cast %136 : vector<1x8x32xbf16> to vector<8x32xbf16>
    %138 = vector.shape_cast %134 : vector<8x32xbf16> to vector<1x8x32xbf16>
    tpu.vector_store %arg15[%135, %c0_73, %c0_74], %138 {strides = array<i32>} : memref<8x8x32xbf16, #tpu.memory_space<vmem>>, vector<1x8x32xbf16>,
    %139 = vector.shape_cast %129 : vector<8x1xi1> to vector<8x1xi1>
    %140 = vector.broadcast %139 : vector<8x1xi1> to vector<8x32xi1>
    %141 = arith.select %140, %124, %85 : vector<8x32xi1>, vector<8x32xf32>
    %c2_i32 = arith.constant 2 : i32
    %142 = arith.truncf %141 : vector<8x32xf32> to vector<8x32xbf16>
    %cst_75 = arith.constant dense<0.000000e+00> : vector<8x32xf32>
    %143 = tpu.matmul %142, %23, %cst_75 {dimension_numbers = #tpu.dot_dimension_numbers<[1], [0], [0], [1], [0, 0, 1, 1], [], []>} : vector<8x32xbf16>, vector<32x32xbf16>, vector<8x32xf32> -> vector<8x32xf32>
    %144 = vector.broadcast %26 : vector<1x32xf32> to vector<8x32xf32>
    %145 = arith.addf %143, %144 : vector<8x32xf32>
    %cst_76 = arith.constant dense<0.000000e+00> : vector<8x32xf32>
    %146 = tpu.matmul %142, %24, %cst_76 {dimension_numbers = #tpu.dot_dimension_numbers<[1], [0], [0], [1], [0, 0, 1, 1], [], []>} : vector<8x32xbf16>, vector<32x32xbf16>, vector<8x32xf32> -> vector<8x32xf32>
    %147 = vector.broadcast %27 : vector<1x32xf32> to vector<8x32xf32>
    %148 = arith.addf %146, %147 : vector<8x32xf32>
    %cst_77 = arith.constant dense<0.000000e+00> : vector<8x32xf32>
    %149 = tpu.matmul %142, %25, %cst_77 {dimension_numbers = #tpu.dot_dimension_numbers<[1], [0], [0], [1], [0, 0, 1, 1], [], []>} : vector<8x32xbf16>, vector<32x32xbf16>, vector<8x32xf32> -> vector<8x32xf32>
    %150 = vector.broadcast %28 : vector<1x32xf32> to vector<8x32xf32>
    %151 = arith.addf %149, %150 : vector<8x32xf32>
    %152 = arith.index_cast %c2_i32 : i32 to index
    %c0_78 = arith.constant 0 : index
    %c0_79 = arith.constant 0 : index
    %153 = vector.load %arg17[%152, %c0_78, %c0_79] : memref<8x8x32xf32, #tpu.memory_space<vmem>>, vector<1x8x32xf32>
    %154 = vector.shape_cast %153 : vector<1x8x32xf32> to vector<8x32xf32>
    %155 = arith.addf %154, %145 : vector<8x32xf32>
    %156 = arith.negf %155 : vector<8x32xf32>
    %157 = math.exp %156 : vector<8x32xf32>
    %cst_80 = arith.constant 1.000000e+00 : f32
    %158 = vector.broadcast %cst_80 : f32 to vector<8x32xf32>
    %159 = arith.addf %158, %157 : vector<8x32xf32>
    %160 = arith.divf %158, %159 : vector<8x32xf32>
    %161 = arith.index_cast %c2_i32 : i32 to index
    %c0_81 = arith.constant 0 : index
    %c0_82 = arith.constant 0 : index
    %162 = vector.load %arg18[%161, %c0_81, %c0_82] : memref<8x8x32xf32, #tpu.memory_space<vmem>>, vector<1x8x32xf32>
    %163 = vector.shape_cast %162 : vector<1x8x32xf32> to vector<8x32xf32>
    %164 = arith.addf %163, %148 : vector<8x32xf32>
    %165 = arith.negf %164 : vector<8x32xf32>
    %166 = math.exp %165 : vector<8x32xf32>
    %cst_83 = arith.constant 1.000000e+00 : f32
    %167 = vector.broadcast %cst_83 : f32 to vector<8x32xf32>
    %168 = arith.addf %167, %166 : vector<8x32xf32>
    %169 = arith.divf %167, %168 : vector<8x32xf32>
    %170 = arith.index_cast %c2_i32 : i32 to index
    %c0_84 = arith.constant 0 : index
    %c0_85 = arith.constant 0 : index
    %171 = vector.load %arg19[%170, %c0_84, %c0_85] : memref<8x8x32xf32, #tpu.memory_space<vmem>>, vector<1x8x32xf32>
    %172 = vector.shape_cast %171 : vector<1x8x32xf32> to vector<8x32xf32>
    %173 = arith.mulf %160, %151 : vector<8x32xf32>
    %174 = arith.addf %172, %173 : vector<8x32xf32>
    %175 = math.tanh %174 : vector<8x32xf32>
    %cst_86 = arith.constant 1.000000e+00 : f32
    %176 = vector.broadcast %cst_86 : f32 to vector<8x32xf32>
    %177 = arith.subf %176, %169 : vector<8x32xf32>
    %178 = arith.mulf %177, %175 : vector<8x32xf32>
    %179 = arith.mulf %169, %141 : vector<8x32xf32>
    %180 = arith.addf %178, %179 : vector<8x32xf32>
    %181 = arith.index_cast %c2_i32 : i32 to index
    %c0_87 = arith.constant 0 : index
    %c0_88 = arith.constant 0 : index
    %182 = vector.load %arg1[%181, %c0_87, %c0_88] : memref<8x8x1xf32, #tpu.memory_space<vmem>>, vector<1x8x1xf32>
    %183 = vector.shape_cast %182 : vector<1x8x1xf32> to vector<8x1xf32>
    %cst_89 = arith.constant 0.000000e+00 : f32
    %184 = vector.broadcast %cst_89 : f32 to vector<8x1xf32>
    %185 = arith.cmpf ogt, %183, %184 : vector<8x1xf32>
    %cst_90 = arith.constant 0.000000e+00 : f32
    %186 = vector.shape_cast %185 : vector<8x1xi1> to vector<8x1xi1>
    %187 = vector.broadcast %186 : vector<8x1xi1> to vector<8x32xi1>
    %188 = vector.broadcast %cst_90 : f32 to vector<8x32xf32>
    %189 = arith.select %187, %180, %188 : vector<8x32xi1>, vector<8x32xf32>
    %190 = arith.truncf %189 : vector<8x32xf32> to vector<8x32xbf16>
    %191 = arith.index_cast %c2_i32 : i32 to index
    %c0_91 = arith.constant 0 : index
    %c0_92 = arith.constant 0 : index
    %192 = vector.load %arg15[%191, %c0_91, %c0_92] : memref<8x8x32xbf16, #tpu.memory_space<vmem>>, vector<1x8x32xbf16>
    %193 = vector.shape_cast %192 : vector<1x8x32xbf16> to vector<8x32xbf16>
    %194 = vector.shape_cast %190 : vector<8x32xbf16> to vector<1x8x32xbf16>
    tpu.vector_store %arg15[%191, %c0_91, %c0_92], %194 {strides = array<i32>} : memref<8x8x32xbf16, #tpu.memory_space<vmem>>, vector<1x8x32xbf16>,
    %195 = vector.shape_cast %185 : vector<8x1xi1> to vector<8x1xi1>
    %196 = vector.broadcast %195 : vector<8x1xi1> to vector<8x32xi1>
    %197 = arith.select %196, %180, %141 : vector<8x32xi1>, vector<8x32xf32>
    %c3_i32 = arith.constant 3 : i32
    %198 = arith.truncf %197 : vector<8x32xf32> to vector<8x32xbf16>
    %cst_93 = arith.constant dense<0.000000e+00> : vector<8x32xf32>
    %199 = tpu.matmul %198, %23, %cst_93 {dimension_numbers = #tpu.dot_dimension_numbers<[1], [0], [0], [1], [0, 0, 1, 1], [], []>} : vector<8x32xbf16>, vector<32x32xbf16>, vector<8x32xf32> -> vector<8x32xf32>
    %200 = vector.broadcast %26 : vector<1x32xf32> to vector<8x32xf32>
    %201 = arith.addf %199, %200 : vector<8x32xf32>
    %cst_94 = arith.constant dense<0.000000e+00> : vector<8x32xf32>
    %202 = tpu.matmul %198, %24, %cst_94 {dimension_numbers = #tpu.dot_dimension_numbers<[1], [0], [0], [1], [0, 0, 1, 1], [], []>} : vector<8x32xbf16>, vector<32x32xbf16>, vector<8x32xf32> -> vector<8x32xf32>
    %203 = vector.broadcast %27 : vector<1x32xf32> to vector<8x32xf32>
    %204 = arith.addf %202, %203 : vector<8x32xf32>
    %cst_95 = arith.constant dense<0.000000e+00> : vector<8x32xf32>
    %205 = tpu.matmul %198, %25, %cst_95 {dimension_numbers = #tpu.dot_dimension_numbers<[1], [0], [0], [1], [0, 0, 1, 1], [], []>} : vector<8x32xbf16>, vector<32x32xbf16>, vector<8x32xf32> -> vector<8x32xf32>
    %206 = vector.broadcast %28 : vector<1x32xf32> to vector<8x32xf32>
    %207 = arith.addf %205, %206 : vector<8x32xf32>
    %208 = arith.index_cast %c3_i32 : i32 to index
    %c0_96 = arith.constant 0 : index
    %c0_97 = arith.constant 0 : index
    %209 = vector.load %arg17[%208, %c0_96, %c0_97] : memref<8x8x32xf32, #tpu.memory_space<vmem>>, vector<1x8x32xf32>
    %210 = vector.shape_cast %209 : vector<1x8x32xf32> to vector<8x32xf32>
    %211 = arith.addf %210, %201 : vector<8x32xf32>
    %212 = arith.negf %211 : vector<8x32xf32>
    %213 = math.exp %212 : vector<8x32xf32>
    %cst_98 = arith.constant 1.000000e+00 : f32
    %214 = vector.broadcast %cst_98 : f32 to vector<8x32xf32>
    %215 = arith.addf %214, %213 : vector<8x32xf32>
    %216 = arith.divf %214, %215 : vector<8x32xf32>
    %217 = arith.index_cast %c3_i32 : i32 to index
    %c0_99 = arith.constant 0 : index
    %c0_100 = arith.constant 0 : index
    %218 = vector.load %arg18[%217, %c0_99, %c0_100] : memref<8x8x32xf32, #tpu.memory_space<vmem>>, vector<1x8x32xf32>
    %219 = vector.shape_cast %218 : vector<1x8x32xf32> to vector<8x32xf32>
    %220 = arith.addf %219, %204 : vector<8x32xf32>
    %221 = arith.negf %220 : vector<8x32xf32>
    %222 = math.exp %221 : vector<8x32xf32>
    %cst_101 = arith.constant 1.000000e+00 : f32
    %223 = vector.broadcast %cst_101 : f32 to vector<8x32xf32>
    %224 = arith.addf %223, %222 : vector<8x32xf32>
    %225 = arith.divf %223, %224 : vector<8x32xf32>
    %226 = arith.index_cast %c3_i32 : i32 to index
    %c0_102 = arith.constant 0 : index
    %c0_103 = arith.constant 0 : index
    %227 = vector.load %arg19[%226, %c0_102, %c0_103] : memref<8x8x32xf32, #tpu.memory_space<vmem>>, vector<1x8x32xf32>
    %228 = vector.shape_cast %227 : vector<1x8x32xf32> to vector<8x32xf32>
    %229 = arith.mulf %216, %207 : vector<8x32xf32>
    %230 = arith.addf %228, %229 : vector<8x32xf32>
    %231 = math.tanh %230 : vector<8x32xf32>
    %cst_104 = arith.constant 1.000000e+00 : f32
    %232 = vector.broadcast %cst_104 : f32 to vector<8x32xf32>
    %233 = arith.subf %232, %225 : vector<8x32xf32>
    %234 = arith.mulf %233, %231 : vector<8x32xf32>
    %235 = arith.mulf %225, %197 : vector<8x32xf32>
    %236 = arith.addf %234, %235 : vector<8x32xf32>
    %237 = arith.index_cast %c3_i32 : i32 to index
    %c0_105 = arith.constant 0 : index
    %c0_106 = arith.constant 0 : index
    %238 = vector.load %arg1[%237, %c0_105, %c0_106] : memref<8x8x1xf32, #tpu.memory_space<vmem>>, vector<1x8x1xf32>
    %239 = vector.shape_cast %238 : vector<1x8x1xf32> to vector<8x1xf32>
    %cst_107 = arith.constant 0.000000e+00 : f32
    %240 = vector.broadcast %cst_107 : f32 to vector<8x1xf32>
    %241 = arith.cmpf ogt, %239, %240 : vector<8x1xf32>
    %cst_108 = arith.constant 0.000000e+00 : f32
    %242 = vector.shape_cast %241 : vector<8x1xi1> to vector<8x1xi1>
    %243 = vector.broadcast %242 : vector<8x1xi1> to vector<8x32xi1>
    %244 = vector.broadcast %cst_108 : f32 to vector<8x32xf32>
    %245 = arith.select %243, %236, %244 : vector<8x32xi1>, vector<8x32xf32>
    %246 = arith.truncf %245 : vector<8x32xf32> to vector<8x32xbf16>
    %247 = arith.index_cast %c3_i32 : i32 to index
    %c0_109 = arith.constant 0 : index
    %c0_110 = arith.constant 0 : index
    %248 = vector.load %arg15[%247, %c0_109, %c0_110] : memref<8x8x32xbf16, #tpu.memory_space<vmem>>, vector<1x8x32xbf16>
    %249 = vector.shape_cast %248 : vector<1x8x32xbf16> to vector<8x32xbf16>
    %250 = vector.shape_cast %246 : vector<8x32xbf16> to vector<1x8x32xbf16>
    tpu.vector_store %arg15[%247, %c0_109, %c0_110], %250 {strides = array<i32>} : memref<8x8x32xbf16, #tpu.memory_space<vmem>>, vector<1x8x32xbf16>,
    %251 = vector.shape_cast %241 : vector<8x1xi1> to vector<8x1xi1>
    %252 = vector.broadcast %251 : vector<8x1xi1> to vector<8x32xi1>
    %253 = arith.select %252, %236, %197 : vector<8x32xi1>, vector<8x32xf32>
    %c4_i32 = arith.constant 4 : i32
    %254 = arith.truncf %253 : vector<8x32xf32> to vector<8x32xbf16>
    %cst_111 = arith.constant dense<0.000000e+00> : vector<8x32xf32>
    %255 = tpu.matmul %254, %23, %cst_111 {dimension_numbers = #tpu.dot_dimension_numbers<[1], [0], [0], [1], [0, 0, 1, 1], [], []>} : vector<8x32xbf16>, vector<32x32xbf16>, vector<8x32xf32> -> vector<8x32xf32>
    %256 = vector.broadcast %26 : vector<1x32xf32> to vector<8x32xf32>
    %257 = arith.addf %255, %256 : vector<8x32xf32>
    %cst_112 = arith.constant dense<0.000000e+00> : vector<8x32xf32>
    %258 = tpu.matmul %254, %24, %cst_112 {dimension_numbers = #tpu.dot_dimension_numbers<[1], [0], [0], [1], [0, 0, 1, 1], [], []>} : vector<8x32xbf16>, vector<32x32xbf16>, vector<8x32xf32> -> vector<8x32xf32>
    %259 = vector.broadcast %27 : vector<1x32xf32> to vector<8x32xf32>
    %260 = arith.addf %258, %259 : vector<8x32xf32>
    %cst_113 = arith.constant dense<0.000000e+00> : vector<8x32xf32>
    %261 = tpu.matmul %254, %25, %cst_113 {dimension_numbers = #tpu.dot_dimension_numbers<[1], [0], [0], [1], [0, 0, 1, 1], [], []>} : vector<8x32xbf16>, vector<32x32xbf16>, vector<8x32xf32> -> vector<8x32xf32>
    %262 = vector.broadcast %28 : vector<1x32xf32> to vector<8x32xf32>
    %263 = arith.addf %261, %262 : vector<8x32xf32>
    %264 = arith.index_cast %c4_i32 : i32 to index
    %c0_114 = arith.constant 0 : index
    %c0_115 = arith.constant 0 : index
    %265 = vector.load %arg17[%264, %c0_114, %c0_115] : memref<8x8x32xf32, #tpu.memory_space<vmem>>, vector<1x8x32xf32>
    %266 = vector.shape_cast %265 : vector<1x8x32xf32> to vector<8x32xf32>
    %267 = arith.addf %266, %257 : vector<8x32xf32>
    %268 = arith.negf %267 : vector<8x32xf32>
    %269 = math.exp %268 : vector<8x32xf32>
    %cst_116 = arith.constant 1.000000e+00 : f32
    %270 = vector.broadcast %cst_116 : f32 to vector<8x32xf32>
    %271 = arith.addf %270, %269 : vector<8x32xf32>
    %272 = arith.divf %270, %271 : vector<8x32xf32>
    %273 = arith.index_cast %c4_i32 : i32 to index
    %c0_117 = arith.constant 0 : index
    %c0_118 = arith.constant 0 : index
    %274 = vector.load %arg18[%273, %c0_117, %c0_118] : memref<8x8x32xf32, #tpu.memory_space<vmem>>, vector<1x8x32xf32>
    %275 = vector.shape_cast %274 : vector<1x8x32xf32> to vector<8x32xf32>
    %276 = arith.addf %275, %260 : vector<8x32xf32>
    %277 = arith.negf %276 : vector<8x32xf32>
    %278 = math.exp %277 : vector<8x32xf32>
    %cst_119 = arith.constant 1.000000e+00 : f32
    %279 = vector.broadcast %cst_119 : f32 to vector<8x32xf32>
    %280 = arith.addf %279, %278 : vector<8x32xf32>
    %281 = arith.divf %279, %280 : vector<8x32xf32>
    %282 = arith.index_cast %c4_i32 : i32 to index
    %c0_120 = arith.constant 0 : index
    %c0_121 = arith.constant 0 : index
    %283 = vector.load %arg19[%282, %c0_120, %c0_121] : memref<8x8x32xf32, #tpu.memory_space<vmem>>, vector<1x8x32xf32>
    %284 = vector.shape_cast %283 : vector<1x8x32xf32> to vector<8x32xf32>
    %285 = arith.mulf %272, %263 : vector<8x32xf32>
    %286 = arith.addf %284, %285 : vector<8x32xf32>
    %287 = math.tanh %286 : vector<8x32xf32>
    %cst_122 = arith.constant 1.000000e+00 : f32
    %288 = vector.broadcast %cst_122 : f32 to vector<8x32xf32>
    %289 = arith.subf %288, %281 : vector<8x32xf32>
    %290 = arith.mulf %289, %287 : vector<8x32xf32>
    %291 = arith.mulf %281, %253 : vector<8x32xf32>
    %292 = arith.addf %290, %291 : vector<8x32xf32>
    %293 = arith.index_cast %c4_i32 : i32 to index
    %c0_123 = arith.constant 0 : index
    %c0_124 = arith.constant 0 : index
    %294 = vector.load %arg1[%293, %c0_123, %c0_124] : memref<8x8x1xf32, #tpu.memory_space<vmem>>, vector<1x8x1xf32>
    %295 = vector.shape_cast %294 : vector<1x8x1xf32> to vector<8x1xf32>
    %cst_125 = arith.constant 0.000000e+00 : f32
    %296 = vector.broadcast %cst_125 : f32 to vector<8x1xf32>
    %297 = arith.cmpf ogt, %295, %296 : vector<8x1xf32>
    %cst_126 = arith.constant 0.000000e+00 : f32
    %298 = vector.shape_cast %297 : vector<8x1xi1> to vector<8x1xi1>
    %299 = vector.broadcast %298 : vector<8x1xi1> to vector<8x32xi1>
    %300 = vector.broadcast %cst_126 : f32 to vector<8x32xf32>
    %301 = arith.select %299, %292, %300 : vector<8x32xi1>, vector<8x32xf32>
    %302 = arith.truncf %301 : vector<8x32xf32> to vector<8x32xbf16>
    %303 = arith.index_cast %c4_i32 : i32 to index
    %c0_127 = arith.constant 0 : index
    %c0_128 = arith.constant 0 : index
    %304 = vector.load %arg15[%303, %c0_127, %c0_128] : memref<8x8x32xbf16, #tpu.memory_space<vmem>>, vector<1x8x32xbf16>
    %305 = vector.shape_cast %304 : vector<1x8x32xbf16> to vector<8x32xbf16>
    %306 = vector.shape_cast %302 : vector<8x32xbf16> to vector<1x8x32xbf16>
    tpu.vector_store %arg15[%303, %c0_127, %c0_128], %306 {strides = array<i32>} : memref<8x8x32xbf16, #tpu.memory_space<vmem>>, vector<1x8x32xbf16>,
    %307 = vector.shape_cast %297 : vector<8x1xi1> to vector<8x1xi1>
    %308 = vector.broadcast %307 : vector<8x1xi1> to vector<8x32xi1>
    %309 = arith.select %308, %292, %253 : vector<8x32xi1>, vector<8x32xf32>
    %c5_i32 = arith.constant 5 : i32
    %310 = arith.truncf %309 : vector<8x32xf32> to vector<8x32xbf16>
    %cst_129 = arith.constant dense<0.000000e+00> : vector<8x32xf32>
    %311 = tpu.matmul %310, %23, %cst_129 {dimension_numbers = #tpu.dot_dimension_numbers<[1], [0], [0], [1], [0, 0, 1, 1], [], []>} : vector<8x32xbf16>, vector<32x32xbf16>, vector<8x32xf32> -> vector<8x32xf32>
    %312 = vector.broadcast %26 : vector<1x32xf32> to vector<8x32xf32>
    %313 = arith.addf %311, %312 : vector<8x32xf32>
    %cst_130 = arith.constant dense<0.000000e+00> : vector<8x32xf32>
    %314 = tpu.matmul %310, %24, %cst_130 {dimension_numbers = #tpu.dot_dimension_numbers<[1], [0], [0], [1], [0, 0, 1, 1], [], []>} : vector<8x32xbf16>, vector<32x32xbf16>, vector<8x32xf32> -> vector<8x32xf32>
    %315 = vector.broadcast %27 : vector<1x32xf32> to vector<8x32xf32>
    %316 = arith.addf %314, %315 : vector<8x32xf32>
    %cst_131 = arith.constant dense<0.000000e+00> : vector<8x32xf32>
    %317 = tpu.matmul %310, %25, %cst_131 {dimension_numbers = #tpu.dot_dimension_numbers<[1], [0], [0], [1], [0, 0, 1, 1], [], []>} : vector<8x32xbf16>, vector<32x32xbf16>, vector<8x32xf32> -> vector<8x32xf32>
    %318 = vector.broadcast %28 : vector<1x32xf32> to vector<8x32xf32>
    %319 = arith.addf %317, %318 : vector<8x32xf32>
    %320 = arith.index_cast %c5_i32 : i32 to index
    %c0_132 = arith.constant 0 : index
    %c0_133 = arith.constant 0 : index
    %321 = vector.load %arg17[%320, %c0_132, %c0_133] : memref<8x8x32xf32, #tpu.memory_space<vmem>>, vector<1x8x32xf32>
    %322 = vector.shape_cast %321 : vector<1x8x32xf32> to vector<8x32xf32>
    %323 = arith.addf %322, %313 : vector<8x32xf32>
    %324 = arith.negf %323 : vector<8x32xf32>
    %325 = math.exp %324 : vector<8x32xf32>
    %cst_134 = arith.constant 1.000000e+00 : f32
    %326 = vector.broadcast %cst_134 : f32 to vector<8x32xf32>
    %327 = arith.addf %326, %325 : vector<8x32xf32>
    %328 = arith.divf %326, %327 : vector<8x32xf32>
    %329 = arith.index_cast %c5_i32 : i32 to index
    %c0_135 = arith.constant 0 : index
    %c0_136 = arith.constant 0 : index
    %330 = vector.load %arg18[%329, %c0_135, %c0_136] : memref<8x8x32xf32, #tpu.memory_space<vmem>>, vector<1x8x32xf32>
    %331 = vector.shape_cast %330 : vector<1x8x32xf32> to vector<8x32xf32>
    %332 = arith.addf %331, %316 : vector<8x32xf32>
    %333 = arith.negf %332 : vector<8x32xf32>
    %334 = math.exp %333 : vector<8x32xf32>
    %cst_137 = arith.constant 1.000000e+00 : f32
    %335 = vector.broadcast %cst_137 : f32 to vector<8x32xf32>
    %336 = arith.addf %335, %334 : vector<8x32xf32>
    %337 = arith.divf %335, %336 : vector<8x32xf32>
    %338 = arith.index_cast %c5_i32 : i32 to index
    %c0_138 = arith.constant 0 : index
    %c0_139 = arith.constant 0 : index
    %339 = vector.load %arg19[%338, %c0_138, %c0_139] : memref<8x8x32xf32, #tpu.memory_space<vmem>>, vector<1x8x32xf32>
    %340 = vector.shape_cast %339 : vector<1x8x32xf32> to vector<8x32xf32>
    %341 = arith.mulf %328, %319 : vector<8x32xf32>
    %342 = arith.addf %340, %341 : vector<8x32xf32>
    %343 = math.tanh %342 : vector<8x32xf32>
    %cst_140 = arith.constant 1.000000e+00 : f32
    %344 = vector.broadcast %cst_140 : f32 to vector<8x32xf32>
    %345 = arith.subf %344, %337 : vector<8x32xf32>
    %346 = arith.mulf %345, %343 : vector<8x32xf32>
    %347 = arith.mulf %337, %309 : vector<8x32xf32>
    %348 = arith.addf %346, %347 : vector<8x32xf32>
    %349 = arith.index_cast %c5_i32 : i32 to index
    %c0_141 = arith.constant 0 : index
    %c0_142 = arith.constant 0 : index
    %350 = vector.load %arg1[%349, %c0_141, %c0_142] : memref<8x8x1xf32, #tpu.memory_space<vmem>>, vector<1x8x1xf32>
    %351 = vector.shape_cast %350 : vector<1x8x1xf32> to vector<8x1xf32>
    %cst_143 = arith.constant 0.000000e+00 : f32
    %352 = vector.broadcast %cst_143 : f32 to vector<8x1xf32>
    %353 = arith.cmpf ogt, %351, %352 : vector<8x1xf32>
    %cst_144 = arith.constant 0.000000e+00 : f32
    %354 = vector.shape_cast %353 : vector<8x1xi1> to vector<8x1xi1>
    %355 = vector.broadcast %354 : vector<8x1xi1> to vector<8x32xi1>
    %356 = vector.broadcast %cst_144 : f32 to vector<8x32xf32>
    %357 = arith.select %355, %348, %356 : vector<8x32xi1>, vector<8x32xf32>
    %358 = arith.truncf %357 : vector<8x32xf32> to vector<8x32xbf16>
    %359 = arith.index_cast %c5_i32 : i32 to index
    %c0_145 = arith.constant 0 : index
    %c0_146 = arith.constant 0 : index
    %360 = vector.load %arg15[%359, %c0_145, %c0_146] : memref<8x8x32xbf16, #tpu.memory_space<vmem>>, vector<1x8x32xbf16>
    %361 = vector.shape_cast %360 : vector<1x8x32xbf16> to vector<8x32xbf16>
    %362 = vector.shape_cast %358 : vector<8x32xbf16> to vector<1x8x32xbf16>
    tpu.vector_store %arg15[%359, %c0_145, %c0_146], %362 {strides = array<i32>} : memref<8x8x32xbf16, #tpu.memory_space<vmem>>, vector<1x8x32xbf16>,
    %363 = vector.shape_cast %353 : vector<8x1xi1> to vector<8x1xi1>
    %364 = vector.broadcast %363 : vector<8x1xi1> to vector<8x32xi1>
    %365 = arith.select %364, %348, %309 : vector<8x32xi1>, vector<8x32xf32>
    %c6_i32 = arith.constant 6 : i32
    %366 = arith.truncf %365 : vector<8x32xf32> to vector<8x32xbf16>
    %cst_147 = arith.constant dense<0.000000e+00> : vector<8x32xf32>
    %367 = tpu.matmul %366, %23, %cst_147 {dimension_numbers = #tpu.dot_dimension_numbers<[1], [0], [0], [1], [0, 0, 1, 1], [], []>} : vector<8x32xbf16>, vector<32x32xbf16>, vector<8x32xf32> -> vector<8x32xf32>
    %368 = vector.broadcast %26 : vector<1x32xf32> to vector<8x32xf32>
    %369 = arith.addf %367, %368 : vector<8x32xf32>
    %cst_148 = arith.constant dense<0.000000e+00> : vector<8x32xf32>
    %370 = tpu.matmul %366, %24, %cst_148 {dimension_numbers = #tpu.dot_dimension_numbers<[1], [0], [0], [1], [0, 0, 1, 1], [], []>} : vector<8x32xbf16>, vector<32x32xbf16>, vector<8x32xf32> -> vector<8x32xf32>
    %371 = vector.broadcast %27 : vector<1x32xf32> to vector<8x32xf32>
    %372 = arith.addf %370, %371 : vector<8x32xf32>
    %cst_149 = arith.constant dense<0.000000e+00> : vector<8x32xf32>
    %373 = tpu.matmul %366, %25, %cst_149 {dimension_numbers = #tpu.dot_dimension_numbers<[1], [0], [0], [1], [0, 0, 1, 1], [], []>} : vector<8x32xbf16>, vector<32x32xbf16>, vector<8x32xf32> -> vector<8x32xf32>
    %374 = vector.broadcast %28 : vector<1x32xf32> to vector<8x32xf32>
    %375 = arith.addf %373, %374 : vector<8x32xf32>
    %376 = arith.index_cast %c6_i32 : i32 to index
    %c0_150 = arith.constant 0 : index
    %c0_151 = arith.constant 0 : index
    %377 = vector.load %arg17[%376, %c0_150, %c0_151] : memref<8x8x32xf32, #tpu.memory_space<vmem>>, vector<1x8x32xf32>
    %378 = vector.shape_cast %377 : vector<1x8x32xf32> to vector<8x32xf32>
    %379 = arith.addf %378, %369 : vector<8x32xf32>
    %380 = arith.negf %379 : vector<8x32xf32>
    %381 = math.exp %380 : vector<8x32xf32>
    %cst_152 = arith.constant 1.000000e+00 : f32
    %382 = vector.broadcast %cst_152 : f32 to vector<8x32xf32>
    %383 = arith.addf %382, %381 : vector<8x32xf32>
    %384 = arith.divf %382, %383 : vector<8x32xf32>
    %385 = arith.index_cast %c6_i32 : i32 to index
    %c0_153 = arith.constant 0 : index
    %c0_154 = arith.constant 0 : index
    %386 = vector.load %arg18[%385, %c0_153, %c0_154] : memref<8x8x32xf32, #tpu.memory_space<vmem>>, vector<1x8x32xf32>
    %387 = vector.shape_cast %386 : vector<1x8x32xf32> to vector<8x32xf32>
    %388 = arith.addf %387, %372 : vector<8x32xf32>
    %389 = arith.negf %388 : vector<8x32xf32>
    %390 = math.exp %389 : vector<8x32xf32>
    %cst_155 = arith.constant 1.000000e+00 : f32
    %391 = vector.broadcast %cst_155 : f32 to vector<8x32xf32>
    %392 = arith.addf %391, %390 : vector<8x32xf32>
    %393 = arith.divf %391, %392 : vector<8x32xf32>
    %394 = arith.index_cast %c6_i32 : i32 to index
    %c0_156 = arith.constant 0 : index
    %c0_157 = arith.constant 0 : index
    %395 = vector.load %arg19[%394, %c0_156, %c0_157] : memref<8x8x32xf32, #tpu.memory_space<vmem>>, vector<1x8x32xf32>
    %396 = vector.shape_cast %395 : vector<1x8x32xf32> to vector<8x32xf32>
    %397 = arith.mulf %384, %375 : vector<8x32xf32>
    %398 = arith.addf %396, %397 : vector<8x32xf32>
    %399 = math.tanh %398 : vector<8x32xf32>
    %cst_158 = arith.constant 1.000000e+00 : f32
    %400 = vector.broadcast %cst_158 : f32 to vector<8x32xf32>
    %401 = arith.subf %400, %393 : vector<8x32xf32>
    %402 = arith.mulf %401, %399 : vector<8x32xf32>
    %403 = arith.mulf %393, %365 : vector<8x32xf32>
    %404 = arith.addf %402, %403 : vector<8x32xf32>
    %405 = arith.index_cast %c6_i32 : i32 to index
    %c0_159 = arith.constant 0 : index
    %c0_160 = arith.constant 0 : index
    %406 = vector.load %arg1[%405, %c0_159, %c0_160] : memref<8x8x1xf32, #tpu.memory_space<vmem>>, vector<1x8x1xf32>
    %407 = vector.shape_cast %406 : vector<1x8x1xf32> to vector<8x1xf32>
    %cst_161 = arith.constant 0.000000e+00 : f32
    %408 = vector.broadcast %cst_161 : f32 to vector<8x1xf32>
    %409 = arith.cmpf ogt, %407, %408 : vector<8x1xf32>
    %cst_162 = arith.constant 0.000000e+00 : f32
    %410 = vector.shape_cast %409 : vector<8x1xi1> to vector<8x1xi1>
    %411 = vector.broadcast %410 : vector<8x1xi1> to vector<8x32xi1>
    %412 = vector.broadcast %cst_162 : f32 to vector<8x32xf32>
    %413 = arith.select %411, %404, %412 : vector<8x32xi1>, vector<8x32xf32>
    %414 = arith.truncf %413 : vector<8x32xf32> to vector<8x32xbf16>
    %415 = arith.index_cast %c6_i32 : i32 to index
    %c0_163 = arith.constant 0 : index
    %c0_164 = arith.constant 0 : index
    %416 = vector.load %arg15[%415, %c0_163, %c0_164] : memref<8x8x32xbf16, #tpu.memory_space<vmem>>, vector<1x8x32xbf16>
    %417 = vector.shape_cast %416 : vector<1x8x32xbf16> to vector<8x32xbf16>
    %418 = vector.shape_cast %414 : vector<8x32xbf16> to vector<1x8x32xbf16>
    tpu.vector_store %arg15[%415, %c0_163, %c0_164], %418 {strides = array<i32>} : memref<8x8x32xbf16, #tpu.memory_space<vmem>>, vector<1x8x32xbf16>,
    %419 = vector.shape_cast %409 : vector<8x1xi1> to vector<8x1xi1>
    %420 = vector.broadcast %419 : vector<8x1xi1> to vector<8x32xi1>
    %421 = arith.select %420, %404, %365 : vector<8x32xi1>, vector<8x32xf32>
    %c7_i32 = arith.constant 7 : i32
    %422 = arith.truncf %421 : vector<8x32xf32> to vector<8x32xbf16>
    %cst_165 = arith.constant dense<0.000000e+00> : vector<8x32xf32>
    %423 = tpu.matmul %422, %23, %cst_165 {dimension_numbers = #tpu.dot_dimension_numbers<[1], [0], [0], [1], [0, 0, 1, 1], [], []>} : vector<8x32xbf16>, vector<32x32xbf16>, vector<8x32xf32> -> vector<8x32xf32>
    %424 = vector.broadcast %26 : vector<1x32xf32> to vector<8x32xf32>
    %425 = arith.addf %423, %424 : vector<8x32xf32>
    %cst_166 = arith.constant dense<0.000000e+00> : vector<8x32xf32>
    %426 = tpu.matmul %422, %24, %cst_166 {dimension_numbers = #tpu.dot_dimension_numbers<[1], [0], [0], [1], [0, 0, 1, 1], [], []>} : vector<8x32xbf16>, vector<32x32xbf16>, vector<8x32xf32> -> vector<8x32xf32>
    %427 = vector.broadcast %27 : vector<1x32xf32> to vector<8x32xf32>
    %428 = arith.addf %426, %427 : vector<8x32xf32>
    %cst_167 = arith.constant dense<0.000000e+00> : vector<8x32xf32>
    %429 = tpu.matmul %422, %25, %cst_167 {dimension_numbers = #tpu.dot_dimension_numbers<[1], [0], [0], [1], [0, 0, 1, 1], [], []>} : vector<8x32xbf16>, vector<32x32xbf16>, vector<8x32xf32> -> vector<8x32xf32>
    %430 = vector.broadcast %28 : vector<1x32xf32> to vector<8x32xf32>
    %431 = arith.addf %429, %430 : vector<8x32xf32>
    %432 = arith.index_cast %c7_i32 : i32 to index
    %c0_168 = arith.constant 0 : index
    %c0_169 = arith.constant 0 : index
    %433 = vector.load %arg17[%432, %c0_168, %c0_169] : memref<8x8x32xf32, #tpu.memory_space<vmem>>, vector<1x8x32xf32>
    %434 = vector.shape_cast %433 : vector<1x8x32xf32> to vector<8x32xf32>
    %435 = arith.addf %434, %425 : vector<8x32xf32>
    %436 = arith.negf %435 : vector<8x32xf32>
    %437 = math.exp %436 : vector<8x32xf32>
    %cst_170 = arith.constant 1.000000e+00 : f32
    %438 = vector.broadcast %cst_170 : f32 to vector<8x32xf32>
    %439 = arith.addf %438, %437 : vector<8x32xf32>
    %440 = arith.divf %438, %439 : vector<8x32xf32>
    %441 = arith.index_cast %c7_i32 : i32 to index
    %c0_171 = arith.constant 0 : index
    %c0_172 = arith.constant 0 : index
    %442 = vector.load %arg18[%441, %c0_171, %c0_172] : memref<8x8x32xf32, #tpu.memory_space<vmem>>, vector<1x8x32xf32>
    %443 = vector.shape_cast %442 : vector<1x8x32xf32> to vector<8x32xf32>
    %444 = arith.addf %443, %428 : vector<8x32xf32>
    %445 = arith.negf %444 : vector<8x32xf32>
    %446 = math.exp %445 : vector<8x32xf32>
    %cst_173 = arith.constant 1.000000e+00 : f32
    %447 = vector.broadcast %cst_173 : f32 to vector<8x32xf32>
    %448 = arith.addf %447, %446 : vector<8x32xf32>
    %449 = arith.divf %447, %448 : vector<8x32xf32>
    %450 = arith.index_cast %c7_i32 : i32 to index
    %c0_174 = arith.constant 0 : index
    %c0_175 = arith.constant 0 : index
    %451 = vector.load %arg19[%450, %c0_174, %c0_175] : memref<8x8x32xf32, #tpu.memory_space<vmem>>, vector<1x8x32xf32>
    %452 = vector.shape_cast %451 : vector<1x8x32xf32> to vector<8x32xf32>
    %453 = arith.mulf %440, %431 : vector<8x32xf32>
    %454 = arith.addf %452, %453 : vector<8x32xf32>
    %455 = math.tanh %454 : vector<8x32xf32>
    %cst_176 = arith.constant 1.000000e+00 : f32
    %456 = vector.broadcast %cst_176 : f32 to vector<8x32xf32>
    %457 = arith.subf %456, %449 : vector<8x32xf32>
    %458 = arith.mulf %457, %455 : vector<8x32xf32>
    %459 = arith.mulf %449, %421 : vector<8x32xf32>
    %460 = arith.addf %458, %459 : vector<8x32xf32>
    %461 = arith.index_cast %c7_i32 : i32 to index
    %c0_177 = arith.constant 0 : index
    %c0_178 = arith.constant 0 : index
    %462 = vector.load %arg1[%461, %c0_177, %c0_178] : memref<8x8x1xf32, #tpu.memory_space<vmem>>, vector<1x8x1xf32>
    %463 = vector.shape_cast %462 : vector<1x8x1xf32> to vector<8x1xf32>
    %cst_179 = arith.constant 0.000000e+00 : f32
    %464 = vector.broadcast %cst_179 : f32 to vector<8x1xf32>
    %465 = arith.cmpf ogt, %463, %464 : vector<8x1xf32>
    %cst_180 = arith.constant 0.000000e+00 : f32
    %466 = vector.shape_cast %465 : vector<8x1xi1> to vector<8x1xi1>
    %467 = vector.broadcast %466 : vector<8x1xi1> to vector<8x32xi1>
    %468 = vector.broadcast %cst_180 : f32 to vector<8x32xf32>
    %469 = arith.select %467, %460, %468 : vector<8x32xi1>, vector<8x32xf32>
    %470 = arith.truncf %469 : vector<8x32xf32> to vector<8x32xbf16>
    %471 = arith.index_cast %c7_i32 : i32 to index
    %c0_181 = arith.constant 0 : index
    %c0_182 = arith.constant 0 : index
    %472 = vector.load %arg15[%471, %c0_181, %c0_182] : memref<8x8x32xbf16, #tpu.memory_space<vmem>>, vector<1x8x32xbf16>
    %473 = vector.shape_cast %472 : vector<1x8x32xbf16> to vector<8x32xbf16>
    %474 = vector.shape_cast %470 : vector<8x32xbf16> to vector<1x8x32xbf16>
    tpu.vector_store %arg15[%471, %c0_181, %c0_182], %474 {strides = array<i32>} : memref<8x8x32xbf16, #tpu.memory_space<vmem>>, vector<1x8x32xbf16>,
    %475 = vector.shape_cast %465 : vector<8x1xi1> to vector<8x1xi1>
    %476 = vector.broadcast %475 : vector<8x1xi1> to vector<8x32xi1>
    %477 = arith.select %476, %460, %421 : vector<8x32xi1>, vector<8x32xf32>
    %c8_i32 = arith.constant 8 : i32
    %c0_183 = arith.constant 0 : index
    %c0_184 = arith.constant 0 : index
    %478 = vector.load %arg16[%c0_183, %c0_184] : memref<8x32xf32, #tpu.memory_space<vmem>>, vector<8x32xf32>
    tpu.vector_store %arg16[%c0_183, %c0_184], %477 {strides = array<i32>} : memref<8x32xf32, #tpu.memory_space<vmem>>, vector<8x32xf32>,
    return
  }
}

</mosaic_0001>

<bundles_post_ra>
// kernel: narm_forward.7
= control target key start
LH: loop header
LB: loop body
LE: loop exit
PB: predicated region body
PF: predicated region fallthrough
CT: control target
= control target key end

     0   :  { %vm95_vm0 = vcmask 130048   ;;  %vm248_vm1 = vcmask 261120   ;;  %s622_s3 = inlined_call_operand.vmem [shape: bf16[16,32], index: 3, kind: input, shape index: {}]   ;;  %s623_s4 = inlined_call_operand.vmem [shape: bf16[16,32], index: 4, kind: input, shape index: {}]   ;;  %s624_s2 = inlined_call_operand.vmem [shape: bf16[128,16], index: 2, kind: input, shape index: {}]   ;;  %s625_s5 = inlined_call_operand.vmem [shape: f32[1,32], index: 5, kind: input, shape index: {}]   ;;  %s626_s6 = inlined_call_operand.vmem [shape: f32[1,32], index: 6, kind: input, shape index: {}]   ;;  %s627_s1 = inlined_call_operand.vmem [shape: bf16[8,32], index: 1, kind: input, shape index: {}]   ;;  %s628_s0 = inlined_call_operand.vmem [shape: bf16[8,32], index: 0, kind: input, shape index: {}]   ;;  %s629_s7 = inlined_call_operand.vmem [shape: f32[8,128], index: 7, kind: output, shape index: {}]  }
   0x1   :  { %v400_v0 = vld [vmem:[%s622_s3] sm:$0xff]  ;;  %v393_v3 = vld [vmem:[%s624_s2 + $0x8] sm:$0xff]  ;;  %v394_v4 = vld [vmem:[%s624_s2 + $0x10] sm:$0xff] }
   0x2   :  { %v401_v1 = vld [vmem:[%s623_s4] sm:$0xff]  ;;  %127 = vmatpush.bf16.msra.mxu0 %v400_v0  ;;  %v395_v5 = vld [vmem:[%s624_s2 + $0x18] sm:$0xff]  ;;  %v397_v7 = vld [vmem:[%s624_s2 + $0x28] sm:$0xff] }
   0x3   :  { %v392_v2 = vld [vmem:[%s624_s2] sm:$0xff]  ;;  %196 = vmatpush.bf16.msra.mxu1 %v401_v1  ;;  %v398_v8 = vld [vmem:[%s624_s2 + $0x30] sm:$0xff]  ;;  %v399_v9 = vld [vmem:[%s624_s2 + $0x38] sm:$0xff] }
   0x4   :  { %v396_v6 = vld [vmem:[%s624_s2 + $0x20] sm:$0xff] }
   0x5   :  { %370 = vmatmul.msk.bf16.vlgmr.msra.gmra.mxu0 %vm95_vm0, %v392_v2  ;;  %v493_v12 = vld [vmem:[%s625_s5] ss:$0 sm:$0xff] }
   0x6   :  { %382 = vmatmul.msk.bf16.vlgmr.msra.gmra.mxu1 %vm95_vm0, %v392_v2  ;;  %v498_v13 = vld [vmem:[%s626_s6] ss:$0 sm:$0xff] }
  0x15   :  { %371 = vmatmul.msk.bf16.gmra.mxu0 %vm95_vm0, %v393_v3 }
  0x16   :  { %383 = vmatmul.msk.bf16.gmra.mxu1 %vm95_vm0, %v393_v3 }
  0x25   :  { %372 = vmatmul.msk.bf16.gmra.mxu0 %vm95_vm0, %v394_v4 }
  0x26   :  { %384 = vmatmul.msk.bf16.gmra.mxu1 %vm95_vm0, %v394_v4 }
  0x35   :  { %373 = vmatmul.msk.bf16.gmra.mxu0 %vm95_vm0, %v395_v5 }
  0x36   :  { %385 = vmatmul.msk.bf16.gmra.mxu1 %vm95_vm0, %v395_v5 }
  0x45   :  { %374 = vmatmul.msk.bf16.gmra.mxu0 %vm95_vm0, %v396_v6 }
  0x46   :  { %386 = vmatmul.msk.bf16.gmra.mxu1 %vm95_vm0, %v396_v6 }
  0x55   :  { %375 = vmatmul.msk.bf16.gmra.mxu0 %vm95_vm0, %v397_v7 }
  0x56   :  { %387 = vmatmul.msk.bf16.gmra.mxu1 %vm95_vm0, %v397_v7 }
  0x65   :  { %376 = vmatmul.msk.bf16.gmra.mxu0 %vm95_vm0, %v398_v8 }
  0x66   :  { %388 = vmatmul.msk.bf16.gmra.mxu1 %vm95_vm0, %v398_v8 }
  0x75   :  { %377 = vmatmul.msk.bf16.gmra.mxu0 %vm95_vm0, %v399_v9 }
  0x76   :  { %389 = vmatmul.msk.bf16.gmra.mxu1 %vm95_vm0, %v399_v9 }
  0x82   :  { %v129_v10 = vpop.f32.mrf.mxu0 }
  0x83   :  { %v198_v11 = vpop.f32.mrf.mxu1  ;;  %v501_v16 = vadd.f32 %v493_v12, %v129_v10 }
  0x84   :  { %v504_v17 = vadd.f32 %v498_v13, %v198_v11 }
  0x8a   :  { %v131_v14 = vpop.f32.mrf.mxu0 }
  0x8b   :  { %v200_v15 = vpop.f32.mrf.mxu1  ;;  %v507_v18 = vadd.f32 %v493_v12, %v131_v14 }
  0x8c   :  { %v510_v19 = vadd.f32 %v498_v13, %v200_v15 }
  0x8d   :  { %v169_v21 = vpack.c.bf16 %v507_v18, %v501_v16 }
  0x8e   :  { %v238_v20 = vpack.c.bf16 %v510_v19, %v504_v17 }
  0x92   :  { %v134_v22 = vpop.f32.mrf.mxu0 }
  0x93   :  { %v203_v23 = vpop.f32.mrf.mxu1  ;;  %v517_v26 = vadd.f32 %v493_v12, %v134_v22 }
  0x94   :  { %v520_v27 = vadd.f32 %v498_v13, %v203_v23 }
  0x9a   :  { %v136_v24 = vpop.f32.mrf.mxu0 }
  0x9b   :  { %v205_v25 = vpop.f32.mrf.mxu1  ;;  %v523_v28 = vadd.f32 %v493_v12, %v136_v24 }
  0x9c   :  { %v526_v29 = vadd.f32 %v498_v13, %v205_v25 }
  0x9d   :  { %v170_v31 = vpack.c.bf16 %v523_v28, %v517_v26  ;;  %v247_v26 = vld [vmem:[%s627_s1] sm:$0xf] }
  0x9e   :  { %v239_v30 = vpack.c.bf16 %v526_v29, %v520_v27  ;;  %v246_v27 = vld [vmem:[%s628_s0] sm:$0xf] }
  0xa2   :  { %v139_v32 = vpop.f32.mrf.mxu0 }
  0xa3   :  { %v208_v33 = vpop.f32.mrf.mxu1  ;;  %v533_v36 = vadd.f32 %v493_v12, %v139_v32 }
  0xa4   :  { %v536_v37 = vadd.f32 %v498_v13, %v208_v33 }
  0xaa   :  { %v141_v34 = vpop.f32.mrf.mxu0 }
  0xab   :  { %v210_v35 = vpop.f32.mrf.mxu1  ;;  %v539_v38 = vadd.f32 %v493_v12, %v141_v34 }
  0xac   :  { %v542_v39 = vadd.f32 %v498_v13, %v210_v35 }
  0xad   :  { %v171_v41 = vpack.c.bf16 %v539_v38, %v533_v36  ;;  %v253_v36 = vsel %vm248_vm1, %v238_v20, 0 }
  0xae   :  { %v240_v40 = vpack.c.bf16 %v542_v39, %v536_v37  ;;  %v293_v37 = vsel %vm248_vm1, %v169_v21, 0 }
  0xb2   :  { %v144_v42 = vpop.f32.mrf.mxu0 }
  0xb3   :  { %v213_v43 = vpop.f32.mrf.mxu1  ;;  %v549_v46 = vadd.f32 %v493_v12, %v144_v42 }
  0xb4   :  { %v552_v47 = vadd.f32 %v498_v13, %v213_v43 }
  0xba   :  { %v146_v44 = vpop.f32.mrf.mxu0 }
  0xbb   :  { %v215_v45 = vpop.f32.mrf.mxu1  ;;  %v555_v48 = vadd.f32 %v493_v12, %v146_v44 }
  0xbc   :  { %v216_v49 = vadd.f32 %v498_v13, %v215_v45 }
  0xbd   :  { %v172_v51 = vpack.c.bf16 %v555_v48, %v549_v46 }
  0xbe   :  { %v241_v50 = vpack.c.bf16 %v216_v49, %v552_v47 }
  0xc2   :  { %v149_v52 = vpop.f32.mrf.mxu0 }
  0xc3   :  { %v218_v53 = vpop.f32.mrf.mxu1  ;;  %v150_v56 = vadd.f32 %v493_v12, %v149_v52 }
  0xc4   :  { %v219_v57 = vadd.f32 %v498_v13, %v218_v53 }
  0xca   :  { %v151_v54 = vpop.f32.mrf.mxu0 }
  0xcb   :  { %v220_v55 = vpop.f32.mrf.mxu1  ;;  %v152_v58 = vadd.f32 %v493_v12, %v151_v54 }
  0xcc   :  { %v221_v59 = vadd.f32 %v498_v13, %v220_v55 }
  0xcd   :  { %v173_v61 = vpack.c.bf16 %v152_v58, %v150_v56  ;;  %v262_v58 = vsel %vm248_vm1, %v241_v50, 0  ;;  %v256_v50 = vsel %vm248_vm1, %v239_v30, 0 }
  0xce   :  { %v242_v60 = vpack.c.bf16 %v221_v59, %v219_v57  ;;  %v299_v59 = vsel %vm248_vm1, %v171_v41, 0 }
  0xcf   :  { %v305_v57 = vsel %vm248_vm1, %v173_v61, 0 }
  0xd0   :  { %v265_v56 = vsel %vm248_vm1, %v242_v60, 0 }
  0xd2   :  { %v154_v62 = vpop.f32.mrf.mxu0 }
  0xd3   :  { %v223_v63 = vpop.f32.mrf.mxu1  ;;  %v155_v48 = vadd.f32 %v493_v12, %v154_v62 }
  0xd4   :  { %v224_v49 = vadd.f32 %v498_v13, %v223_v63 }
  0xda   :  { %v156_v0 = vpop.f32.mrf.mxu0 }
  0xdb   :  { %v225_v1 = vpop.f32.mrf.mxu1  ;;  %v157_v44 = vadd.f32 %v493_v12, %v156_v0 }
  0xdc   :  { %v226_v45 = vadd.f32 %v498_v13, %v225_v1 }
  0xdd   :  { %v174_v53 = vpack.c.bf16 %v157_v44, %v155_v48 }
  0xde   :  { %v243_v52 = vpack.c.bf16 %v226_v45, %v224_v49 }
  0xdf   :  { %v308_v55 = vsel %vm248_vm1, %v174_v53, 0 }
  0xe0   :  { %v268_v54 = vsel %vm248_vm1, %v243_v52, 0 }
  0xe2   :  { %v159_v2 = vpop.f32.mrf.mxu0 }
  0xe3   :  { %v228_v3 = vpop.f32.mrf.mxu1  ;;  %v160_v34 = vadd.f32 %v493_v12, %v159_v2 }
  0xe4   :  { %v229_v35 = vadd.f32 %v498_v13, %v228_v3 }
  0xea   :  { %v161_v4 = vpop.f32.mrf.mxu0 }
  0xeb   :  { %v230_v5 = vpop.f32.mrf.mxu1  ;;  %v162_v24 = vadd.f32 %v493_v12, %v161_v4 }
  0xec   :  { %v231_v25 = vadd.f32 %v498_v13, %v230_v5 }
  0xed   :  { %v175_v43 = vpack.c.bf16 %v162_v24, %v160_v34 }
  0xee   :  { %v244_v42 = vpack.c.bf16 %v231_v25, %v229_v35 }
  0xef   :  { %v311_v47 = vsel %vm248_vm1, %v175_v43, 0 }
  0xf0   :  { %v271_v46 = vsel %vm248_vm1, %v244_v42, 0 }
  0xf2   :  { %v164_v6 = vpop.f32.mrf.mxu0 }
  0xf3   :  { %v233_v7 = vpop.f32.mrf.mxu1  ;;  %v165_v10 = vadd.f32 %v493_v12, %v164_v6 }
  0xf4   :  { %v234_v11 = vadd.f32 %v498_v13, %v233_v7 }
  0xfa   :  { %v166_v8 = vpop.f32.mrf.mxu0 }
  0xfb   :  { %v235_v9 = vpop.f32.mrf.mxu1  ;;  %v167_v14 = vadd.f32 %v493_v12, %v166_v8  ;;  %v302_v12 = vsel %vm248_vm1, %v172_v51, 0  ;;  %v296_v51 = vsel %vm248_vm1, %v170_v31, 0 }
  0xfc   :  { %v236_v15 = vadd.f32 %v498_v13, %v235_v9  ;;  %v259_v13 = vsel %vm248_vm1, %v240_v40, 0 }
  0xfd   :  { %v176_v23 = vpack.c.bf16 %v167_v14, %v165_v10 }
  0xfe   :  { %v245_v22 = vpack.c.bf16 %v236_v15, %v234_v11 }
  0xff   :  { %v314_v33 = vsel %vm248_vm1, %v176_v23, 0 }
 0x100   :  { %v274_v32 = vsel %vm248_vm1, %v245_v22, 0  ;;  %316 = vmatpush.bf16.xpose.msra.mxu3 %v314_v33 }
 0x101   :  { %276 = vmatpush.bf16.xpose.msra.mxu2 %v274_v32 }
 0x108   :  { %317 = vmatpush.bf16.xpose.msra.mxu3 %v311_v47 }
 0x109   :  { %277 = vmatpush.bf16.xpose.msra.mxu2 %v271_v46 }
 0x110   :  { %318 = vmatpush.bf16.xpose.msra.mxu3 %v308_v55 }
 0x111   :  { %278 = vmatpush.bf16.xpose.msra.mxu2 %v268_v54 }
 0x118   :  { %319 = vmatpush.bf16.xpose.msra.mxu3 %v305_v57 }
 0x119   :  { %279 = vmatpush.bf16.xpose.msra.mxu2 %v265_v56 }
 0x120   :  { %320 = vmatpush.bf16.xpose.msra.mxu3 %v302_v12 }
 0x121   :  { %280 = vmatpush.bf16.xpose.msra.mxu2 %v262_v58 }
 0x128   :  { %321 = vmatpush.bf16.xpose.msra.mxu3 %v299_v59 }
 0x129   :  { %281 = vmatpush.bf16.xpose.msra.mxu2 %v259_v13 }
 0x130   :  { %322 = vmatpush.bf16.xpose.msra.mxu3 %v296_v51 }
 0x131   :  { %282 = vmatpush.bf16.xpose.msra.mxu2 %v256_v50 }
 0x138   :  { %323 = vmatpush.bf16.xpose.msra.mxu3 %v293_v37 }
 0x139   :  { %283 = vmatpush.bf16.xpose.msra.mxu2 %v253_v36 }
 0x13f   :  { %391 = vmatmul.msk.bf16.vlgmr.msra.gmra.mxu3 %vm248_vm1, %v246_v27 }
 0x140   :  { %390 = vmatmul.msk.bf16.vlgmr.msra.gmra.mxu2 %vm248_vm1, %v247_v26 }
 0x1c2   :  { %v325_v19 = vpop.f32.mrf.mxu3 }
 0x1c3   :  { %v285_v17 = vpop.f32.mrf.mxu2 }
 0x1c4   :  { %v326_v20 = vadd.f32 %v325_v19, %v285_v17 }
 0x1c6   :  { %329 = vst [vmem:[%s629_s7] sm:$0xff] %v326_v20 }
 0x1ca   :  { %v327_v18 = vpop.f32.mrf.mxu3 }
 0x1cb   :  { %v287_v16 = vpop.f32.mrf.mxu2 }

// kernel: narm_forward.6
= control target key start
LH: loop header
LB: loop body
LE: loop exit
PB: predicated region body
PF: predicated region fallthrough
CT: control target
= control target key end

     0   :  { %vm68_vm0 = vcmask 261120   ;;  %s813_s4 = inlined_call_operand.vmem [shape: bf16[32,32], index: 4, kind: input, shape index: {}]   ;;  %s814_s3 = inlined_call_operand.vmem [shape: bf16[32,32], index: 3, kind: input, shape index: {}]   ;;  %s815_s1 = inlined_call_operand.vmem [shape: f32[8,32], index: 1, kind: input, shape index: {}]   ;;  %s816_s0 = inlined_call_operand.vmem [shape: bf16[8,8,32], index: 0, kind: input, shape index: {}]   ;;  %s817_s5 = inlined_call_operand.vmem [shape: f32[1,32], index: 5, kind: input, shape index: {}]   ;;  %s818_s2 = inlined_call_operand.vmem [shape: f32[8,8], index: 2, kind: input, shape index: {}]   ;;  %s819_s6 = inlined_call_operand.vmem [shape: f32[8,32], index: 6, kind: output, shape index: {}]  }
   0x1   :  { %v540_v0 = vld [vmem:[%s813_s4 + $0x8] sm:$0xff]  ;;  %v539_v2 = vld [vmem:[%s813_s4] sm:$0xff]  ;;  %v538_v7 = vld [vmem:[%s816_s0 + $0x18] sm:$0xff] }
   0x2   :  { %v542_v1 = vld [vmem:[%s814_s3 + $0x8] sm:$0xff]  ;;  %87 = vmatpush.bf16.msra.mxu0 %v540_v0  ;;  %543 = vmatpush.bf16.msra.mxu2 %v540_v0  ;;  %v541_v3 = vld [vmem:[%s814_s3] sm:$0xff]  ;;  %v537_v9 = vld [vmem:[%s816_s0 + $0x10] sm:$0xff] }
   0x3   :  { %544 = vmatpush.bf16.msra.mxu3 %v540_v0  ;;  %137 = vmatpush.bf16.msra.mxu1 %v542_v1  ;;  %v110_v4 = vld [vmem:[%s815_s1] sm:$0xff]  ;;  %v536_v6 = vld [vmem:[%s816_s0 + $0x8] sm:$0xff] }
   0x4   :  { %v535_v5 = vld [vmem:[%s816_s0] sm:$0xff]  ;;  %v111_v8 = vpack.c.bf16 %v110_v4, %v110_v4 }
   0x5   :  { %v697_v62 = vld [vmem:[%s817_s5] ss:$0 sm:$0xff] }
   0x6   :  { %88 = vmatpush.bf16.msra.mxu0 %v539_v2  ;;  %545 = vmatpush.bf16.msra.mxu2 %v539_v2 }
   0x7   :  { %546 = vmatpush.bf16.msra.mxu3 %v539_v2  ;;  %138 = vmatpush.bf16.msra.mxu1 %v541_v3 }
   0x9   :  { %514 = vmatmul.msk.bf16.vlgmr.msra.gmra.mxu0 %vm68_vm0, %v535_v5  ;;  %515 = vmatmul.msk.bf16.vlgmr.msra.gmra.mxu2 %vm68_vm0, %v536_v6 }
   0xa   :  { %517 = vmatmul.msk.bf16.vlgmr.msra.gmra.mxu3 %vm68_vm0, %v538_v7  ;;  %526 = vmatmul.msk.bf16.vlgmr.msra.gmra.mxu1 %vm68_vm0, %v111_v8 }
  0x19   :  { %516 = vmatmul.msk.bf16.gmra.mxu2 %vm68_vm0, %v537_v9 }
  0x86   :  { %v90_v10 = vpop.f32.mrf.mxu0 }
  0x87   :  { %v654_v11 = vpop.f32.mrf.mxu1 }
  0x88   :  { %v144_v12 = vadd.f32 %v654_v11, %v90_v10 }
  0x8a   :  { %v527_v13 = vmul.f32 -1.442695, %v144_v12 }
  0x8c   :  { %v95_v14 = vpop.f32.mrf.mxu2  ;;  %551 = vpow2.f32 %v527_v13 }
  0x8d   :  { %v146_v15 = vadd.f32 %v654_v11, %v95_v14  ;;  %v105_v16 = vpop.f32.mrf.mxu3 }
  0x8e   :  { %v150_v17 = vadd.f32 %v654_v11, %v105_v16  ;;  %v92_v18 = vpop.f32.mrf.mxu0 }
  0x8f   :  { %v529_v19 = vmul.f32 -1.442695, %v146_v15  ;;  %v145_v20 = vadd.f32 %v654_v11, %v92_v18  ;;  %v142_v21 = vpop.f32.mrf.mxu1 }
  0x90   :  { %v533_v22 = vmul.f32 -1.442695, %v150_v17 }
  0x91   :  { %553 = vpow2.f32 %v529_v19  ;;  %v528_v23 = vmul.f32 -1.442695, %v145_v20 }
  0x92   :  { %v552_v24 = vpop.eup %551  ;;  %555 = vpow2.f32 %v533_v22 }
  0x93   :  { %557 = vpow2.f32 %v528_v23  ;;  %v176_v25 = vadd.f32 1.0, %v552_v24 }
  0x94   :  { %v97_v26 = vpop.f32.mrf.mxu2 }
  0x95   :  { %v147_v27 = vadd.f32 %v654_v11, %v97_v26  ;;  %v107_v28 = vpop.f32.mrf.mxu3  ;;  %559 = vrcp.f32 %v176_v25  ;;  %v193_v39 = vand.u32 2147483647, %v176_v25  ;;  %v195_v40 = vand.u32 2147483648, %v176_v25 }
  0x96   :  { %v151_v29 = vadd.f32 %v654_v11, %v107_v28  ;;  %vm189_vm1 = vweird.f32 %v176_v25 }
  0x97   :  { %v554_v30 = vpop.eup %553  ;;  %v530_v31 = vmul.f32 -1.442695, %v147_v27  ;;  %vm674_vm3 = vcmp.eq.f32.partialorder %v193_v39, 8.507059e+37  ;;  %v196_v50 = vor.u32 1.1754944e-38, %v195_v40 }
  0x98   :  { %v556_v32 = vpop.eup %555  ;;  %v662_v33 = vadd.f32 1.0, %v554_v30  ;;  %v534_v36 = vmul.f32 -1.442695, %v151_v29 }
  0x99   :  { %v558_v34 = vpop.eup %557  ;;  %v664_v35 = vadd.f32 1.0, %v556_v32  ;;  %561 = vpow2.f32 %v530_v31 }
  0x9a   :  { %563 = vrcp.f32 %v662_v33  ;;  %v667_v37 = vadd.f32 1.0, %v558_v34  ;;  %v223_v44 = vand.u32 2147483647, %v662_v33  ;;  %v225_v45 = vand.u32 2147483648, %v662_v33 }
  0x9b   :  { %v560_v38 = vpop.eup %559  ;;  %565 = vrcp.f32 %v664_v35  ;;  %vm219_vm4 = vweird.f32 %v662_v33  ;;  %v283_v54 = vand.u32 2147483647, %v664_v35  ;;  %vm279_vm8 = vweird.f32 %v664_v35 }
  0x9c   :  { %567 = vrcp.f32 %v667_v37  ;;  %v100_v41 = vpop.f32.mrf.mxu2  ;;  %v185_v42 = vmul.f32 %v560_v38, %v176_v25  ;;  %vm190_vm2 = vweird.f32 %v560_v38  ;;  %vm689_vm6 = vcmp.eq.f32.partialorder %v223_v44, 8.507059e+37 }
  0x9d   :  { %569 = vpow2.f32 %v534_v36  ;;  %v148_v43 = vadd.f32 %v654_v11, %v100_v41  ;;  %vm684_vm5 = vmor %vm189_vm1, %vm190_vm2  ;;  %v226_v59 = vor.u32 1.1754944e-38, %v225_v45  ;;  %vm204_vm7 = vweird.f32 %v667_v37 }
  0x9e   :  { %v186_v46 = vsub.f32 1.0, %v185_v42  ;;  %v208_v63 = vand.u32 2147483647, %v667_v37  ;;  %v210_v3 = vand.u32 2147483648, %v667_v37  ;;  %v285_v4 = vand.u32 2147483648, %v664_v35 }
  0x9f   :  { %v562_v47 = vpop.eup %561  ;;  %v531_v48 = vmul.f32 -1.442695, %v148_v43  ;;  %vm753_vm2 = vcmp.eq.f32.partialorder %v283_v54, 8.507059e+37 }
  0xa0   :  { %v564_v51 = vpop.eup %563  ;;  %v678_v52 = vadd.f32 1.0, %v562_v47  ;;  %v187_v53 = vmul.f32 %v560_v38, %v186_v46  ;;  %vm716_vm10 = vcmp.eq.f32.partialorder %v208_v63, 8.507059e+37  ;;  %v211_v23 = vor.u32 1.1754944e-38, %v210_v3 }
  0xa1   :  { %v682_v55 = vpop.eup %565  ;;  %571 = vpow2.f32 %v531_v48  ;;  %v215_v57 = vmul.f32 %v564_v51, %v662_v33  ;;  %vm220_vm9 = vweird.f32 %v564_v51  ;;  %v286_v44 = vor.u32 1.1754944e-38, %v285_v4 }
  0xa2   :  { %v568_v60 = vpop.eup %567  ;;  %573 = vrcp.f32 %v678_v52  ;;  %v188_v61 = vadd.f32 %v560_v38, %v187_v53  ;;  %v275_v8 = vmul.f32 %v682_v55, %v664_v35  ;;  %vm221_vm12 = vmor %vm219_vm4, %vm220_vm9  ;;  %vm280_vm14 = vweird.f32 %v682_v55 }
  0xa3   :  { %v570_v0 = vpop.eup %569  ;;  %v216_v1 = vsub.f32 1.0, %v215_v57  ;;  %v200_v2 = vmul.f32 %v568_v60, %v667_v37  ;;  %vm205_vm11 = vweird.f32 %v568_v60  ;;  %v238_v33 = vand.u32 2147483647, %v678_v52  ;;  %vm744_vm1 = vmor %vm279_vm8, %vm280_vm14 }
  0xa4   :  { %v705_v5 = vadd.f32 1.0, %v570_v0  ;;  %v102_v6 = vpop.f32.mrf.mxu2  ;;  %v192_v7 = vsel %vm684_vm5, %v560_v38, %v188_v61  ;;  %v276_v16 = vsub.f32 1.0, %v275_v8  ;;  %vm206_vm13 = vmor %vm204_vm7, %vm205_vm11  ;;  %v240_v38 = vand.u32 2147483648, %v678_v52 }
  0xa5   :  { %v149_v9 = vadd.f32 %v654_v11, %v102_v6  ;;  %v197_v10 = vsel %vm674_vm3, %v196_v50, %v192_v7  ;;  %v217_v12 = vmul.f32 %v564_v51, %v216_v1  ;;  %v201_v13 = vsub.f32 1.0, %v200_v2 }
  0xa6   :  { %575 = vrcp.f32 %v705_v5  ;;  %v308_v14 = vmul.f32 %v697_v62, %v197_v10  ;;  %v277_v24 = vmul.f32 %v682_v55, %v276_v16  ;;  %vm234_vm3 = vweird.f32 %v678_v52 }
  0xa7   :  { %v572_v17 = vpop.eup %571  ;;  %v532_v18 = vmul.f32 -1.442695, %v149_v9  ;;  %v218_v19 = vadd.f32 %v564_v51, %v217_v12  ;;  %v202_v20 = vmul.f32 %v568_v60, %v201_v13  ;;  %vm239_vm4 = vcmp.eq.f32.partialorder %v238_v33, 8.507059e+37 }
  0xa8   :  { %v574_v11 = vpop.eup %573  ;;  %v720_v21 = vadd.f32 1.0, %v572_v17  ;;  %v316_v22 = vsel %vm68_vm0, %v308_v14, 0.0  ;;  %v278_v29 = vadd.f32 %v682_v55, %v277_v24  ;;  %v300_v35 = vand.u32 2147483648, %v705_v5 }
  0xa9   :  { %577 = vpow2.f32 %v532_v18  ;;  %317 = vadd.xlane.f32.xlu0 %v316_v22  ;;  %v222_v25 = vsel %vm221_vm12, %v564_v51, %v218_v19  ;;  %v203_v26 = vadd.f32 %v568_v60, %v202_v20  ;;  %v230_v27 = vmul.f32 %v574_v11, %v678_v52 }
  0xaa   :  { %579 = vrcp.f32 %v720_v21  ;;  %v227_v28 = vsel %vm689_vm6, %v226_v59, %v222_v25  ;;  %vm235_vm15 = vweird.f32 %v574_v11  ;;  %v282_v42 = vsel %vm744_vm1, %v682_v55, %v278_v29 }
  0xab   :  { %v310_v30 = vmul.f32 %v697_v62, %v227_v28  ;;  %v207_v31 = vsel %vm206_vm13, %v568_v60, %v203_v26  ;;  %v231_v32 = vsub.f32 1.0, %v230_v27  ;;  %vm236_vm5 = vmor %vm234_vm3, %vm235_vm15  ;;  %v241_v51 = vor.u32 1.1754944e-38, %v240_v38 }
  0xac   :  { %v576_v34 = vpop.eup %575  ;;  %v212_v36 = vsel %vm716_vm10, %v211_v23, %v207_v31  ;;  %v287_v55 = vsel %vm753_vm2, %v286_v44, %v282_v42  ;;  %v298_v56 = vand.u32 2147483647, %v705_v5  ;;  %vm294_vm7 = vweird.f32 %v705_v5  ;;  %v340_v44 = vld [vmem:[%s818_s2] sm:$0xff] }
  0xad   :  { %v322_v39 = vsel %vm68_vm0, %v310_v30, 0.0  ;;  %v309_v37 = vmul.f32 %v697_v62, %v212_v36  ;;  %v232_v40 = vmul.f32 %v574_v11, %v231_v32  ;;  %v290_v45 = vmul.f32 %v576_v34, %v705_v5 }
  0xae   :  { %323 = vadd.xlane.f32.xlu1 %v322_v39  ;;  %vm295_vm6 = vweird.f32 %v576_v34  ;;  %v314_v61 = vmul.f32 %v697_v62, %v287_v55  ;;  %v301_v0 = vor.u32 1.1754944e-38, %v300_v35  ;;  %v255_v1 = vand.u32 2147483648, %v720_v21 }
  0xaf   :  { %v578_v46 = vpop.eup %577  ;;  %v319_v47 = vsel %vm68_vm0, %v309_v37, 0.0  ;;  %v233_v48 = vadd.f32 %v574_v11, %v232_v40  ;;  %v291_v53 = vsub.f32 1.0, %v290_v45  ;;  %vm296_vm8 = vmor %vm294_vm7, %vm295_vm6  ;;  %v253_v4 = vand.u32 2147483647, %v720_v21 }
  0xb0   :  { %v580_v49 = vpop.eup %579  ;;  %v181_v50 = vadd.f32 1.0, %v578_v46  ;;  %vm299_vm10 = vcmp.eq.f32.partialorder %v298_v56, 8.507059e+37  ;;  %vm249_vm11 = vweird.f32 %v720_v21  ;;  %v334_v9 = vsel %vm68_vm0, %v314_v61, 0.0 }
  0xb1   :  { %320 = vadd.xlane.f32.xlu0 %v319_v47  ;;  %v237_v54 = vsel %vm236_vm5, %v574_v11, %v233_v48  ;;  %v245_v57 = vmul.f32 %v580_v49, %v720_v21  ;;  %v292_v52 = vmul.f32 %v576_v34, %v291_v53  ;;  %vm250_vm9 = vweird.f32 %v580_v49 }
  0xb2   :  { %581 = vrcp.f32 %v181_v50  ;;  %v242_v58 = vsel %vm239_vm4, %v241_v51, %v237_v54  ;;  %vm251_vm12 = vmor %vm249_vm11, %vm250_vm9  ;;  %v256_v10 = vor.u32 1.1754944e-38, %v255_v1  ;;  %vm254_vm13 = vcmp.eq.f32.partialorder %v253_v4, 8.507059e+37 }
  0xb3   :  { %v311_v59 = vmul.f32 %v697_v62, %v242_v58  ;;  %v246_v60 = vsub.f32 1.0, %v245_v57  ;;  %v293_v63 = vadd.f32 %v576_v34, %v292_v52  ;;  %v268_v18 = vand.u32 2147483647, %v181_v50 }
  0xb4   :  { %v270_v19 = vand.u32 2147483648, %v181_v50  ;;  %vm264_vm15 = vweird.f32 %v181_v50  ;;  %v350_v30 = vlaneseq  ;;  %vm360_vm3 = vcmask 1041409  }
  0xb5   :  { %v325_v2 = vsel %vm68_vm0, %v311_v59, 0.0  ;;  %v247_v3 = vmul.f32 %v580_v49, %v246_v60  ;;  %v297_v6 = vsel %vm296_vm8, %v576_v34, %v293_v63  ;;  %vm269_vm2 = vcmp.eq.f32.partialorder %v268_v18, 8.507059e+37 }
  0xb6   :  { %326 = vadd.xlane.f32.xlu1 %v325_v2  ;;  %v302_v7 = vsel %vm299_vm10, %v301_v0, %v297_v6  ;;  %v271_v23 = vor.u32 1.1754944e-38, %v270_v19  ;;  %v351_v33 = vand.u32 127, %v350_v30  ;;  %vm362_vm4 = vcmask 1042434  }
  0xb7   :  { %v248_v8 = vadd.f32 %v580_v49, %v247_v3  ;;  %v315_v12 = vmul.f32 %v697_v62, %v302_v7  ;;  %vm364_vm5 = vcmask 1043459   ;;  %vm366_vm6 = vcmask 1044484  }
  0xb8   :  { %v582_v5 = vpop.eup %581  ;;  %vm368_vm7 = vcmask 1045509   ;;  %vm370_vm8 = vcmask 1046534   ;;  %vm372_vm9 = vcmask 1047559   ;;  %vm341_vm10 = vcmp.gt.f32.partialorder %v340_v44, 0.0 }
  0xb9   :  { %335 = vadd.xlane.f32.xlu0 %v334_v9  ;;  %v252_v13 = vsel %vm251_vm12, %v580_v49, %v248_v8  ;;  %v260_v14 = vmul.f32 %v582_v5, %v181_v50  ;;  %v337_v20 = vsel %vm68_vm0, %v315_v12, 0.0  ;;  %vm265_vm14 = vweird.f32 %v582_v5 }
  0xba   :  { %v257_v15 = vsel %vm254_vm13, %v256_v10, %v252_v13  ;;  %vm266_vm1 = vmor %vm264_vm15, %vm265_vm14  ;;  %vm376_vm11 = vcmask 64512   ;;  %v400_v0 = vshrl.u32 %v350_v30, 7 }
  0xbb   :  { %v312_v16 = vmul.f32 %v697_v62, %v257_v15  ;;  %v261_v17 = vsub.f32 1.0, %v260_v14 }
  0xbc   :  { %549 = vset.pattern.permute.xlu1 %v400_v0  ;;  %548 = vset.pattern.permute.xlu0 %v400_v0 }
  0xbd   :  { %v328_v11 = vsel %vm68_vm0, %v312_v16, 0.0  ;;  %v262_v21 = vmul.f32 %v582_v5, %v261_v17  ;;  %547 = vset.pattern.permute.xlu2 %v400_v0 }
  0xbe   :  { %338 = vadd.xlane.f32.xlu1 %v337_v20  ;;  %329 = vadd.xlane.f32.xlu2 %v328_v11 }
  0xbf   :  { %v263_v22 = vadd.f32 %v582_v5, %v262_v21 }
  0xc1   :  { %v267_v24 = vsel %vm266_vm1, %v582_v5, %v263_v22 }
  0xc2   :  { %v272_v25 = vsel %vm269_vm2, %v271_v23, %v267_v24  ;;  %v24_v23 = vld [vmem:[%s816_s0] sm:$0xff]   ;;  %v26_v24 = vld [vmem:[%s816_s0 + $0x8] sm:$0xf] }
  0xc3   :  { %v313_v26 = vmul.f32 %v697_v62, %v272_v25  ;;  %v454_v25 = vunpack.c.l.bf16 %v24_v23 }
  0xc5   :  { %v331_v27 = vsel %vm68_vm0, %v313_v26, 0.0  ;;  %v27_v26 = vld [vmem:[%s816_s0 + $0xc] sm:$0xff]  }
  0xc6   :  { %332 = vadd.xlane.f32.xlu2 %v331_v27  ;;  %v456_v27 = vunpack.c.l.bf16 %v26_v24  ;;  %v457_v30 = vunpack.c.l.bf16 %v27_v26 }
 0x11c   :  { %v318_v28 = vpop.xlane.xlu0 %317 }
 0x11d   :  { %v352_v38 = vperm.slane %v318_v28, %v351_v33  ;;  %v455_v28 = vunpack.c.h.bf16 %v24_v23 }
 0x121   :  { %v324_v29 = vpop.xlane.xlu1 %323 }
 0x122   :  { %v354_v40 = vperm.slane %v324_v29, %v351_v33 }
 0x124   :  { %v321_v31 = vpop.xlane.xlu0 %320 }
 0x125   :  { %v353_v36 = vperm.slane %v321_v31, %v351_v33 }
 0x127   :  { %v361_v39 = vsel %vm360_vm3, %v353_v36, %v352_v38 }
 0x128   :  { %v363_v42 = vsel %vm362_vm4, %v354_v40, %v361_v39 }
 0x129   :  { %v327_v32 = vpop.xlane.xlu1 %326 }
 0x12a   :  { %v355_v37 = vperm.slane %v327_v32, %v351_v33 }
 0x12c   :  { %v336_v62 = vpop.xlane.xlu0 %335  ;;  %v365_v46 = vsel %vm364_vm5, %v355_v37, %v363_v42 }
 0x12d   :  { %v358_v48 = vperm.slane %v336_v62, %v351_v33  ;;  %v30_v62 = vld [vmem:[%s816_s0 + $0x14] sm:$0xff]  }
 0x12e   :  { %v459_v44 = vunpack.c.l.bf16 %v30_v62 }
 0x131   :  { %v330_v34 = vpop.xlane.xlu2 %329  ;;  %v339_v43 = vpop.xlane.xlu1 %338 }
 0x132   :  { %v356_v41 = vperm.slane %v330_v34, %v351_v33  ;;  %v359_v50 = vperm.slane %v339_v43, %v351_v33  ;;  %v458_v34 = vunpack.c.h.bf16 %v27_v26 }
 0x134   :  { %v367_v49 = vsel %vm366_vm6, %v356_v41, %v365_v46 }
 0x139   :  { %v333_v45 = vpop.xlane.xlu2 %332 }
 0x13a   :  { %v357_v47 = vperm.slane %v333_v45, %v351_v33 }
 0x13c   :  { %v369_v51 = vsel %vm368_vm7, %v357_v47, %v367_v49 }
 0x13d   :  { %v371_v53 = vsel %vm370_vm8, %v358_v48, %v369_v51 }
 0x13e   :  { %v373_v35 = vsel %vm372_vm9, %v359_v50, %v371_v53  ;;  %v460_v50 = vunpack.c.h.bf16 %v30_v62 }
 0x13f   :  { %v375_v54 = vsel %vm341_vm10, %v373_v35, -1e+30 }
 0x140   :  { %v377_v55 = vsel %vm376_vm11, %v375_v54, -inf }
 0x141   :  { %v378_v56 = vrot.slane %v377_v55, 4 }
 0x143   :  { %v379_v57 = vmax.f32 %v377_v55, %v378_v56 }
 0x145   :  { %v380_v58 = vrot.slane %v379_v57, 2 }
 0x147   :  { %v381_v52 = vmax.f32 %v379_v57, %v380_v58 }
 0x149   :  { %v382_v59 = vrot.slane %v381_v52, 1 }
 0x14b   :  { %v383_v60 = vmax.f32 %v381_v52, %v382_v59 }
 0x14d   :  { %v384_v61 = vsub.f32 %v375_v54, %v383_v60  ;;  %v31_v54 = vld [vmem:[%s816_s0 + $0x1c] sm:$0xf] }
 0x14e   :  { %v461_v57 = vunpack.c.l.bf16 %v31_v54 }
 0x14f   :  { %v385_v63 = vmul.f32 1.442695, %v384_v61 }
 0x151   :  { %583 = vpow2.f32 %v385_v63 }
 0x157   :  { %v584_v1 = vpop.eup %583 }
 0x158   :  { %v387_v2 = vsel %vm341_vm10, %v584_v1, 0.0 }
 0x159   :  { %v388_v3 = vsel %vm376_vm11, %v387_v2, 0.0 }
 0x15a   :  { %v389_v4 = vrot.slane %v388_v3, 4 }
 0x15c   :  { %v390_v6 = vadd.f32 %v389_v4, %v388_v3 }
 0x15e   :  { %v391_v7 = vrot.slane %v390_v6, 2 }
 0x160   :  { %v392_v8 = vadd.f32 %v391_v7, %v390_v6 }
 0x162   :  { %v393_v5 = vrot.slane %v392_v8, 1 }
 0x164   :  { %v394_v9 = vadd.f32 %v393_v5, %v392_v8 }
 0x166   :  { %v395_v10 = vmax.f32 %v394_v9, 1e-30 }
 0x168   :  { %585 = vrcp.f32 %v395_v10 }
 0x16e   :  { %v586_v12 = vpop.eup %585 }
 0x16f   :  { %v397_v13 = vmul.f32 %v586_v12, %v387_v2 }
 0x171   :  { %v412_v14 = vperm.slane %v397_v13, 2  ;;  %v405_v15 = vperm.slane %v397_v13, 1  ;;  %v398_v16 = vperm.slane %v397_v13, 0  ;;  %v433_v17 = vperm.slane %v397_v13, 5 }
 0x172   :  { %v419_v18 = vperm.slane %v397_v13, 3  ;;  %v447_v19 = vperm.slane %v397_v13, 7  ;;  %v426_v20 = vperm.slane %v397_v13, 4  ;;  %v440_v11 = vperm.slane %v397_v13, 6 }
 0x173   :  { %417 = vperm.xlu1 %549, %v412_v14   ;;  %410 = vperm.xlu0 %548, %v405_v15  }
 0x174   :  { %403 = vperm.xlu2 %547, %v398_v16  }
 0x17b   :  { %438 = vperm.xlu1 %549, %v433_v17  }
 0x17c   :  { %424 = vperm.xlu2 %547, %v419_v18  }
 0x183   :  { %452 = vperm.xlu1 %549, %v447_v19  }
 0x184   :  { %431 = vperm.xlu2 %547, %v426_v20  }
 0x18c   :  { %445 = vperm.xlu2 %547, %v440_v11  }
 0x1ce   :  { %v404_v21 = vpop.permute.xlu2 %403 }
 0x1cf   :  { %v462_v29 = vmul.f32 %v454_v25, %v404_v21 }
 0x1d1   :  { %v470_v39 = vsel %vm68_vm0, %v462_v29, 0.0 }
 0x1d6   :  { %v425_v22 = vpop.permute.xlu2 %424 }
 0x1d7   :  { %v465_v37 = vmul.f32 %v457_v30, %v425_v22 }
 0x1d9   :  { %v475_v46 = vsel %vm68_vm0, %v465_v37, 0.0 }
 0x1de   :  { %v432_v31 = vpop.permute.xlu2 %431 }
 0x1df   :  { %v466_v42 = vmul.f32 %v458_v34, %v432_v31 }
 0x1e1   :  { %v477_v49 = vsel %vm68_vm0, %v466_v42, 0.0 }
 0x1e5   :  { %v418_v32 = vpop.permute.xlu1 %417  ;;  %v411_v33 = vpop.permute.xlu0 %410 }
 0x1e6   :  { %v464_v36 = vmul.f32 %v456_v27, %v418_v32  ;;  %v463_v38 = vmul.f32 %v455_v28, %v411_v33  ;;  %v446_v53 = vpop.permute.xlu2 %445 }
 0x1e7   :  { %v468_v56 = vmul.f32 %v460_v50, %v446_v53 }
 0x1e8   :  { %v471_v40 = vsel %vm68_vm0, %v463_v38, 0.0  ;;  %v473_v43 = vsel %vm68_vm0, %v464_v36, 0.0 }
 0x1e9   :  { %v472_v41 = vadd.f32 %v471_v40, %v470_v39  ;;  %v481_v59 = vsel %vm68_vm0, %v468_v56, 0.0 }
 0x1eb   :  { %v474_v45 = vadd.f32 %v473_v43, %v472_v41 }
 0x1ed   :  { %v439_v47 = vpop.permute.xlu1 %438  ;;  %v476_v48 = vadd.f32 %v475_v46, %v474_v45 }
 0x1ee   :  { %v467_v51 = vmul.f32 %v459_v44, %v439_v47 }
 0x1ef   :  { %v478_v35 = vadd.f32 %v477_v49, %v476_v48 }
 0x1f0   :  { %v479_v55 = vsel %vm68_vm0, %v467_v51, 0.0 }
 0x1f1   :  { %v480_v58 = vadd.f32 %v479_v55, %v478_v35 }
 0x1f3   :  { %v482_v61 = vadd.f32 %v481_v59, %v480_v58 }
 0x1f5   :  { %v453_v52 = vpop.permute.xlu1 %452 }
 0x1f6   :  { %v469_v60 = vmul.f32 %v461_v57, %v453_v52 }
 0x1f8   :  { %v483_v63 = vsel %vm68_vm0, %v469_v60, 0.0 }
 0x1f9   :  { %v484_v0 = vadd.f32 %v483_v63, %v482_v61 }
 0x1fb   :  { %485 = vst.msk [vmem:[%s819_s6] sm:$0xff] %vm68_vm0, %v484_v0 }

// kernel: narm_forward.5
= control target key start
LH: loop header
LB: loop body
LE: loop exit
PB: predicated region body
PF: predicated region fallthrough
CT: control target
= control target key end

     0   :  { %vm101_vm0 = vcmask 261120   ;;  %v1444_v15 = vmov 0   ;;  %vm428_vm13 = vcmask 257024   ;;  %s1917_s2 = inlined_call_operand.vmem [shape: bf16[32,32], index: 2, kind: input, shape index: {}]   ;;  %s1918_s5 = inlined_call_operand.vmem [shape: bf16[32,32], index: 5, kind: input, shape index: {}]   ;;  %s1919_s3 = inlined_call_operand.vmem [shape: bf16[32,32], index: 3, kind: input, shape index: {}]   ;;  %s1920_s14 = inlined_call_operand.vmem [shape: f32[8,32], index: 14, kind: input, shape index: {}]   ;;  %s1921_s6 = inlined_call_operand.vmem [shape: bf16[32,32], index: 6, kind: input, shape index: {}]   ;;  %s1922_s4 = inlined_call_operand.vmem [shape: bf16[32,32], index: 4, kind: input, shape index: {}]   ;;  %s1923_s0 = inlined_call_operand.vmem [shape: bf16[8,8,32], index: 0, kind: input, shape index: {}]   ;;  %s1924_s7 = inlined_call_operand.vmem [shape: bf16[32,32], index: 7, kind: input, shape index: {}]   ;;  %s1925_s8 = inlined_call_operand.vmem [shape: f32[1,32], index: 8, kind: input, shape index: {}]   ;;  %s1926_s1 = inlined_call_operand.vmem [shape: f32[8,8,1], index: 1, kind: input, shape index: {}]   ;;  %s1927_s9 = inlined_call_operand.vmem [shape: f32[1,32], index: 9, kind: input, shape index: {}]   ;;  %s1928_s11 = inlined_call_operand.vmem [shape: f32[1,32], index: 11, kind: input, shape index: {}]   ;;  %s1929_s12 = inlined_call_operand.vmem [shape: f32[1,32], index: 12, kind: input, shape index: {}]   ;;  %s1930_s10 = inlined_call_operand.vmem [shape: f32[1,32], index: 10, kind: input, shape index: {}]   ;;  %s1931_s13 = inlined_call_operand.vmem [shape: f32[1,32], index: 13, kind: input, shape index: {}]   ;;  %s1932_s15 = inlined_call_operand.vmem [shape: bf16[8,8,32], index: 15, kind: output, shape index: {0}]   ;;  %s1933_s16 = inlined_call_operand.vmem [shape: f32[8,32], index: 16, kind: output, shape index: {1}]  }
   0x1   :  { %1935 = sst [smem:[#allocation5_spill]] %s1917_s2  ;;  %v1536_v1 = vld [vmem:[%s1918_s5 + $0x8] sm:$0xff]  ;;  %v1548_v4 = vld [vmem:[%s1918_s5] sm:$0xff]  ;;  %1350 = vset.pattern.permute.xlu0 %v1444_v15  ;;  %1351 = vset.pattern.permute.xlu1 %v1444_v15  ;;  %v1324_v20 = vld [vmem:[%s1926_s1 + $0x30] sm:$0xff] }
   0x2   :  { %s1936_s23 = sld [smem:[#allocation5_spill]]  ;;  %v1340_v2 = vld [vmem:[%s1919_s3 + $0x8] sm:$0xff]  ;;  %306 = vmatpush.bf16.msra.mxu3 %v1536_v1  ;;  %v1553_v5 = vld [vmem:[%s1920_s14] sm:$0xff]  ;;  %1352 = vset.pattern.permute.xlu2 %v1444_v15  ;;  %vm1074_vm3 = vcmp.gt.f32.partialorder %v1324_v20, 0.0  ;;  %v1335_v25 = vld [vmem:[%s1923_s0 + $0x10] sm:$0xff] }
   0x3   :  { %177 = vmatpush.bf16.msra.mxu1 %v1340_v2  ;;  %v1558_v6 = vld [vmem:[%s1921_s6 + $0x8] sm:$0xff]  ;;  %v1339_v7 = vld [vmem:[%s1919_s3] sm:$0xff]  ;;  %v281_v10 = vpack.c.bf16 %v1553_v5, %v1553_v5  ;;  %v1075_v21 = vsel %vm1074_vm3, 1, %v1444_v15  ;;  %v1336_v44 = vld [vmem:[%s1923_s0 + $0x18] sm:$0xff] }
   0x4   :  { %v1342_v8 = vld [vmem:[%s1922_s4 + $0x8] sm:$0xff]  ;;  %v1333_v9 = vld [vmem:[%s1923_s0] sm:$0xff] }
   0x5   :  { %234 = vmatpush.bf16.msra.mxu2 %v1342_v8  ;;  %v1341_v11 = vld [vmem:[%s1922_s4] sm:$0xff]  ;;  %v1578_v12 = vld [vmem:[%s1924_s7 + $0x8] sm:$0xff] }
   0x6   :  { %307 = vmatpush.bf16.msra.mxu3 %v1548_v4  ;;  %v1584_v13 = vld [vmem:[%s1921_s6] sm:$0xff]  ;;  %v1289_v17 = vld [vmem:[%s1926_s1 + $0x8] sm:$0xff] }
   0x7   :  { %178 = vmatpush.bf16.msra.mxu1 %v1339_v7  ;;  %v419_v14 = vld [vmem:[%s1926_s1] sm:$0xff]  ;;  %vm529_vm2 = vcmp.gt.f32.partialorder %v1289_v17, 0.0  ;;  %v1334_v22 = vld [vmem:[%s1923_s0 + $0x8] sm:$0xff] }
   0x8   :  { %v1338_v0 = vld [vmem:[%s1936_s23 + $0x8] sm:$0xff]  ;;  %v1337_v3 = vld [vmem:[%s1936_s23] sm:$0xff]  ;;  %vm420_vm1 = vcmp.gt.f32.partialorder %v419_v14, 0.0  ;;  %v530_v19 = vsel %vm529_vm2, 1, %v1444_v15 }
   0x9   :  { %120 = vmatpush.bf16.msra.mxu0 %v1338_v0  ;;  %1263 = vmatmul.msk.bf16.vlgmr.msra.gmra.mxu3 %vm101_vm0, %v281_v10  ;;  %v421_v16 = vsel %vm420_vm1, 1, %v1444_v15  ;;  %v1604_v18 = vld [vmem:[%s1924_s7] sm:$0xff] }
   0xa   :  { %334 = vmatpush.bf16.msrb.mxu3 %v1558_v6  ;;  %1239 = vmatmul.msk.bf16.vlgmr.msra.gmra.mxu1 %vm101_vm0, %v1333_v9  ;;  %v1640_v23 = vld [vmem:[%s1925_s8] ss:$0 sm:$0xff] }
   0xb   :  { %467 = vmatpush.bf16.msrb.mxu1 %v1578_v12  ;;  %235 = vmatpush.bf16.msra.mxu2 %v1341_v11  ;;  %v1645_v24 = vld [vmem:[%s1927_s9] ss:$0 sm:$0xff] }
   0xc   :  { %423 = vperm.xlu0 %1350, %v421_v16   ;;  %v1660_v30 = vld [vmem:[%s1928_s11] ss:$0 sm:$0xff] }
   0xd   :  { %121 = vmatpush.bf16.msra.mxu0 %v1337_v3  ;;  %v1665_v32 = vld [vmem:[%s1930_s10] ss:$0 sm:$0xff] }
   0xe   :  { %335 = vmatpush.bf16.msrb.mxu3 %v1584_v13  ;;  %1251 = vmatmul.msk.bf16.vlgmr.msra.gmra.mxu2 %vm101_vm0, %v1333_v9  ;;  %v1683_v46 = vld [vmem:[%s1929_s12] ss:$0 sm:$0xff] }
   0xf   :  { %468 = vmatpush.bf16.msrb.mxu1 %v1604_v18  ;;  %550 = vmatpush.bf16.msrb.mxu2 %v1536_v1  ;;  %v1691_v61 = vld [vmem:[%s1931_s13] ss:$0 sm:$0xff] }
  0x10   :  { %1227 = vmatmul.msk.bf16.vlgmr.msra.gmra.mxu0 %vm101_vm0, %v1333_v9 }
  0x11   :  { %454 = vmatpush.bf16.msrb.mxu0 %v1558_v6 }
  0x12   :  { %362 = vmatpush.bf16.msra.mxu3 %v1578_v12 }
  0x13   :  { %659 = vmatpush.bf16.msra.mxu1 %v1536_v1  ;;  %551 = vmatpush.bf16.msrb.mxu2 %v1548_v4 }
  0x14   :  { %532 = vperm.xlu0 %1350, %v530_v19  }
  0x15   :  { %455 = vmatpush.bf16.msrb.mxu0 %v1584_v13 }
  0x16   :  { %363 = vmatpush.bf16.msra.mxu3 %v1604_v18 }
  0x17   :  { %672 = vmatpush.bf16.msra.mxu2 %v1558_v6  ;;  %660 = vmatpush.bf16.msra.mxu1 %v1548_v4 }
  0x19   :  { %576 = vmatpush.bf16.msra.mxu0 %v1578_v12  ;;  %1272 = vmatmul.msk.bf16.vlgmr.msrb.gmra.mxu3 %vm101_vm0, %v281_v10 }
  0x1a   :  { %441 = vmatpush.bf16.msrb.mxu3 %v1536_v1  ;;  %1240 = vmatmul.msk.bf16.gmra.mxu1 %vm101_vm0, %v1334_v22 }
  0x1b   :  { %673 = vmatpush.bf16.msra.mxu2 %v1584_v13 }
  0x1c   :  { %1077 = vperm.xlu0 %1350, %v1075_v21  }
  0x1d   :  { %577 = vmatpush.bf16.msra.mxu0 %v1604_v18 }
  0x1e   :  { %442 = vmatpush.bf16.msrb.mxu3 %v1548_v4  ;;  %1252 = vmatmul.msk.bf16.gmra.mxu2 %vm101_vm0, %v1334_v22 }
  0x20   :  { %1228 = vmatmul.msk.bf16.gmra.mxu0 %vm101_vm0, %v1334_v22 }
  0x29   :  { %1281 = vmatmul.msk.bf16.vlgmr.msra.gmra.mxu3 %vm101_vm0, %v281_v10 }
  0x2a   :  { %563 = vmatpush.bf16.msra.mxu3 %v1558_v6  ;;  %1241 = vmatmul.msk.bf16.gmra.mxu1 %vm101_vm0, %v1335_v25 }
  0x2e   :  { %564 = vmatpush.bf16.msra.mxu3 %v1584_v13  ;;  %1253 = vmatmul.msk.bf16.gmra.mxu2 %vm101_vm0, %v1335_v25 }
  0x30   :  { %1229 = vmatmul.msk.bf16.gmra.mxu0 %vm101_vm0, %v1335_v25 }
  0x3a   :  { %1242 = vmatmul.msk.bf16.gmra.mxu1 %vm101_vm0, %v1336_v44 }
  0x3e   :  { %1254 = vmatmul.msk.bf16.gmra.mxu2 %vm101_vm0, %v1336_v44 }
  0x40   :  { %1230 = vmatmul.msk.bf16.gmra.mxu0 %vm101_vm0, %v1336_v44 }
  0x87   :  { %v180_v28 = vpop.f32.mrf.mxu1 }
  0x88   :  { %v181_v29 = vadd.f32 %v1645_v24, %v180_v28 }
  0x8a   :  { %200 = vst.msk [vmem:[#allocation3] sm:$0xff] %vm101_vm0, %v181_v29 }
  0x8c   :  { %v309_v31 = vpop.f32.mrf.mxu3 }
  0x8d   :  { %v123_v26 = vpop.f32.mrf.mxu0  ;;  %v310_v34 = vadd.f32 %v1660_v30, %v309_v31 }
  0x8e   :  { %v124_v27 = vadd.f32 %v1640_v23, %v123_v26 }
  0x8f   :  { %v182_v36 = vpop.f32.mrf.mxu1 }
  0x90   :  { %143 = vst.msk [vmem:[#allocation2] sm:$0xff] %vm101_vm0, %v124_v27  ;;  %v183_v38 = vadd.f32 %v1645_v24, %v182_v36 }
  0x91   :  { %v237_v39 = vpop.f32.mrf.mxu2  ;;  %v390_v51 = vld [vmem:[#allocation3] sm:$0xff] }
  0x92   :  { %v238_v41 = vadd.f32 %v1665_v32, %v237_v39  ;;  %201 = vst.msk [vmem:[#allocation3 + $0x8] sm:$0xff] %vm101_vm0, %v183_v38 }
  0x94   :  { %257 = vst.msk [vmem:[#allocation4] sm:$0xff] %vm101_vm0, %v238_v41  ;;  %v311_v43 = vpop.f32.mrf.mxu3 }
  0x95   :  { %v125_v33 = vpop.f32.mrf.mxu0 }
  0x96   :  { %v126_v35 = vadd.f32 %v1640_v23, %v125_v33 }
  0x97   :  { %v369_v37 = vld [vmem:[#allocation2] sm:$0xff]  ;;  %v185_v43 = vpop.f32.mrf.mxu1 }
  0x98   :  { %v370_v40 = vadd.f32 %v369_v37, %v310_v34  ;;  %144 = vst.msk [vmem:[#allocation2 + $0x8] sm:$0xff] %vm101_vm0, %v126_v35  ;;  %v424_v35 = vpop.permute.xlu0 %423 }
  0x99   :  { %v239_v45 = vpop.f32.mrf.mxu2  ;;  %vm425_vm12 = vcmp.eq.s32.totalorder %v424_v35, 1 }
  0x9a   :  { %v1282_v42 = vmul.f32 -1.442695, %v370_v40  ;;  %v240_v47 = vadd.f32 %v1665_v32, %v239_v45  ;;  %v186_v45 = vadd.f32 %v1645_v24, %v185_v43 }
  0x9b   :  { %v411_v14 = vld [vmem:[#allocation4] sm:$0xff] }
  0x9c   :  { %1359 = vpow2.f32 %v1282_v42  ;;  %258 = vst.msk [vmem:[#allocation4 + $0x8] sm:$0xff] %vm101_vm0, %v240_v47  ;;  %v337_v50 = vpop.f32.mrf.mxu3 }
  0x9d   :  { %v338_v52 = vadd.f32 %v1683_v46, %v337_v50  ;;  %202 = vst.msk [vmem:[#allocation3 + $0x10] sm:$0xff] %vm101_vm0, %v186_v45 }
  0x9f   :  { %v391_v53 = vadd.f32 %v390_v51, %v338_v52 }
  0xa1   :  { %v1283_v54 = vmul.f32 -1.442695, %v391_v53  ;;  %v242_v35 = vpop.f32.mrf.mxu2 }
  0xa2   :  { %v1360_v48 = vpop.eup %1359 }
  0xa3   :  { %v374_v49 = vadd.f32 1.0, %v1360_v48  ;;  %v187_v48 = vpop.f32.mrf.mxu1 }
  0xa4   :  { %v339_v56 = vpop.f32.mrf.mxu3  ;;  %v188_v50 = vadd.f32 %v1645_v24, %v187_v48 }
  0xa5   :  { %1361 = vrcp.f32 %v374_v49  ;;  %v386_v59 = vand.u32 2147483648, %v374_v49  ;;  %v384_v63 = vand.u32 2147483647, %v374_v49  ;;  %vm380_vm5 = vweird.f32 %v374_v49 }
  0xa6   :  { %1363 = vpow2.f32 %v1283_v54  ;;  %203 = vst.msk [vmem:[#allocation3 + $0x18] sm:$0xff] %vm101_vm0, %v188_v50 }
  0xa7   :  { %v387_v7 = vor.u32 1.1754944e-38, %v386_v59  ;;  %vm385_vm7 = vcmp.eq.f32.partialorder %v384_v63, 8.507059e+37 }
  0xab   :  { %v1362_v55 = vpop.eup %1361  ;;  %v190_v52 = vpop.f32.mrf.mxu1 }
  0xac   :  { %v376_v57 = vmul.f32 %v1362_v55, %v374_v49  ;;  %v1364_v60 = vpop.eup %1363  ;;  %vm381_vm4 = vweird.f32 %v1362_v55  ;;  %v365_v3 = vpop.f32.mrf.mxu3  ;;  %v191_v54 = vadd.f32 %v1645_v24, %v190_v52 }
  0xad   :  { %v395_v0 = vadd.f32 1.0, %v1364_v60  ;;  %vm382_vm6 = vmor %vm380_vm5, %vm381_vm4  ;;  %v366_v8 = vadd.f32 %v1691_v61, %v365_v3 }
  0xae   :  { %v377_v58 = vsub.f32 1.0, %v376_v57  ;;  %204 = vst.msk [vmem:[#allocation3 + $0x20] sm:$0xff] %vm101_vm0, %v191_v54 }
  0xaf   :  { %1365 = vrcp.f32 %v395_v0  ;;  %v407_v22 = vand.u32 2147483648, %v395_v0  ;;  %v405_v26 = vand.u32 2147483647, %v395_v0  ;;  %vm401_vm9 = vweird.f32 %v395_v0 }
  0xb0   :  { %v378_v62 = vmul.f32 %v1362_v55, %v377_v58 }
  0xb1   :  { %v408_v28 = vor.u32 1.1754944e-38, %v407_v22  ;;  %vm406_vm11 = vcmp.eq.f32.partialorder %v405_v26, 8.507059e+37 }
  0xb2   :  { %v379_v2 = vadd.f32 %v1362_v55, %v378_v62 }
  0xb3   :  { %v192_v56 = vpop.f32.mrf.mxu1 }
  0xb4   :  { %v383_v9 = vsel %vm382_vm6, %v1362_v55, %v379_v2  ;;  %v367_v20 = vpop.f32.mrf.mxu3  ;;  %v193_v58 = vadd.f32 %v1645_v24, %v192_v56 }
  0xb5   :  { %v388_v10 = vsel %vm385_vm7, %v387_v7, %v383_v9  ;;  %v1366_v16 = vpop.eup %1365  ;;  %v475_v20 = vld [vmem:[#allocation2 + $0x8] sm:$0xff] }
  0xb6   :  { %v412_v11 = vmul.f32 %v388_v10, %v366_v8  ;;  %v397_v17 = vmul.f32 %v1366_v16, %v395_v0  ;;  %vm402_vm8 = vweird.f32 %v1366_v16  ;;  %205 = vst.msk [vmem:[#allocation3 + $0x28] sm:$0xff] %vm101_vm0, %v193_v58 }
  0xb7   :  { %vm403_vm10 = vmor %vm401_vm9, %vm402_vm8 }
  0xb8   :  { %v413_v19 = vadd.f32 %v412_v11, %v411_v14  ;;  %v398_v21 = vsub.f32 1.0, %v397_v17  ;;  %v497_v11 = vld [vmem:[#allocation3 + $0x8] sm:$0xff] }
  0xba   :  { %v399_v25 = vmul.f32 %v1366_v16, %v398_v21  ;;  %1367 = vtanh.f32 %v413_v19 }
  0xbb   :  { %v195_v60 = vpop.f32.mrf.mxu1 }
  0xbc   :  { %v400_v27 = vadd.f32 %v1366_v16, %v399_v25  ;;  %v196_v63 = vadd.f32 %v1645_v24, %v195_v60 }
  0xbe   :  { %v404_v29 = vsel %vm403_vm10, %v1366_v16, %v400_v27  ;;  %206 = vst.msk [vmem:[#allocation3 + $0x30] sm:$0xff] %vm101_vm0, %v196_v63 }
  0xbf   :  { %v409_v31 = vsel %vm406_vm11, %v408_v28, %v404_v29 }
  0xc0   :  { %v415_v33 = vsub.f32 1.0, %v409_v31  ;;  %v1368_v34 = vpop.eup %1367  ;;  %v417_v37 = vmul.f32 %v409_v31, %v1553_v5 }
  0xc2   :  { %v416_v36 = vmul.f32 %v1368_v34, %v415_v33  ;;  %v1296_v34 = vld [vmem:[%s1926_s1 + $0x10] sm:$0xff] }
  0xc3   :  { %v197_v2 = vpop.f32.mrf.mxu1  ;;  %vm638_vm14 = vcmp.gt.f32.partialorder %v1296_v34, 0.0 }
  0xc4   :  { %v418_v38 = vadd.f32 %v417_v37, %v416_v36  ;;  %v198_v7 = vadd.f32 %v1645_v24, %v197_v2  ;;  %v639_v37 = vsel %vm638_vm14, 1, %v1444_v15 }
  0xc5   :  { %641 = vperm.xlu1 %1351, %v639_v37   ;;  %v606_v37 = vld [vmem:[#allocation3 + $0x10] sm:$0xff] }
  0xc6   :  { %v426_v39 = vsel %vm425_vm12, %v418_v38, 0.0  ;;  %v1696_v40 = vsel %vm425_vm12, %v418_v38, %v1553_v5  ;;  %v128_v5 = vpop.f32.mrf.mxu0  ;;  %207 = vst.msk [vmem:[#allocation3 + $0x38] sm:$0xff] %vm101_vm0, %v198_v7  ;;  %v1303_v38 = vld [vmem:[%s1926_s1 + $0x18] sm:$0xff] }
  0xc7   :  { %v427_v41 = vpack.c.bf16 %v426_v39, %v426_v39  ;;  %v431_v42 = vpack.c.bf16 %v1696_v40, %v1696_v40  ;;  %v129_v44 = vadd.f32 %v1640_v23, %v128_v5  ;;  %v243_v39 = vadd.f32 %v1665_v32, %v242_v35 }
  0xc8   :  { %vm747_vm15 = vcmp.gt.f32.partialorder %v1303_v38, 0.0 }
  0xc9   :  { %429 = vst.msk [vmem:[%s1932_s15] sm:$0xf] %vm428_vm13, %v427_v41  ;;  %1284 = vmatmul.msk.bf16.vlgmr.msrb.gmra.mxu3 %vm101_vm0, %v431_v42  ;;  %1285 = vmatmul.msk.bf16.vlgmr.msrb.gmra.mxu0 %vm101_vm0, %v431_v42  ;;  %v748_v48 = vsel %vm747_vm15, 1, %v1444_v15 }
  0xca   :  { %1286 = vmatmul.msk.bf16.vlgmr.msrb.gmra.mxu1 %vm101_vm0, %v431_v42  ;;  %685 = vmatpush.bf16.msrb.mxu3 %v1578_v12  ;;  %145 = vst.msk [vmem:[#allocation2 + $0x10] sm:$0xff] %vm101_vm0, %v129_v44 }
  0xcb   :  { %768 = vmatpush.bf16.msrb.mxu0 %v1536_v1  ;;  %781 = vmatpush.bf16.msrb.mxu1 %v1558_v6  ;;  %259 = vst.msk [vmem:[#allocation4 + $0x10] sm:$0xff] %vm101_vm0, %v243_v39 }
  0xcd   :  { %750 = vperm.xlu1 %1351, %v748_v48  }
  0xce   :  { %686 = vmatpush.bf16.msrb.mxu3 %v1604_v18  ;;  %v130_v47 = vpop.f32.mrf.mxu0 }
  0xcf   :  { %769 = vmatpush.bf16.msrb.mxu0 %v1548_v4  ;;  %782 = vmatpush.bf16.msrb.mxu1 %v1584_v13  ;;  %v131_v49 = vadd.f32 %v1640_v23, %v130_v47 }
  0xd1   :  { %146 = vst.msk [vmem:[#allocation2 + $0x18] sm:$0xff] %vm101_vm0, %v131_v49  ;;  %v244_v49 = vpop.f32.mrf.mxu2 }
  0xd6   :  { %v133_v51 = vpop.f32.mrf.mxu0 }
  0xd7   :  { %v134_v53 = vadd.f32 %v1640_v23, %v133_v51  ;;  %v245_v51 = vadd.f32 %v1665_v32, %v244_v49 }
  0xd9   :  { %147 = vst.msk [vmem:[#allocation2 + $0x20] sm:$0xff] %vm101_vm0, %v134_v53  ;;  %v1331_v53 = vld [vmem:[%s1926_s1 + $0x38] sm:$0xff] }
  0xda   :  { %260 = vst.msk [vmem:[#allocation4 + $0x18] sm:$0xff] %vm101_vm0, %v245_v51  ;;  %vm1183_vm6 = vcmp.gt.f32.partialorder %v1331_v53, 0.0 }
  0xdb   :  { %v1184_v2 = vsel %vm1183_vm6, 1, %v1444_v15 }
  0xdc   :  { %1186 = vperm.xlu1 %1351, %v1184_v2  }
  0xde   :  { %v135_v55 = vpop.f32.mrf.mxu0 }
  0xdf   :  { %v136_v57 = vadd.f32 %v1640_v23, %v135_v55 }
  0xe1   :  { %148 = vst.msk [vmem:[#allocation2 + $0x28] sm:$0xff] %vm101_vm0, %v136_v57 }
  0xe6   :  { %v138_v59 = vpop.f32.mrf.mxu0 }
  0xe7   :  { %v139_v62 = vadd.f32 %v1640_v23, %v138_v59 }
  0xe9   :  { %149 = vst.msk [vmem:[#allocation2 + $0x30] sm:$0xff] %vm101_vm0, %v139_v62  ;;  %v519_v62 = vld [vmem:[#allocation4 + $0x8] sm:$0xff] }
  0xee   :  { %v140_v0 = vpop.f32.mrf.mxu0 }
  0xef   :  { %v141_v3 = vadd.f32 %v1640_v23, %v140_v0 }
  0xf1   :  { %150 = vst.msk [vmem:[#allocation2 + $0x38] sm:$0xff] %vm101_vm0, %v141_v3  ;;  %v247_v3 = vpop.f32.mrf.mxu2 }
 0x146   :  { %v457_v8 = vpop.f32.mrf.mxu0 }
 0x147   :  { %v458_v9 = vadd.f32 %v1683_v46, %v457_v8  ;;  %v470_v10 = vpop.f32.mrf.mxu1  ;;  %v248_v8 = vadd.f32 %v1665_v32, %v247_v3 }
 0x148   :  { %v471_v54 = vadd.f32 %v1691_v61, %v470_v10 }
 0x149   :  { %v498_v14 = vadd.f32 %v497_v11, %v458_v9  ;;  %261 = vst.msk [vmem:[#allocation4 + $0x20] sm:$0xff] %vm101_vm0, %v248_v8 }
 0x14b   :  { %v1288_v16 = vmul.f32 -1.442695, %v498_v14 }
 0x14c   :  { %v444_v17 = vpop.f32.mrf.mxu3 }
 0x14d   :  { %1369 = vpow2.f32 %v1288_v16  ;;  %v445_v19 = vadd.f32 %v1660_v30, %v444_v17  ;;  %v249_v17 = vpop.f32.mrf.mxu2 }
 0x14e   :  { %v459_v21 = vpop.f32.mrf.mxu0 }
 0x14f   :  { %v476_v23 = vadd.f32 %v475_v20, %v445_v19  ;;  %v472_v22 = vpop.f32.mrf.mxu1  ;;  %v250_v19 = vadd.f32 %v1665_v32, %v249_v17  ;;  %v533_v20 = vpop.permute.xlu0 %532 }
 0x150   :  { %vm534_vm10 = vcmp.eq.s32.totalorder %v533_v20, 1  ;;  %v642_v20 = vpop.permute.xlu1 %641 }
 0x151   :  { %v1287_v24 = vmul.f32 -1.442695, %v476_v23  ;;  %262 = vst.msk [vmem:[#allocation4 + $0x28] sm:$0xff] %vm101_vm0, %v250_v19 }
 0x153   :  { %v1370_v25 = vpop.eup %1369  ;;  %1371 = vpow2.f32 %v1287_v24 }
 0x154   :  { %v502_v26 = vadd.f32 1.0, %v1370_v25  ;;  %v446_v27 = vpop.f32.mrf.mxu3 }
 0x156   :  { %1373 = vrcp.f32 %v502_v26  ;;  %v514_v58 = vand.u32 2147483648, %v502_v26  ;;  %vm508_vm7 = vweird.f32 %v502_v26  ;;  %v512_v60 = vand.u32 2147483647, %v502_v26 }
 0x158   :  { %v515_v7 = vor.u32 1.1754944e-38, %v514_v58  ;;  %vm513_vm9 = vcmp.eq.f32.partialorder %v512_v60, 8.507059e+37 }
 0x159   :  { %v1372_v28 = vpop.eup %1371 }
 0x15a   :  { %v480_v29 = vadd.f32 1.0, %v1372_v28 }
 0x15c   :  { %1375 = vrcp.f32 %v480_v29  ;;  %v1374_v31 = vpop.eup %1373  ;;  %v492_v43 = vand.u32 2147483648, %v480_v29  ;;  %v490_v45 = vand.u32 2147483647, %v480_v29  ;;  %vm486_vm2 = vweird.f32 %v480_v29 }
 0x15d   :  { %v504_v33 = vmul.f32 %v1374_v31, %v502_v26  ;;  %vm509_vm5 = vweird.f32 %v1374_v31  ;;  %v252_v26 = vpop.f32.mrf.mxu2 }
 0x15e   :  { %v493_v52 = vor.u32 1.1754944e-38, %v492_v43  ;;  %vm491_vm4 = vcmp.eq.f32.partialorder %v490_v45, 8.507059e+37  ;;  %vm510_vm8 = vmor %vm508_vm7, %vm509_vm5  ;;  %vm643_vm5 = vcmp.eq.s32.totalorder %v642_v20, 1 }
 0x15f   :  { %v505_v42 = vsub.f32 1.0, %v504_v33 }
 0x161   :  { %v506_v47 = vmul.f32 %v1374_v31, %v505_v42 }
 0x162   :  { %v1376_v36 = vpop.eup %1375 }
 0x163   :  { %v482_v41 = vmul.f32 %v1376_v36, %v480_v29  ;;  %vm487_vm1 = vweird.f32 %v1376_v36  ;;  %v507_v56 = vadd.f32 %v1374_v31, %v506_v47 }
 0x164   :  { %vm488_vm3 = vmor %vm486_vm2, %vm487_vm1 }
 0x165   :  { %v483_v5 = vsub.f32 1.0, %v482_v41  ;;  %v511_v0 = vsel %vm510_vm8, %v1374_v31, %v507_v56  ;;  %v254_v27 = vpop.f32.mrf.mxu2 }
 0x166   :  { %v516_v9 = vsel %vm513_vm9, %v515_v7, %v511_v0  ;;  %v255_v28 = vadd.f32 %v1665_v32, %v254_v27 }
 0x167   :  { %v484_v44 = vmul.f32 %v1376_v36, %v483_v5  ;;  %v523_v10 = vsub.f32 1.0, %v516_v9  ;;  %v525_v16 = vmul.f32 %v516_v9, %v1696_v40  ;;  %v628_v9 = vld [vmem:[#allocation4 + $0x10] sm:$0xff] }
 0x168   :  { %264 = vst.msk [vmem:[#allocation4 + $0x38] sm:$0xff] %vm101_vm0, %v255_v28 }
 0x169   :  { %v485_v50 = vadd.f32 %v1376_v36, %v484_v44 }
 0x16b   :  { %v489_v55 = vsel %vm488_vm3, %v1376_v36, %v485_v50  ;;  %v584_v36 = vld [vmem:[#allocation2 + $0x10] sm:$0xff] }
 0x16c   :  { %v494_v57 = vsel %vm491_vm4, %v493_v52, %v489_v55 }
 0x16d   :  { %v520_v59 = vmul.f32 %v494_v57, %v471_v54 }
 0x16f   :  { %v521_v63 = vadd.f32 %v520_v59, %v519_v62 }
 0x171   :  { %1377 = vtanh.f32 %v521_v63 }
 0x177   :  { %v1378_v11 = vpop.eup %1377 }
 0x178   :  { %v524_v14 = vmul.f32 %v1378_v11, %v523_v10 }
 0x17a   :  { %v526_v21 = vadd.f32 %v525_v16, %v524_v14 }
 0x17c   :  { %v535_v23 = vsel %vm534_vm10, %v526_v21, 0.0  ;;  %v1762_v22 = vsel %vm534_vm10, %v526_v21, %v1696_v40  ;;  %v253_v40 = vadd.f32 %v1665_v32, %v252_v26 }
 0x17d   :  { %v536_v24 = vpack.c.bf16 %v535_v23, %v535_v23  ;;  %v540_v25 = vpack.c.bf16 %v1762_v22, %v1762_v22 }
 0x17e   :  { %263 = vst.msk [vmem:[#allocation4 + $0x30] sm:$0xff] %vm101_vm0, %v253_v40 }
 0x17f   :  { %1290 = vst.msk [vmem:[%s1932_s15 + $0x4] sm:$0xf] %vm428_vm13, %v536_v24  ;;  %1291 = vmatmul.msk.bf16.vlgmr.msrb.gmra.mxu2 %vm101_vm0, %v540_v25  ;;  %1292 = vmatmul.msk.bf16.vlgmr.msra.gmra.mxu3 %vm101_vm0, %v540_v25 }
 0x180   :  { %1293 = vmatmul.msk.bf16.vlgmr.msra.gmra.mxu0 %vm101_vm0, %v540_v25  ;;  %794 = vmatpush.bf16.msrb.mxu2 %v1578_v12 }
 0x181   :  { %877 = vmatpush.bf16.msra.mxu3 %v1536_v1  ;;  %890 = vmatpush.bf16.msra.mxu0 %v1558_v6 }
 0x184   :  { %795 = vmatpush.bf16.msrb.mxu2 %v1604_v18 }
 0x185   :  { %878 = vmatpush.bf16.msra.mxu3 %v1548_v4  ;;  %891 = vmatpush.bf16.msra.mxu0 %v1584_v13 }
 0x1fd   :  { %v579_v29 = vpop.f32.mrf.mxu0 }
 0x1fe   :  { %v580_v62 = vadd.f32 %v1691_v61, %v579_v29  ;;  %v693_v29 = vld [vmem:[#allocation2 + $0x18] sm:$0xff] }
 0x202   :  { %v553_v31 = vpop.f32.mrf.mxu2  ;;  %v566_v33 = vpop.f32.mrf.mxu3 }
 0x203   :  { %v554_v34 = vadd.f32 %v1660_v30, %v553_v31  ;;  %v567_v35 = vadd.f32 %v1683_v46, %v566_v33 }
 0x205   :  { %v585_v38 = vadd.f32 %v584_v36, %v554_v34  ;;  %v607_v39 = vadd.f32 %v606_v37, %v567_v35  ;;  %v581_v41 = vpop.f32.mrf.mxu0  ;;  %v715_v37 = vld [vmem:[#allocation3 + $0x18] sm:$0xff] }
 0x207   :  { %v1294_v42 = vmul.f32 -1.442695, %v585_v38  ;;  %v1295_v5 = vmul.f32 -1.442695, %v607_v39 }
 0x209   :  { %1379 = vpow2.f32 %v1294_v42 }
 0x20a   :  { %1381 = vpow2.f32 %v1295_v5  ;;  %v555_v43 = vpop.f32.mrf.mxu2  ;;  %v568_v32 = vpop.f32.mrf.mxu3 }
 0x20f   :  { %v1380_v44 = vpop.eup %1379 }
 0x210   :  { %v1382_v45 = vpop.eup %1381  ;;  %v589_v47 = vadd.f32 1.0, %v1380_v44 }
 0x211   :  { %v611_v48 = vadd.f32 1.0, %v1382_v45 }
 0x212   :  { %1383 = vrcp.f32 %v589_v47  ;;  %v601_v54 = vand.u32 2147483648, %v589_v47  ;;  %v599_v57 = vand.u32 2147483647, %v589_v47  ;;  %vm595_vm12 = vweird.f32 %v589_v47 }
 0x213   :  { %1385 = vrcp.f32 %v611_v48  ;;  %v623_v3 = vand.u32 2147483648, %v611_v48  ;;  %vm617_vm2 = vweird.f32 %v611_v48  ;;  %v621_v8 = vand.u32 2147483647, %v611_v48 }
 0x214   :  { %v602_v60 = vor.u32 1.1754944e-38, %v601_v54  ;;  %vm600_vm15 = vcmp.eq.f32.partialorder %v599_v57, 8.507059e+37 }
 0x215   :  { %v624_v14 = vor.u32 1.1754944e-38, %v623_v3  ;;  %vm622_vm4 = vcmp.eq.f32.partialorder %v621_v8, 8.507059e+37 }
 0x218   :  { %v1384_v49 = vpop.eup %1383 }
 0x219   :  { %v1386_v50 = vpop.eup %1385  ;;  %v591_v51 = vmul.f32 %v1384_v49, %v589_v47  ;;  %vm596_vm11 = vweird.f32 %v1384_v49  ;;  %v1310_v47 = vld [vmem:[%s1926_s1 + $0x20] sm:$0xff] }
 0x21a   :  { %v613_v52 = vmul.f32 %v1386_v50, %v611_v48  ;;  %vm597_vm14 = vmor %vm595_vm12, %vm596_vm11  ;;  %vm618_vm1 = vweird.f32 %v1386_v50  ;;  %vm856_vm6 = vcmp.gt.f32.partialorder %v1310_v47, 0.0 }
 0x21b   :  { %v592_v53 = vsub.f32 1.0, %v591_v51  ;;  %vm619_vm3 = vmor %vm617_vm2, %vm618_vm1  ;;  %v1317_v51 = vld [vmem:[%s1926_s1 + $0x28] sm:$0xff] }
 0x21c   :  { %v614_v55 = vsub.f32 1.0, %v613_v52  ;;  %vm965_vm7 = vcmp.gt.f32.partialorder %v1317_v51, 0.0 }
 0x21d   :  { %v593_v56 = vmul.f32 %v1384_v49, %v592_v53 }
 0x21e   :  { %v615_v58 = vmul.f32 %v1386_v50, %v614_v55 }
 0x21f   :  { %v594_v59 = vadd.f32 %v1384_v49, %v593_v56 }
 0x220   :  { %v616_v2 = vadd.f32 %v1386_v50, %v615_v58 }
 0x221   :  { %v598_v63 = vsel %vm597_vm14, %v1384_v49, %v594_v59  ;;  %v966_v59 = vsel %vm965_vm7, 1, %v1444_v15 }
 0x222   :  { %v603_v0 = vsel %vm600_vm15, %v602_v60, %v598_v63  ;;  %v620_v11 = vsel %vm619_vm3, %v1386_v50, %v616_v2  ;;  %v857_v50 = vsel %vm856_vm6, 1, %v1444_v15 }
 0x223   :  { %v629_v7 = vmul.f32 %v603_v0, %v580_v62  ;;  %v625_v16 = vsel %vm622_vm4, %v624_v14, %v620_v11  ;;  %859 = vperm.xlu2 %1352, %v857_v50  }
 0x224   :  { %v632_v17 = vsub.f32 1.0, %v625_v16  ;;  %v634_v23 = vmul.f32 %v625_v16, %v1762_v22 }
 0x225   :  { %v630_v10 = vadd.f32 %v629_v7, %v628_v9 }
 0x227   :  { %1387 = vtanh.f32 %v630_v10  ;;  %v737_v10 = vld [vmem:[#allocation4 + $0x18] sm:$0xff] }
 0x22b   :  { %968 = vperm.xlu2 %1352, %v966_v59  }
 0x22d   :  { %v1388_v19 = vpop.eup %1387 }
 0x22e   :  { %v633_v21 = vmul.f32 %v1388_v19, %v632_v17 }
 0x230   :  { %v635_v24 = vadd.f32 %v634_v23, %v633_v21 }
 0x232   :  { %v644_v25 = vsel %vm643_vm5, %v635_v24, 0.0  ;;  %v1788_v26 = vsel %vm643_vm5, %v635_v24, %v1762_v22  ;;  %v751_v24 = vpop.permute.xlu1 %750 }
 0x233   :  { %v645_v40 = vpack.c.bf16 %v644_v25, %v644_v25  ;;  %v649_v27 = vpack.c.bf16 %v1788_v26, %v1788_v26  ;;  %vm752_vm2 = vcmp.eq.s32.totalorder %v751_v24, 1 }
 0x235   :  { %1297 = vst.msk [vmem:[%s1932_s15 + $0x8] sm:$0xf] %vm428_vm13, %v645_v40  ;;  %1298 = vmatmul.msk.bf16.vlgmr.msra.gmra.mxu1 %vm101_vm0, %v649_v27  ;;  %1299 = vmatmul.msk.bf16.vlgmr.msra.gmra.mxu2 %vm101_vm0, %v649_v27 }
 0x236   :  { %1300 = vmatmul.msk.bf16.vlgmr.msrb.gmra.mxu3 %vm101_vm0, %v649_v27  ;;  %903 = vmatpush.bf16.msra.mxu1 %v1578_v12 }
 0x237   :  { %986 = vmatpush.bf16.msra.mxu2 %v1536_v1  ;;  %999 = vmatpush.bf16.msrb.mxu3 %v1558_v6 }
 0x23a   :  { %904 = vmatpush.bf16.msra.mxu1 %v1604_v18 }
 0x23b   :  { %987 = vmatpush.bf16.msra.mxu2 %v1548_v4  ;;  %1000 = vmatpush.bf16.msrb.mxu3 %v1584_v13 }
 0x2b2   :  { %v662_v22 = vpop.f32.mrf.mxu1 }
 0x2b3   :  { %v663_v28 = vadd.f32 %v1660_v30, %v662_v22 }
 0x2b5   :  { %v694_v31 = vadd.f32 %v693_v29, %v663_v28 }
 0x2b7   :  { %v1301_v33 = vmul.f32 -1.442695, %v694_v31 }
 0x2b8   :  { %v675_v34 = vpop.f32.mrf.mxu2 }
 0x2b9   :  { %1389 = vpow2.f32 %v1301_v33  ;;  %v676_v35 = vadd.f32 %v1683_v46, %v675_v34  ;;  %v688_v36 = vpop.f32.mrf.mxu3  ;;  %v802_v34 = vld [vmem:[#allocation2 + $0x20] sm:$0xff] }
 0x2ba   :  { %v664_v38 = vpop.f32.mrf.mxu1  ;;  %v689_v63 = vadd.f32 %v1691_v61, %v688_v36 }
 0x2bb   :  { %v716_v39 = vadd.f32 %v715_v37, %v676_v35  ;;  %v824_v35 = vld [vmem:[#allocation3 + $0x20] sm:$0xff] }
 0x2bd   :  { %v1302_v41 = vmul.f32 -1.442695, %v716_v39 }
 0x2bf   :  { %v1390_v42 = vpop.eup %1389  ;;  %1391 = vpow2.f32 %v1302_v41 }
 0x2c0   :  { %v698_v5 = vadd.f32 1.0, %v1390_v42  ;;  %v677_v43 = vpop.f32.mrf.mxu2 }
 0x2c1   :  { %v690_v32 = vpop.f32.mrf.mxu3 }
 0x2c2   :  { %1393 = vrcp.f32 %v698_v5  ;;  %v710_v53 = vand.u32 2147483648, %v698_v5  ;;  %v708_v55 = vand.u32 2147483647, %v698_v5  ;;  %vm704_vm9 = vweird.f32 %v698_v5 }
 0x2c4   :  { %v711_v60 = vor.u32 1.1754944e-38, %v710_v53  ;;  %vm709_vm11 = vcmp.eq.f32.partialorder %v708_v55, 8.507059e+37 }
 0x2c5   :  { %v1392_v44 = vpop.eup %1391 }
 0x2c6   :  { %v720_v45 = vadd.f32 1.0, %v1392_v44 }
 0x2c8   :  { %v1394_v48 = vpop.eup %1393  ;;  %1395 = vrcp.f32 %v720_v45  ;;  %v732_v7 = vand.u32 2147483648, %v720_v45  ;;  %v730_v9 = vand.u32 2147483647, %v720_v45  ;;  %vm726_vm14 = vweird.f32 %v720_v45 }
 0x2c9   :  { %v700_v49 = vmul.f32 %v1394_v48, %v698_v5  ;;  %vm705_vm8 = vweird.f32 %v1394_v48 }
 0x2ca   :  { %vm706_vm10 = vmor %vm704_vm9, %vm705_vm8  ;;  %v733_v15 = vor.u32 1.1754944e-38, %v732_v7  ;;  %vm731_vm1 = vcmp.eq.f32.partialorder %v730_v9, 8.507059e+37  ;;  %v860_v9 = vpop.permute.xlu2 %859 }
 0x2cb   :  { %v701_v52 = vsub.f32 1.0, %v700_v49 }
 0x2cd   :  { %v702_v54 = vmul.f32 %v1394_v48, %v701_v52 }
 0x2ce   :  { %v1396_v56 = vpop.eup %1395 }
 0x2cf   :  { %v722_v57 = vmul.f32 %v1396_v56, %v720_v45  ;;  %v703_v58 = vadd.f32 %v1394_v48, %v702_v54  ;;  %vm727_vm12 = vweird.f32 %v1396_v56 }
 0x2d0   :  { %vm728_vm15 = vmor %vm726_vm14, %vm727_vm12 }
 0x2d1   :  { %v723_v62 = vsub.f32 1.0, %v722_v57  ;;  %v707_v0 = vsel %vm706_vm10, %v1394_v48, %v703_v58 }
 0x2d2   :  { %v712_v2 = vsel %vm709_vm11, %v711_v60, %v707_v0  ;;  %v846_v60 = vld [vmem:[#allocation4 + $0x20] sm:$0xff]  ;;  %vm861_vm11 = vcmp.eq.s32.totalorder %v860_v9, 1 }
 0x2d3   :  { %v724_v3 = vmul.f32 %v1396_v56, %v723_v62  ;;  %v738_v8 = vmul.f32 %v712_v2, %v689_v63 }
 0x2d5   :  { %v725_v11 = vadd.f32 %v1396_v56, %v724_v3  ;;  %v739_v14 = vadd.f32 %v738_v8, %v737_v10 }
 0x2d7   :  { %v729_v16 = vsel %vm728_vm15, %v1396_v56, %v725_v11  ;;  %1397 = vtanh.f32 %v739_v14 }
 0x2d8   :  { %v734_v17 = vsel %vm731_vm1, %v733_v15, %v729_v16 }
 0x2d9   :  { %v741_v19 = vsub.f32 1.0, %v734_v17  ;;  %v743_v23 = vmul.f32 %v734_v17, %v1788_v26 }
 0x2dd   :  { %v1398_v20 = vpop.eup %1397 }
 0x2de   :  { %v742_v21 = vmul.f32 %v1398_v20, %v741_v19  ;;  %v1439_v20 = vld [vmem:[%s1924_s7 + $0x8] sm:$0xff] }
 0x2e0   :  { %v744_v25 = vadd.f32 %v743_v23, %v742_v21  ;;  %v1440_v21 = vld [vmem:[%s1924_s7] sm:$0xff] }
 0x2e2   :  { %v753_v40 = vsel %vm752_vm2, %v744_v25, 0.0  ;;  %v1818_v27 = vsel %vm752_vm2, %v744_v25, %v1788_v26 }
 0x2e3   :  { %v754_v22 = vpack.c.bf16 %v753_v40, %v753_v40  ;;  %v758_v28 = vpack.c.bf16 %v1818_v27, %v1818_v27  ;;  %v933_v40 = vld [vmem:[#allocation3 + $0x28] sm:$0xff] }
 0x2e5   :  { %1304 = vst.msk [vmem:[%s1932_s15 + $0xc] sm:$0xf] %vm428_vm13, %v754_v22  ;;  %1305 = vmatmul.msk.bf16.vlgmr.msrb.gmra.mxu0 %vm101_vm0, %v758_v28  ;;  %1306 = vmatmul.msk.bf16.vlgmr.msrb.gmra.mxu1 %vm101_vm0, %v758_v28 }
 0x2e6   :  { %1307 = vmatmul.msk.bf16.vlgmr.msrb.gmra.mxu2 %vm101_vm0, %v758_v28  ;;  %1012 = vmatpush.bf16.msrb.mxu0 %v1578_v12 }
 0x2e7   :  { %1095 = vmatpush.bf16.msrb.mxu1 %v1536_v1  ;;  %1108 = vmatpush.bf16.msrb.mxu2 %v1558_v6 }
 0x2ea   :  { %1013 = vmatpush.bf16.msrb.mxu0 %v1604_v18 }
 0x2eb   :  { %1096 = vmatpush.bf16.msrb.mxu1 %v1548_v4  ;;  %1109 = vmatpush.bf16.msrb.mxu2 %v1584_v13 }
 0x362   :  { %v771_v26 = vpop.f32.mrf.mxu0  ;;  %v784_v29 = vpop.f32.mrf.mxu1 }
 0x363   :  { %v772_v31 = vadd.f32 %v1660_v30, %v771_v26  ;;  %v785_v33 = vadd.f32 %v1683_v46, %v784_v29  ;;  %v911_v29 = vld [vmem:[#allocation2 + $0x28] sm:$0xff] }
 0x365   :  { %v803_v36 = vadd.f32 %v802_v34, %v772_v31  ;;  %v825_v12 = vadd.f32 %v824_v35, %v785_v33 }
 0x367   :  { %v1308_v37 = vmul.f32 -1.442695, %v803_v36  ;;  %v1309_v1 = vmul.f32 -1.442695, %v825_v12 }
 0x369   :  { %1399 = vpow2.f32 %v1308_v37  ;;  %v797_v6 = vpop.f32.mrf.mxu2 }
 0x36a   :  { %1401 = vpow2.f32 %v1309_v1  ;;  %v773_v18 = vpop.f32.mrf.mxu0  ;;  %v786_v38 = vpop.f32.mrf.mxu1  ;;  %v798_v54 = vadd.f32 %v1691_v61, %v797_v6 }
 0x36f   :  { %v1400_v4 = vpop.eup %1399 }
 0x370   :  { %v1402_v39 = vpop.eup %1401  ;;  %v807_v13 = vadd.f32 1.0, %v1400_v4 }
 0x371   :  { %v829_v41 = vadd.f32 1.0, %v1402_v39  ;;  %v799_v42 = vpop.f32.mrf.mxu2 }
 0x372   :  { %1403 = vrcp.f32 %v807_v13  ;;  %v819_v47 = vand.u32 2147483648, %v807_v13  ;;  %v817_v50 = vand.u32 2147483647, %v807_v13  ;;  %vm813_vm4 = vweird.f32 %v807_v13 }
 0x373   :  { %1405 = vrcp.f32 %v829_v41  ;;  %v841_v59 = vand.u32 2147483648, %v829_v41  ;;  %vm835_vm8 = vweird.f32 %v829_v41  ;;  %v839_v62 = vand.u32 2147483647, %v829_v41 }
 0x374   :  { %v820_v53 = vor.u32 1.1754944e-38, %v819_v47  ;;  %vm818_vm6 = vcmp.eq.f32.partialorder %v817_v50, 8.507059e+37 }
 0x375   :  { %v842_v2 = vor.u32 1.1754944e-38, %v841_v59  ;;  %vm840_vm10 = vcmp.eq.f32.partialorder %v839_v62, 8.507059e+37 }
 0x378   :  { %v1404_v5 = vpop.eup %1403 }
 0x379   :  { %v1406_v43 = vpop.eup %1405  ;;  %v809_v32 = vmul.f32 %v1404_v5, %v807_v13  ;;  %vm814_vm3 = vweird.f32 %v1404_v5 }
 0x37a   :  { %v831_v44 = vmul.f32 %v1406_v43, %v829_v41  ;;  %vm815_vm5 = vmor %vm813_vm4, %vm814_vm3  ;;  %vm836_vm7 = vweird.f32 %v1406_v43 }
 0x37b   :  { %v810_v45 = vsub.f32 1.0, %v809_v32  ;;  %vm837_vm9 = vmor %vm835_vm8, %vm836_vm7 }
 0x37c   :  { %v832_v48 = vsub.f32 1.0, %v831_v44 }
 0x37d   :  { %v811_v49 = vmul.f32 %v1404_v5, %v810_v45 }
 0x37e   :  { %v833_v51 = vmul.f32 %v1406_v43, %v832_v48 }
 0x37f   :  { %v812_v52 = vadd.f32 %v1404_v5, %v811_v49 }
 0x380   :  { %v834_v57 = vadd.f32 %v1406_v43, %v833_v51 }
 0x381   :  { %v816_v55 = vsel %vm815_vm5, %v1404_v5, %v812_v52  ;;  %v955_v52 = vld [vmem:[#allocation4 + $0x28] sm:$0xff] }
 0x382   :  { %v821_v56 = vsel %vm818_vm6, %v820_v53, %v816_v55  ;;  %v838_v0 = vsel %vm837_vm9, %v1406_v43, %v834_v57 }
 0x383   :  { %v847_v58 = vmul.f32 %v821_v56, %v798_v54  ;;  %v843_v3 = vsel %vm840_vm10, %v842_v2, %v838_v0 }
 0x384   :  { %v850_v7 = vsub.f32 1.0, %v843_v3  ;;  %v852_v11 = vmul.f32 %v843_v3, %v1818_v27 }
 0x385   :  { %v848_v63 = vadd.f32 %v847_v58, %v846_v60 }
 0x387   :  { %1407 = vtanh.f32 %v848_v63 }
 0x38d   :  { %v1408_v8 = vpop.eup %1407 }
 0x38e   :  { %v851_v10 = vmul.f32 %v1408_v8, %v850_v7 }
 0x390   :  { %v853_v14 = vadd.f32 %v852_v11, %v851_v10  ;;  %v1876_v10 = vld [vmem:[%s1928_s11] ss:$0 sm:$0xff] }
 0x392   :  { %v862_v15 = vsel %vm861_vm11, %v853_v14, 0.0  ;;  %v1840_v16 = vsel %vm861_vm11, %v853_v14, %v1818_v27  ;;  %v1882_v14 = vld [vmem:[%s1929_s12] ss:$0 sm:$0xff] }
 0x393   :  { %v863_v17 = vpack.c.bf16 %v862_v15, %v862_v15  ;;  %v867_v19 = vpack.c.bf16 %v1840_v16, %v1840_v16 }
 0x395   :  { %1311 = vst.msk [vmem:[%s1932_s15 + $0x10] sm:$0xf] %vm428_vm13, %v863_v17  ;;  %1312 = vmatmul.msk.bf16.vlgmr.msra.gmra.mxu3 %vm101_vm0, %v867_v19  ;;  %1313 = vmatmul.msk.bf16.vlgmr.msra.gmra.mxu0 %vm101_vm0, %v867_v19  ;;  %v1042_v17 = vld [vmem:[#allocation3 + $0x30] sm:$0xff] }
 0x396   :  { %1314 = vmatmul.msk.bf16.vlgmr.msra.gmra.mxu1 %vm101_vm0, %v867_v19  ;;  %1121 = vmatpush.bf16.msra.mxu3 %v1439_v20 }
 0x39a   :  { %1122 = vmatpush.bf16.msra.mxu3 %v1440_v21 }
 0x412   :  { %v893_v23 = vpop.f32.mrf.mxu0 }
 0x413   :  { %v894_v24 = vadd.f32 %v1683_v46, %v893_v23  ;;  %v906_v25 = vpop.f32.mrf.mxu1 }
 0x414   :  { %v907_v44 = vadd.f32 %v1691_v61, %v906_v25  ;;  %v969_v61 = vpop.permute.xlu2 %968 }
 0x415   :  { %v934_v27 = vadd.f32 %v933_v40, %v894_v24  ;;  %vm970_vm6 = vcmp.eq.s32.totalorder %v969_v61, 1 }
 0x417   :  { %v1316_v22 = vmul.f32 -1.442695, %v934_v27 }
 0x418   :  { %v880_v28 = vpop.f32.mrf.mxu3 }
 0x419   :  { %1409 = vpow2.f32 %v1316_v22  ;;  %v881_v26 = vadd.f32 %v1660_v30, %v880_v28 }
 0x41a   :  { %v895_v31 = vpop.f32.mrf.mxu0 }
 0x41b   :  { %v912_v33 = vadd.f32 %v911_v29, %v881_v26  ;;  %v908_v34 = vpop.f32.mrf.mxu1 }
 0x41d   :  { %v1315_v35 = vmul.f32 -1.442695, %v912_v33 }
 0x41f   :  { %v1410_v36 = vpop.eup %1409  ;;  %1411 = vpow2.f32 %v1315_v35 }
 0x420   :  { %v938_v12 = vadd.f32 1.0, %v1410_v36  ;;  %v882_v37 = vpop.f32.mrf.mxu3 }
 0x422   :  { %1413 = vrcp.f32 %v938_v12  ;;  %v950_v49 = vand.u32 2147483648, %v938_v12  ;;  %vm944_vm3 = vweird.f32 %v938_v12  ;;  %v948_v51 = vand.u32 2147483647, %v938_v12 }
 0x424   :  { %v951_v55 = vor.u32 1.1754944e-38, %v950_v49  ;;  %vm949_vm5 = vcmp.eq.f32.partialorder %v948_v51, 8.507059e+37 }
 0x425   :  { %v1412_v1 = vpop.eup %1411 }
 0x426   :  { %v916_v46 = vadd.f32 1.0, %v1412_v1 }
 0x428   :  { %1415 = vrcp.f32 %v916_v46  ;;  %v1414_v6 = vpop.eup %1413  ;;  %v928_v30 = vand.u32 2147483648, %v916_v46  ;;  %v926_v42 = vand.u32 2147483647, %v916_v46  ;;  %vm922_vm14 = vweird.f32 %v916_v46 }
 0x429   :  { %v940_v18 = vmul.f32 %v1414_v6, %v938_v12  ;;  %vm945_vm2 = vweird.f32 %v1414_v6 }
 0x42a   :  { %v929_v32 = vor.u32 1.1754944e-38, %v928_v30  ;;  %vm927_vm1 = vcmp.eq.f32.partialorder %v926_v42, 8.507059e+37  ;;  %vm946_vm4 = vmor %vm944_vm3, %vm945_vm2 }
 0x42b   :  { %v941_v39 = vsub.f32 1.0, %v940_v18 }
 0x42d   :  { %v942_v5 = vmul.f32 %v1414_v6, %v941_v39 }
 0x42e   :  { %v1416_v38 = vpop.eup %1415 }
 0x42f   :  { %v918_v4 = vmul.f32 %v1416_v38, %v916_v46  ;;  %vm923_vm12 = vweird.f32 %v1416_v38  ;;  %v943_v47 = vadd.f32 %v1414_v6, %v942_v5  ;;  %v1064_v5 = vld [vmem:[#allocation4 + $0x30] sm:$0xff] }
 0x430   :  { %vm924_vm15 = vmor %vm922_vm14, %vm923_vm12 }
 0x431   :  { %v919_v13 = vsub.f32 1.0, %v918_v4  ;;  %v947_v54 = vsel %vm946_vm4, %v1414_v6, %v943_v47 }
 0x432   :  { %v952_v56 = vsel %vm949_vm5, %v951_v55, %v947_v54 }
 0x433   :  { %v920_v41 = vmul.f32 %v1416_v38, %v919_v13  ;;  %v959_v57 = vsub.f32 1.0, %v952_v56  ;;  %v961_v60 = vmul.f32 %v952_v56, %v1840_v16 }
 0x435   :  { %v921_v43 = vadd.f32 %v1416_v38, %v920_v41 }
 0x437   :  { %v925_v45 = vsel %vm924_vm15, %v1416_v38, %v921_v43  ;;  %v1888_v38 = vld [vmem:[%s1931_s13] ss:$0 sm:$0xff] }
 0x438   :  { %v930_v48 = vsel %vm927_vm1, %v929_v32, %v925_v45 }
 0x439   :  { %v956_v50 = vmul.f32 %v930_v48, %v907_v44 }
 0x43b   :  { %v957_v53 = vadd.f32 %v956_v50, %v955_v52  ;;  %v1078_v50 = vpop.permute.xlu0 %1077 }
 0x43c   :  { %vm1079_vm1 = vcmp.eq.s32.totalorder %v1078_v50, 1 }
 0x43d   :  { %1417 = vtanh.f32 %v957_v53 }
 0x443   :  { %v1418_v58 = vpop.eup %1417 }
 0x444   :  { %v960_v59 = vmul.f32 %v1418_v58, %v959_v57 }
 0x446   :  { %v962_v62 = vadd.f32 %v961_v60, %v960_v59  ;;  %v1129_v59 = vld [vmem:[#allocation2 + $0x38] sm:$0xff] }
 0x448   :  { %v971_v63 = vsel %vm970_vm6, %v962_v62, 0.0  ;;  %v1862_v0 = vsel %vm970_vm6, %v962_v62, %v1840_v16  ;;  %v1020_v16 = vld [vmem:[#allocation2 + $0x30] sm:$0xff] }
 0x449   :  { %v972_v2 = vpack.c.bf16 %v971_v63, %v971_v63  ;;  %v976_v3 = vpack.c.bf16 %v1862_v0, %v1862_v0 }
 0x44b   :  { %1318 = vst.msk [vmem:[%s1932_s15 + $0x14] sm:$0xf] %vm428_vm13, %v972_v2  ;;  %1319 = vmatmul.msk.bf16.vlgmr.msra.gmra.mxu2 %vm101_vm0, %v976_v3  ;;  %1320 = vmatmul.msk.bf16.vlgmr.msrb.gmra.mxu3 %vm101_vm0, %v976_v3 }
 0x44c   :  { %1321 = vmatmul.msk.bf16.vlgmr.msrb.gmra.mxu0 %vm101_vm0, %v976_v3  ;;  %v1151_v3 = vld [vmem:[#allocation3 + $0x38] sm:$0xff] }
 0x4c9   :  { %v1015_v7 = vpop.f32.mrf.mxu0 }
 0x4ca   :  { %v1016_v4 = vadd.f32 %v1888_v38, %v1015_v7 }
 0x4ce   :  { %v989_v8 = vpop.f32.mrf.mxu2  ;;  %v1002_v9 = vpop.f32.mrf.mxu3 }
 0x4cf   :  { %v990_v11 = vadd.f32 %v1876_v10, %v989_v8  ;;  %v1003_v15 = vadd.f32 %v1882_v14, %v1002_v9 }
 0x4d1   :  { %v1021_v19 = vadd.f32 %v1020_v16, %v990_v11  ;;  %v1043_v20 = vadd.f32 %v1042_v17, %v1003_v15  ;;  %v1017_v21 = vpop.f32.mrf.mxu0 }
 0x4d3   :  { %v1322_v23 = vmul.f32 -1.442695, %v1021_v19  ;;  %v1323_v24 = vmul.f32 -1.442695, %v1043_v20 }
 0x4d5   :  { %1419 = vpow2.f32 %v1322_v23 }
 0x4d6   :  { %1421 = vpow2.f32 %v1323_v24  ;;  %v991_v25 = vpop.f32.mrf.mxu2  ;;  %v1004_v40 = vpop.f32.mrf.mxu3 }
 0x4db   :  { %v1420_v27 = vpop.eup %1419 }
 0x4dc   :  { %v1422_v22 = vpop.eup %1421  ;;  %v1025_v28 = vadd.f32 1.0, %v1420_v27 }
 0x4dd   :  { %v1047_v26 = vadd.f32 1.0, %v1422_v22 }
 0x4de   :  { %1423 = vrcp.f32 %v1025_v28  ;;  %v1037_v36 = vand.u32 2147483648, %v1025_v28  ;;  %v1035_v1 = vand.u32 2147483647, %v1025_v28  ;;  %vm1031_vm8 = vweird.f32 %v1025_v28 }
 0x4df   :  { %1425 = vrcp.f32 %v1047_v26  ;;  %v1059_v42 = vand.u32 2147483648, %v1047_v26  ;;  %vm1053_vm12 = vweird.f32 %v1047_v26  ;;  %v1057_v43 = vand.u32 2147483647, %v1047_v26 }
 0x4e0   :  { %v1038_v18 = vor.u32 1.1754944e-38, %v1037_v36  ;;  %vm1036_vm10 = vcmp.eq.f32.partialorder %v1035_v1, 8.507059e+37 }
 0x4e1   :  { %v1060_v45 = vor.u32 1.1754944e-38, %v1059_v42  ;;  %vm1058_vm15 = vcmp.eq.f32.partialorder %v1057_v43, 8.507059e+37 }
 0x4e4   :  { %v1424_v29 = vpop.eup %1423 }
 0x4e5   :  { %v1426_v31 = vpop.eup %1425  ;;  %v1027_v33 = vmul.f32 %v1424_v29, %v1025_v28  ;;  %vm1032_vm7 = vweird.f32 %v1424_v29 }
 0x4e6   :  { %v1049_v34 = vmul.f32 %v1426_v31, %v1047_v26  ;;  %vm1033_vm9 = vmor %vm1031_vm8, %vm1032_vm7  ;;  %vm1054_vm11 = vweird.f32 %v1426_v31 }
 0x4e7   :  { %v1028_v35 = vsub.f32 1.0, %v1027_v33  ;;  %vm1055_vm14 = vmor %vm1053_vm12, %vm1054_vm11 }
 0x4e8   :  { %v1050_v12 = vsub.f32 1.0, %v1049_v34 }
 0x4e9   :  { %v1029_v37 = vmul.f32 %v1424_v29, %v1028_v35 }
 0x4ea   :  { %v1051_v46 = vmul.f32 %v1426_v31, %v1050_v12 }
 0x4eb   :  { %v1030_v6 = vadd.f32 %v1424_v29, %v1029_v37  ;;  %v1173_v37 = vld [vmem:[#allocation4 + $0x38] sm:$0xff] }
 0x4ec   :  { %v1052_v30 = vadd.f32 %v1426_v31, %v1051_v46 }
 0x4ed   :  { %v1034_v39 = vsel %vm1033_vm9, %v1424_v29, %v1030_v6 }
 0x4ee   :  { %v1039_v13 = vsel %vm1036_vm10, %v1038_v18, %v1034_v39  ;;  %v1056_v44 = vsel %vm1055_vm14, %v1426_v31, %v1052_v30 }
 0x4ef   :  { %v1065_v41 = vmul.f32 %v1039_v13, %v1016_v4  ;;  %v1061_v47 = vsel %vm1058_vm15, %v1060_v45, %v1056_v44  ;;  %v1187_v13 = vpop.permute.xlu1 %1186 }
 0x4f0   :  { %v1068_v48 = vsub.f32 1.0, %v1061_v47  ;;  %v1070_v52 = vmul.f32 %v1061_v47, %v1862_v0  ;;  %vm1188_vm10 = vcmp.eq.s32.totalorder %v1187_v13, 1 }
 0x4f1   :  { %v1066_v32 = vadd.f32 %v1065_v41, %v1064_v5 }
 0x4f3   :  { %1427 = vtanh.f32 %v1066_v32 }
 0x4f9   :  { %v1428_v49 = vpop.eup %1427 }
 0x4fa   :  { %v1069_v51 = vmul.f32 %v1428_v49, %v1068_v48 }
 0x4fc   :  { %v1071_v53 = vadd.f32 %v1070_v52, %v1069_v51 }
 0x4fe   :  { %v1080_v54 = vsel %vm1079_vm1, %v1071_v53, 0.0  ;;  %v1893_v55 = vsel %vm1079_vm1, %v1071_v53, %v1862_v0 }
 0x4ff   :  { %v1081_v56 = vpack.c.bf16 %v1080_v54, %v1080_v54  ;;  %v1085_v57 = vpack.c.bf16 %v1893_v55, %v1893_v55 }
 0x501   :  { %1325 = vst.msk [vmem:[%s1932_s15 + $0x18] sm:$0xf] %vm428_vm13, %v1081_v56  ;;  %1326 = vmatmul.msk.bf16.vlgmr.msrb.gmra.mxu1 %vm101_vm0, %v1085_v57  ;;  %1327 = vmatmul.msk.bf16.vlgmr.msrb.gmra.mxu2 %vm101_vm0, %v1085_v57 }
 0x502   :  { %1328 = vmatmul.msk.bf16.vlgmr.msra.gmra.mxu3 %vm101_vm0, %v1085_v57 }
 0x57e   :  { %v1098_v58 = vpop.f32.mrf.mxu1 }
 0x57f   :  { %v1099_v61 = vadd.f32 %v1876_v10, %v1098_v58 }
 0x581   :  { %v1130_v60 = vadd.f32 %v1129_v59, %v1099_v61 }
 0x583   :  { %v1329_v62 = vmul.f32 -1.442695, %v1130_v60 }
 0x584   :  { %v1111_v63 = vpop.f32.mrf.mxu2 }
 0x585   :  { %1429 = vpow2.f32 %v1329_v62  ;;  %v1112_v0 = vadd.f32 %v1882_v14, %v1111_v63  ;;  %v1124_v2 = vpop.f32.mrf.mxu3 }
 0x586   :  { %v1100_v7 = vpop.f32.mrf.mxu1  ;;  %v1125_v29 = vadd.f32 %v1888_v38, %v1124_v2 }
 0x587   :  { %v1152_v8 = vadd.f32 %v1151_v3, %v1112_v0 }
 0x589   :  { %v1330_v9 = vmul.f32 -1.442695, %v1152_v8 }
 0x58b   :  { %v1430_v11 = vpop.eup %1429  ;;  %1431 = vpow2.f32 %v1330_v9 }
 0x58c   :  { %v1134_v15 = vadd.f32 1.0, %v1430_v11  ;;  %v1113_v16 = vpop.f32.mrf.mxu2 }
 0x58d   :  { %v1126_v17 = vpop.f32.mrf.mxu3 }
 0x58e   :  { %1433 = vrcp.f32 %v1134_v15  ;;  %v1146_v24 = vand.u32 2147483648, %v1134_v15  ;;  %v1144_v14 = vand.u32 2147483647, %v1134_v15  ;;  %vm1140_vm3 = vweird.f32 %v1134_v15 }
 0x590   :  { %v1147_v28 = vor.u32 1.1754944e-38, %v1146_v24  ;;  %vm1145_vm5 = vcmp.eq.f32.partialorder %v1144_v14, 8.507059e+37 }
 0x591   :  { %v1432_v19 = vpop.eup %1431 }
 0x592   :  { %v1156_v10 = vadd.f32 1.0, %v1432_v19 }
 0x594   :  { %v1434_v20 = vpop.eup %1433  ;;  %1435 = vrcp.f32 %v1156_v10  ;;  %v1168_v35 = vand.u32 2147483648, %v1156_v10  ;;  %v1166_v12 = vand.u32 2147483647, %v1156_v10  ;;  %vm1162_vm7 = vweird.f32 %v1156_v10 }
 0x595   :  { %v1136_v21 = vmul.f32 %v1434_v20, %v1134_v15  ;;  %vm1141_vm2 = vweird.f32 %v1434_v20 }
 0x596   :  { %vm1142_vm4 = vmor %vm1140_vm3, %vm1141_vm2  ;;  %v1169_v6 = vor.u32 1.1754944e-38, %v1168_v35  ;;  %vm1167_vm9 = vcmp.eq.f32.partialorder %v1166_v12, 8.507059e+37 }
 0x597   :  { %v1137_v23 = vsub.f32 1.0, %v1136_v21 }
 0x599   :  { %v1138_v25 = vmul.f32 %v1434_v20, %v1137_v23 }
 0x59a   :  { %v1436_v40 = vpop.eup %1435 }
 0x59b   :  { %v1158_v27 = vmul.f32 %v1436_v40, %v1156_v10  ;;  %v1139_v22 = vadd.f32 %v1434_v20, %v1138_v25  ;;  %vm1163_vm6 = vweird.f32 %v1436_v40 }
 0x59c   :  { %vm1164_vm8 = vmor %vm1162_vm7, %vm1163_vm6 }
 0x59d   :  { %v1159_v26 = vsub.f32 1.0, %v1158_v27  ;;  %v1143_v31 = vsel %vm1142_vm4, %v1434_v20, %v1139_v22 }
 0x59e   :  { %v1148_v33 = vsel %vm1145_vm5, %v1147_v28, %v1143_v31 }
 0x59f   :  { %v1160_v34 = vmul.f32 %v1436_v40, %v1159_v26  ;;  %v1174_v36 = vmul.f32 %v1148_v33, %v1125_v29 }
 0x5a1   :  { %v1161_v1 = vadd.f32 %v1436_v40, %v1160_v34  ;;  %v1175_v46 = vadd.f32 %v1174_v36, %v1173_v37 }
 0x5a3   :  { %v1165_v18 = vsel %vm1164_vm8, %v1436_v40, %v1161_v1  ;;  %1437 = vtanh.f32 %v1175_v46 }
 0x5a4   :  { %v1170_v4 = vsel %vm1167_vm9, %v1169_v6, %v1165_v18 }
 0x5a5   :  { %v1177_v39 = vsub.f32 1.0, %v1170_v4  ;;  %v1179_v41 = vmul.f32 %v1170_v4, %v1893_v55 }
 0x5a9   :  { %v1438_v38 = vpop.eup %1437 }
 0x5aa   :  { %v1178_v30 = vmul.f32 %v1438_v38, %v1177_v39 }
 0x5ac   :  { %v1180_v42 = vadd.f32 %v1179_v41, %v1178_v30 }
 0x5ae   :  { %v1189_v5 = vsel %vm1188_vm10, %v1180_v42, 0.0  ;;  %v1193_v43 = vsel %vm1188_vm10, %v1180_v42, %v1893_v55 }
 0x5af   :  { %v1190_v32 = vpack.c.bf16 %v1189_v5, %v1189_v5  ;;  %1194 = vst.msk [vmem:[%s1933_s16] sm:$0xff] %vm101_vm0, %v1193_v43 }
 0x5b1   :  { %1332 = vst.msk [vmem:[%s1932_s15 + $0x1c] sm:$0xf] %vm428_vm13, %v1190_v32 }

// kernel: narm_forward.4
= control target key start
LH: loop header
LB: loop body
LE: loop exit
PB: predicated region body
PF: predicated region fallthrough
CT: control target
= control target key end

     0   :  { %s1911_s0 = inlined_call_operand.vmem [shape: bf16[8,8,16], index: 0, kind: input, shape index: {}]   ;;  %s1912_s1 = inlined_call_operand.vmem [shape: f32[8,8,1], index: 1, kind: input, shape index: {}]   ;;  %s1913_s2 = inlined_call_operand.vmem [shape: bf16[16,32], index: 2, kind: input, shape index: {}]   ;;  %s1914_s3 = inlined_call_operand.vmem [shape: bf16[16,32], index: 3, kind: input, shape index: {}]   ;;  %s1915_s4 = inlined_call_operand.vmem [shape: bf16[16,32], index: 4, kind: input, shape index: {}]   ;;  %s1916_s5 = inlined_call_operand.vmem [shape: bf16[32,32], index: 5, kind: input, shape index: {}]   ;;  %s1917_s6 = inlined_call_operand.vmem [shape: bf16[32,32], index: 6, kind: input, shape index: {}]   ;;  %s1918_s7 = inlined_call_operand.vmem [shape: bf16[32,32], index: 7, kind: input, shape index: {}]   ;;  %s1919_s8 = inlined_call_operand.vmem [shape: f32[1,32], index: 8, kind: input, shape index: {}]   ;;  %s1920_s9 = inlined_call_operand.vmem [shape: f32[1,32], index: 9, kind: input, shape index: {}]   ;;  %s1921_s10 = inlined_call_operand.vmem [shape: f32[1,32], index: 10, kind: input, shape index: {}]   ;;  %s1922_s11 = inlined_call_operand.vmem [shape: f32[1,32], index: 11, kind: input, shape index: {}]   ;;  %s1923_s12 = inlined_call_operand.vmem [shape: f32[1,32], index: 12, kind: input, shape index: {}]   ;;  %s1924_s13 = inlined_call_operand.vmem [shape: f32[1,32], index: 13, kind: input, shape index: {}]   ;;  %s1925_s14 = inlined_call_operand.vmem [shape: f32[8,32], index: 14, kind: input, shape index: {}]   ;;  %s1926_s15 = inlined_call_operand.vmem [shape: bf16[8,8,32], index: 15, kind: output, shape index: {0}]   ;;  %s1927_s16 = inlined_call_operand.hbm [shape: f32[8,32], index: 16, kind: output, shape index: {1}]  }
   0x1   :  { %1929 = sst [smem:[#allocation8_spill]] %s1911_s0 }
   0x2   :  { %v1536_v0 = vld [vmem:[%s1916_s5 + $0x8] sm:$0xff]  ;;  %v1315_v1 = vld [vmem:[%s1913_s2] sm:$0xff]  ;;  %s1930_s27 = sld [smem:[#allocation8_spill]]  ;;  %vm94_vm0 = vcmask 130048  }
   0x3   :  { %v1547_v3 = vld [vmem:[%s1916_s5] sm:$0xff]  ;;  %v1552_v4 = vld [vmem:[%s1917_s6 + $0x8] sm:$0xff]  ;;  %284 = vmatpush.bf16.msra.mxu3 %v1536_v0  ;;  %114 = vmatpush.bf16.msra.mxu0 %v1315_v1 }
   0x4   :  { %v1558_v5 = vld [vmem:[%s1925_s14] sm:$0xff]  ;;  %v1569_v8 = vld [vmem:[%s1918_s7 + $0x8] sm:$0xff] }
   0x5   :  { %v1316_v6 = vld [vmem:[%s1914_s3] sm:$0xff]  ;;  %v259_v9 = vpack.c.bf16 %v1558_v5, %v1558_v5 }
   0x6   :  { %v1317_v7 = vld [vmem:[%s1915_s4] sm:$0xff]  ;;  %164 = vmatpush.bf16.msra.mxu1 %v1316_v6 }
   0x7   :  { %432 = vmatpush.bf16.msrb.mxu0 %v1552_v4  ;;  %213 = vmatpush.bf16.msra.mxu2 %v1317_v7 }
   0x8   :  { %v1311_v2 = vld [vmem:[%s1930_s27] sm:$0xff] }
   0x9   :  { %1213 = vmatmul.msk.bf16.vlgmr.msra.gmra.mxu0 %vm94_vm0, %v1311_v2 }
   0xa   :  { %445 = vmatpush.bf16.msrb.mxu1 %v1569_v8 }
   0xb   :  { %22 = vsyncpa [#allocation6], 0  ;;  %285 = vmatpush.bf16.msra.mxu3 %v1547_v3  ;;  %vm136_vm1 = vcmask 261120   ;;  %v1580_v10 = vld [vmem:[%s1917_s6] sm:$0xff]  ;;  %528 = vmatpush.bf16.msrb.mxu2 %v1536_v0  ;;  %v1446_v13 = vmov 0   ;;  %v1267_v15 = vld [vmem:[%s1912_s1 + $0x8] sm:$0xff] }
   0xc   :  { %1221 = vmatmul.msk.bf16.vlgmr.msra.gmra.mxu1 %vm94_vm0, %v1311_v2  ;;  %v1588_v11 = vld [vmem:[%s1918_s7] sm:$0xff]  ;;  %1229 = vmatmul.msk.bf16.vlgmr.msra.gmra.mxu2 %vm94_vm0, %v1311_v2  ;;  %vm507_vm3 = vcmp.gt.f32.partialorder %v1267_v15, 0.0  ;;  %v1302_v17 = vld [vmem:[%s1912_s1 + $0x30] sm:$0xff]  ;;  %v1312_v19 = vld [vmem:[%s1930_s27 + $0x8] sm:$0xff]  ;;  %vm406_vm14 = vcmask 257024   ;;  %s1447_s29 = smov [#allocation5]  }
   0xd   :  { %433 = vmatpush.bf16.msrb.mxu0 %v1580_v10  ;;  %v397_v12 = vld [vmem:[%s1912_s1] sm:$0xff]  ;;  %1326 = vset.pattern.permute.xlu0 %v1446_v13  ;;  %v508_v16 = vsel %vm507_vm3, 1, %v1446_v13  ;;  %vm1052_vm4 = vcmp.gt.f32.partialorder %v1302_v17, 0.0  ;;  %v1313_v25 = vld [vmem:[%s1930_s27 + $0x10] sm:$0xff]  ;;  %v1314_v43 = vld [vmem:[%s1930_s27 + $0x18] sm:$0xff]  ;;  %s1180_s30 = sshll.u32 %s1447_s29, 4  ;;  %s1181_s30 = int_to_ptr.vmem [resolvable:$true] %s1180_s30 }
   0xe   :  { %1241 = vmatmul.msk.bf16.vlgmr.msra.gmra.mxu3 %vm136_vm1, %v259_v9  ;;  %446 = vmatpush.bf16.msrb.mxu1 %v1588_v11  ;;  %vm398_vm2 = vcmp.gt.f32.partialorder %v397_v12, 0.0  ;;  %v1053_v18 = vsel %vm1052_vm4, 1, %v1446_v13  ;;  %v1634_v20 = vld [vmem:[%s1919_s8] ss:$0 sm:$0xff]  ;;  %s1182_s2 = sshll.u32 %s1927_s16, 4  ;;  %s1183_s2 = int_to_ptr.hbm [resolvable:$true] %s1182_s2 }
   0xf   :  { %312 = vmatpush.bf16.msrb.mxu3 %v1552_v4  ;;  %529 = vmatpush.bf16.msrb.mxu2 %v1547_v3  ;;  %v399_v14 = vsel %vm398_vm2, 1, %v1446_v13  ;;  %v1639_v21 = vld [vmem:[%s1920_s9] ss:$0 sm:$0xff] }
  0x10   :  { %401 = vperm.xlu0 %1326, %v399_v14   ;;  %1327 = vset.pattern.permute.xlu1 %v1446_v13  ;;  %v1654_v27 = vld [vmem:[%s1921_s10] ss:$0 sm:$0xff] }
  0x11   :  { %554 = vmatpush.bf16.msra.mxu0 %v1569_v8  ;;  %1328 = vset.pattern.permute.xlu2 %v1446_v13  ;;  %v1659_v28 = vld [vmem:[%s1922_s11] ss:$0 sm:$0xff] }
  0x12   :  { %637 = vmatpush.bf16.msra.mxu1 %v1536_v0  ;;  %v1679_v45 = vld [vmem:[%s1923_s12] ss:$0 sm:$0xff] }
  0x13   :  { %313 = vmatpush.bf16.msrb.mxu3 %v1580_v10  ;;  %650 = vmatpush.bf16.msra.mxu2 %v1552_v4  ;;  %v1685_v58 = vld [vmem:[%s1924_s13] ss:$0 sm:$0xff] }
  0x15   :  { %555 = vmatpush.bf16.msra.mxu0 %v1588_v11 }
  0x16   :  { %638 = vmatpush.bf16.msra.mxu1 %v1547_v3 }
  0x17   :  { %340 = vmatpush.bf16.msra.mxu3 %v1569_v8  ;;  %651 = vmatpush.bf16.msra.mxu2 %v1580_v10 }
  0x18   :  { %510 = vperm.xlu0 %1326, %v508_v16  }
  0x19   :  { %1214 = vmatmul.msk.bf16.gmra.mxu0 %vm94_vm0, %v1312_v19 }
  0x1b   :  { %341 = vmatpush.bf16.msra.mxu3 %v1588_v11 }
  0x1c   :  { %1222 = vmatmul.msk.bf16.gmra.mxu1 %vm94_vm0, %v1312_v19  ;;  %1230 = vmatmul.msk.bf16.gmra.mxu2 %vm94_vm0, %v1312_v19 }
  0x1e   :  { %1250 = vmatmul.msk.bf16.vlgmr.msrb.gmra.mxu3 %vm136_vm1, %v259_v9 }
  0x1f   :  { %419 = vmatpush.bf16.msrb.mxu3 %v1536_v0 }
  0x20   :  { %1055 = vperm.xlu0 %1326, %v1053_v18  }
  0x23   :  { %420 = vmatpush.bf16.msrb.mxu3 %v1547_v3 }
  0x29   :  { %1215 = vmatmul.msk.bf16.gmra.mxu0 %vm94_vm0, %v1313_v25 }
  0x2c   :  { %1223 = vmatmul.msk.bf16.gmra.mxu1 %vm94_vm0, %v1313_v25  ;;  %1231 = vmatmul.msk.bf16.gmra.mxu2 %vm94_vm0, %v1313_v25 }
  0x2e   :  { %1259 = vmatmul.msk.bf16.vlgmr.msra.gmra.mxu3 %vm136_vm1, %v259_v9 }
  0x2f   :  { %541 = vmatpush.bf16.msra.mxu3 %v1552_v4 }
  0x33   :  { %542 = vmatpush.bf16.msra.mxu3 %v1580_v10 }
  0x39   :  { %1216 = vmatmul.msk.bf16.gmra.mxu0 %vm94_vm0, %v1314_v43 }
  0x3c   :  { %1224 = vmatmul.msk.bf16.gmra.mxu1 %vm94_vm0, %v1314_v43  ;;  %1232 = vmatmul.msk.bf16.gmra.mxu2 %vm94_vm0, %v1314_v43 }
  0x86   :  { %v116_v22 = vpop.f32.mrf.mxu0 }
  0x87   :  { %v117_v23 = vadd.f32 %v1634_v20, %v116_v22 }
  0x89   :  { %v166_v24 = vpop.f32.mrf.mxu1  ;;  %137 = vst.msk [vmem:[#allocation2] sm:$0xff] %vm136_vm1, %v117_v23 }
  0x8a   :  { %v167_v26 = vadd.f32 %v1639_v21, %v166_v24 }
  0x8c   :  { %186 = vst.msk [vmem:[#allocation3] sm:$0xff] %vm136_vm1, %v167_v26 }
  0x8e   :  { %v118_v29 = vpop.f32.mrf.mxu0 }
  0x8f   :  { %v119_v30 = vadd.f32 %v1634_v20, %v118_v29  ;;  %v215_v31 = vpop.f32.mrf.mxu2 }
  0x90   :  { %v347_v33 = vld [vmem:[#allocation2] sm:$0xff]  ;;  %v216_v35 = vadd.f32 %v1654_v27, %v215_v31 }
  0x91   :  { %v287_v32 = vpop.f32.mrf.mxu3  ;;  %v168_v34 = vpop.f32.mrf.mxu1  ;;  %138 = vst.msk [vmem:[#allocation2 + $0x8] sm:$0xff] %vm136_vm1, %v119_v30 }
  0x92   :  { %v288_v36 = vadd.f32 %v1659_v28, %v287_v32  ;;  %v169_v37 = vadd.f32 %v1639_v21, %v168_v34  ;;  %235 = vst.msk [vmem:[#allocation4] sm:$0xff] %vm136_vm1, %v216_v35  ;;  %v402_v32 = vpop.permute.xlu0 %401 }
  0x93   :  { %v368_v48 = vld [vmem:[#allocation3] sm:$0xff]  ;;  %vm403_vm13 = vcmp.eq.s32.totalorder %v402_v32, 1 }
  0x94   :  { %v348_v38 = vadd.f32 %v347_v33, %v288_v36  ;;  %187 = vst.msk [vmem:[#allocation3 + $0x8] sm:$0xff] %vm136_vm1, %v169_v37 }
  0x96   :  { %v1260_v39 = vmul.f32 -1.442695, %v348_v38 }
  0x97   :  { %v217_v40 = vpop.f32.mrf.mxu2 }
  0x98   :  { %1335 = vpow2.f32 %v1260_v39  ;;  %v218_v42 = vadd.f32 %v1654_v27, %v217_v40 }
  0x99   :  { %v289_v41 = vpop.f32.mrf.mxu3  ;;  %v389_v12 = vld [vmem:[#allocation4] sm:$0xff]  ;;  %v171_v40 = vpop.f32.mrf.mxu1 }
  0x9a   :  { %236 = vst.msk [vmem:[#allocation4 + $0x8] sm:$0xff] %vm136_vm1, %v218_v42  ;;  %v172_v42 = vadd.f32 %v1639_v21, %v171_v40 }
  0x9c   :  { %188 = vst.msk [vmem:[#allocation3 + $0x10] sm:$0xff] %vm136_vm1, %v172_v42 }
  0x9e   :  { %v1336_v44 = vpop.eup %1335 }
  0x9f   :  { %v352_v46 = vadd.f32 1.0, %v1336_v44  ;;  %v220_v32 = vpop.f32.mrf.mxu2 }
  0xa1   :  { %1337 = vrcp.f32 %v352_v46  ;;  %v315_v47 = vpop.f32.mrf.mxu3  ;;  %v364_v60 = vand.u32 2147483648, %v352_v46  ;;  %vm358_vm6 = vweird.f32 %v352_v46  ;;  %v362_v62 = vand.u32 2147483647, %v352_v46  ;;  %v173_v44 = vpop.f32.mrf.mxu1 }
  0xa2   :  { %v316_v49 = vadd.f32 %v1679_v45, %v315_v47  ;;  %v174_v47 = vadd.f32 %v1639_v21, %v173_v44 }
  0xa3   :  { %v365_v6 = vor.u32 1.1754944e-38, %v364_v60  ;;  %vm363_vm8 = vcmp.eq.f32.partialorder %v362_v62, 8.507059e+37 }
  0xa4   :  { %v369_v50 = vadd.f32 %v368_v48, %v316_v49  ;;  %189 = vst.msk [vmem:[#allocation3 + $0x18] sm:$0xff] %vm136_vm1, %v174_v47 }
  0xa6   :  { %v1261_v51 = vmul.f32 -1.442695, %v369_v50 }
  0xa7   :  { %v1338_v52 = vpop.eup %1337 }
  0xa8   :  { %1339 = vpow2.f32 %v1261_v51  ;;  %v354_v53 = vmul.f32 %v1338_v52, %v352_v46  ;;  %vm359_vm5 = vweird.f32 %v1338_v52 }
  0xa9   :  { %v317_v54 = vpop.f32.mrf.mxu3  ;;  %vm360_vm7 = vmor %vm358_vm6, %vm359_vm5  ;;  %v176_v49 = vpop.f32.mrf.mxu1 }
  0xaa   :  { %v355_v55 = vsub.f32 1.0, %v354_v53  ;;  %v177_v51 = vadd.f32 %v1639_v21, %v176_v49 }
  0xac   :  { %v356_v56 = vmul.f32 %v1338_v52, %v355_v55  ;;  %190 = vst.msk [vmem:[#allocation3 + $0x20] sm:$0xff] %vm136_vm1, %v177_v51 }
  0xae   :  { %v1340_v57 = vpop.eup %1339  ;;  %v357_v59 = vadd.f32 %v1338_v52, %v356_v56 }
  0xaf   :  { %v373_v61 = vadd.f32 1.0, %v1340_v57 }
  0xb0   :  { %v361_v1 = vsel %vm360_vm7, %v1338_v52, %v357_v59 }
  0xb1   :  { %1341 = vrcp.f32 %v373_v61  ;;  %v343_v63 = vpop.f32.mrf.mxu3  ;;  %v366_v7 = vsel %vm363_vm8, %v365_v6, %v361_v1  ;;  %v385_v19 = vand.u32 2147483648, %v373_v61  ;;  %v383_v23 = vand.u32 2147483647, %v373_v61  ;;  %v178_v53 = vpop.f32.mrf.mxu1 }
  0xb2   :  { %v344_v2 = vadd.f32 %v1685_v58, %v343_v63  ;;  %vm379_vm10 = vweird.f32 %v373_v61  ;;  %v179_v55 = vadd.f32 %v1639_v21, %v178_v53 }
  0xb3   :  { %v386_v25 = vor.u32 1.1754944e-38, %v385_v19  ;;  %vm384_vm12 = vcmp.eq.f32.partialorder %v383_v23, 8.507059e+37 }
  0xb4   :  { %v390_v9 = vmul.f32 %v366_v7, %v344_v2  ;;  %191 = vst.msk [vmem:[#allocation3 + $0x28] sm:$0xff] %vm136_vm1, %v179_v55 }
  0xb6   :  { %v391_v16 = vadd.f32 %v390_v9, %v389_v12  ;;  %v475_v9 = vld [vmem:[#allocation3 + $0x8] sm:$0xff] }
  0xb7   :  { %v1342_v14 = vpop.eup %1341 }
  0xb8   :  { %v375_v15 = vmul.f32 %v1342_v14, %v373_v61  ;;  %vm380_vm9 = vweird.f32 %v1342_v14  ;;  %1343 = vtanh.f32 %v391_v16 }
  0xb9   :  { %v345_v17 = vpop.f32.mrf.mxu3  ;;  %vm381_vm11 = vmor %vm379_vm10, %vm380_vm9  ;;  %v181_v57 = vpop.f32.mrf.mxu1 }
  0xba   :  { %v376_v18 = vsub.f32 1.0, %v375_v15  ;;  %v182_v60 = vadd.f32 %v1639_v21, %v181_v57  ;;  %v453_v17 = vld [vmem:[#allocation2 + $0x8] sm:$0xff] }
  0xbc   :  { %v377_v22 = vmul.f32 %v1342_v14, %v376_v18  ;;  %192 = vst.msk [vmem:[#allocation3 + $0x30] sm:$0xff] %vm136_vm1, %v182_v60 }
  0xbe   :  { %v378_v24 = vadd.f32 %v1342_v14, %v377_v22  ;;  %v1344_v31 = vpop.eup %1343 }
  0xc0   :  { %v382_v26 = vsel %vm381_vm11, %v1342_v14, %v378_v24 }
  0xc1   :  { %v387_v29 = vsel %vm384_vm12, %v386_v25, %v382_v26  ;;  %v183_v62 = vpop.f32.mrf.mxu1 }
  0xc2   :  { %v393_v30 = vsub.f32 1.0, %v387_v29  ;;  %v395_v34 = vmul.f32 %v387_v29, %v1558_v5  ;;  %v184_v1 = vadd.f32 %v1639_v21, %v183_v62 }
  0xc4   :  { %v394_v33 = vmul.f32 %v1344_v31, %v393_v30  ;;  %193 = vst.msk [vmem:[#allocation3 + $0x38] sm:$0xff] %vm136_vm1, %v184_v1  ;;  %v1274_v31 = vld [vmem:[%s1912_s1 + $0x10] sm:$0xff] }
  0xc5   :  { %vm616_vm15 = vcmp.gt.f32.partialorder %v1274_v31, 0.0 }
  0xc6   :  { %v396_v35 = vadd.f32 %v395_v34, %v394_v33  ;;  %v617_v34 = vsel %vm616_vm15, 1, %v1446_v13 }
  0xc7   :  { %619 = vperm.xlu1 %1327, %v617_v34   ;;  %v584_v34 = vld [vmem:[#allocation3 + $0x10] sm:$0xff] }
  0xc8   :  { %v404_v36 = vsel %vm403_vm13, %v396_v35, 0.0  ;;  %v1690_v37 = vsel %vm403_vm13, %v396_v35, %v1558_v5  ;;  %v121_v5 = vpop.f32.mrf.mxu0  ;;  %v1281_v35 = vld [vmem:[%s1912_s1 + $0x18] sm:$0xff] }
  0xc9   :  { %v405_v38 = vpack.c.bf16 %v404_v36, %v404_v36  ;;  %v409_v39 = vpack.c.bf16 %v1690_v37, %v1690_v37  ;;  %v122_v41 = vadd.f32 %v1634_v20, %v121_v5  ;;  %v221_v36 = vadd.f32 %v1654_v27, %v220_v32 }
  0xca   :  { %vm725_vm0 = vcmp.gt.f32.partialorder %v1281_v35, 0.0 }
  0xcb   :  { %407 = vst.msk [vmem:[%s1926_s15] sm:$0xf] %vm406_vm14, %v405_v38  ;;  %1262 = vmatmul.msk.bf16.vlgmr.msrb.gmra.mxu3 %vm136_vm1, %v409_v39  ;;  %1263 = vmatmul.msk.bf16.vlgmr.msrb.gmra.mxu0 %vm136_vm1, %v409_v39  ;;  %v726_v44 = vsel %vm725_vm0, 1, %v1446_v13 }
  0xcc   :  { %1264 = vmatmul.msk.bf16.vlgmr.msrb.gmra.mxu1 %vm136_vm1, %v409_v39  ;;  %663 = vmatpush.bf16.msrb.mxu3 %v1569_v8  ;;  %139 = vst.msk [vmem:[#allocation2 + $0x10] sm:$0xff] %vm136_vm1, %v122_v41 }
  0xcd   :  { %746 = vmatpush.bf16.msrb.mxu0 %v1536_v0  ;;  %759 = vmatpush.bf16.msrb.mxu1 %v1552_v4  ;;  %237 = vst.msk [vmem:[#allocation4 + $0x10] sm:$0xff] %vm136_vm1, %v221_v36 }
  0xcf   :  { %728 = vperm.xlu1 %1327, %v726_v44  }
  0xd0   :  { %664 = vmatpush.bf16.msrb.mxu3 %v1588_v11  ;;  %v123_v43 = vpop.f32.mrf.mxu0 }
  0xd1   :  { %747 = vmatpush.bf16.msrb.mxu0 %v1547_v3  ;;  %760 = vmatpush.bf16.msrb.mxu1 %v1580_v10  ;;  %v124_v46 = vadd.f32 %v1634_v20, %v123_v43 }
  0xd3   :  { %140 = vst.msk [vmem:[#allocation2 + $0x18] sm:$0xff] %vm136_vm1, %v124_v46  ;;  %v222_v46 = vpop.f32.mrf.mxu2 }
  0xd8   :  { %v126_v48 = vpop.f32.mrf.mxu0 }
  0xd9   :  { %v127_v50 = vadd.f32 %v1634_v20, %v126_v48  ;;  %v223_v48 = vadd.f32 %v1654_v27, %v222_v46 }
  0xdb   :  { %141 = vst.msk [vmem:[#allocation2 + $0x20] sm:$0xff] %vm136_vm1, %v127_v50  ;;  %v1309_v50 = vld [vmem:[%s1912_s1 + $0x38] sm:$0xff] }
  0xdc   :  { %238 = vst.msk [vmem:[#allocation4 + $0x18] sm:$0xff] %vm136_vm1, %v223_v48  ;;  %vm1161_vm7 = vcmp.gt.f32.partialorder %v1309_v50, 0.0 }
  0xdd   :  { %v1162_v62 = vsel %vm1161_vm7, 1, %v1446_v13 }
  0xde   :  { %1164 = vperm.xlu1 %1327, %v1162_v62  }
  0xe0   :  { %v128_v52 = vpop.f32.mrf.mxu0 }
  0xe1   :  { %v129_v54 = vadd.f32 %v1634_v20, %v128_v52 }
  0xe3   :  { %142 = vst.msk [vmem:[#allocation2 + $0x28] sm:$0xff] %vm136_vm1, %v129_v54 }
  0xe8   :  { %v131_v56 = vpop.f32.mrf.mxu0 }
  0xe9   :  { %v132_v59 = vadd.f32 %v1634_v20, %v131_v56 }
  0xeb   :  { %143 = vst.msk [vmem:[#allocation2 + $0x30] sm:$0xff] %vm136_vm1, %v132_v59  ;;  %v497_v59 = vld [vmem:[#allocation4 + $0x8] sm:$0xff] }
  0xf0   :  { %v133_v61 = vpop.f32.mrf.mxu0 }
  0xf1   :  { %v134_v63 = vadd.f32 %v1634_v20, %v133_v61 }
  0xf3   :  { %144 = vst.msk [vmem:[#allocation2 + $0x38] sm:$0xff] %vm136_vm1, %v134_v63  ;;  %v225_v63 = vpop.f32.mrf.mxu2 }
 0x148   :  { %v435_v2 = vpop.f32.mrf.mxu0 }
 0x149   :  { %v436_v6 = vadd.f32 %v1679_v45, %v435_v2  ;;  %v448_v7 = vpop.f32.mrf.mxu1  ;;  %v226_v2 = vadd.f32 %v1654_v27, %v225_v63 }
 0x14a   :  { %v449_v51 = vadd.f32 %v1685_v58, %v448_v7 }
 0x14b   :  { %v476_v12 = vadd.f32 %v475_v9, %v436_v6  ;;  %239 = vst.msk [vmem:[#allocation4 + $0x20] sm:$0xff] %vm136_vm1, %v226_v2 }
 0x14d   :  { %v1266_v14 = vmul.f32 -1.442695, %v476_v12 }
 0x14e   :  { %v422_v15 = vpop.f32.mrf.mxu3 }
 0x14f   :  { %1345 = vpow2.f32 %v1266_v14  ;;  %v423_v16 = vadd.f32 %v1659_v28, %v422_v15  ;;  %v227_v15 = vpop.f32.mrf.mxu2 }
 0x150   :  { %v437_v18 = vpop.f32.mrf.mxu0 }
 0x151   :  { %v454_v20 = vadd.f32 %v453_v17, %v423_v16  ;;  %v450_v19 = vpop.f32.mrf.mxu1  ;;  %v228_v16 = vadd.f32 %v1654_v27, %v227_v15  ;;  %v511_v17 = vpop.permute.xlu0 %510 }
 0x152   :  { %vm512_vm11 = vcmp.eq.s32.totalorder %v511_v17, 1  ;;  %v620_v17 = vpop.permute.xlu1 %619 }
 0x153   :  { %v1265_v21 = vmul.f32 -1.442695, %v454_v20  ;;  %240 = vst.msk [vmem:[#allocation4 + $0x28] sm:$0xff] %vm136_vm1, %v228_v16 }
 0x155   :  { %v1346_v22 = vpop.eup %1345  ;;  %1347 = vpow2.f32 %v1265_v21 }
 0x156   :  { %v480_v23 = vadd.f32 1.0, %v1346_v22  ;;  %v424_v24 = vpop.f32.mrf.mxu3 }
 0x158   :  { %1349 = vrcp.f32 %v480_v23  ;;  %v492_v55 = vand.u32 2147483648, %v480_v23  ;;  %vm486_vm8 = vweird.f32 %v480_v23  ;;  %v490_v57 = vand.u32 2147483647, %v480_v23 }
 0x15a   :  { %v493_v1 = vor.u32 1.1754944e-38, %v492_v55  ;;  %vm491_vm10 = vcmp.eq.f32.partialorder %v490_v57, 8.507059e+37 }
 0x15b   :  { %v1348_v25 = vpop.eup %1347 }
 0x15c   :  { %v458_v26 = vadd.f32 1.0, %v1348_v25 }
 0x15e   :  { %1351 = vrcp.f32 %v458_v26  ;;  %v1350_v29 = vpop.eup %1349  ;;  %v470_v40 = vand.u32 2147483648, %v458_v26  ;;  %v468_v42 = vand.u32 2147483647, %v458_v26  ;;  %vm464_vm3 = vweird.f32 %v458_v26 }
 0x15f   :  { %v482_v30 = vmul.f32 %v1350_v29, %v480_v23  ;;  %vm487_vm6 = vweird.f32 %v1350_v29  ;;  %v230_v23 = vpop.f32.mrf.mxu2 }
 0x160   :  { %v471_v49 = vor.u32 1.1754944e-38, %v470_v40  ;;  %vm469_vm5 = vcmp.eq.f32.partialorder %v468_v42, 8.507059e+37  ;;  %vm488_vm9 = vmor %vm486_vm8, %vm487_vm6  ;;  %vm621_vm6 = vcmp.eq.s32.totalorder %v620_v17, 1 }
 0x161   :  { %v483_v39 = vsub.f32 1.0, %v482_v30 }
 0x163   :  { %v484_v43 = vmul.f32 %v1350_v29, %v483_v39 }
 0x164   :  { %v1352_v33 = vpop.eup %1351 }
 0x165   :  { %v460_v38 = vmul.f32 %v1352_v33, %v458_v26  ;;  %vm465_vm2 = vweird.f32 %v1352_v33  ;;  %v485_v53 = vadd.f32 %v1350_v29, %v484_v43 }
 0x166   :  { %vm466_vm4 = vmor %vm464_vm3, %vm465_vm2 }
 0x167   :  { %v461_v5 = vsub.f32 1.0, %v460_v38  ;;  %v489_v61 = vsel %vm488_vm9, %v1350_v29, %v485_v53  ;;  %v232_v24 = vpop.f32.mrf.mxu2 }
 0x168   :  { %v494_v6 = vsel %vm491_vm10, %v493_v1, %v489_v61  ;;  %v233_v25 = vadd.f32 %v1654_v27, %v232_v24 }
 0x169   :  { %v462_v41 = vmul.f32 %v1352_v33, %v461_v5  ;;  %v501_v7 = vsub.f32 1.0, %v494_v6  ;;  %v503_v14 = vmul.f32 %v494_v6, %v1690_v37  ;;  %v606_v6 = vld [vmem:[#allocation4 + $0x10] sm:$0xff] }
 0x16a   :  { %242 = vst.msk [vmem:[#allocation4 + $0x38] sm:$0xff] %vm136_vm1, %v233_v25 }
 0x16b   :  { %v463_v47 = vadd.f32 %v1352_v33, %v462_v41 }
 0x16d   :  { %v467_v52 = vsel %vm466_vm4, %v1352_v33, %v463_v47  ;;  %v562_v33 = vld [vmem:[#allocation2 + $0x10] sm:$0xff] }
 0x16e   :  { %v472_v54 = vsel %vm469_vm5, %v471_v49, %v467_v52 }
 0x16f   :  { %v498_v56 = vmul.f32 %v472_v54, %v449_v51 }
 0x171   :  { %v499_v60 = vadd.f32 %v498_v56, %v497_v59 }
 0x173   :  { %1353 = vtanh.f32 %v499_v60 }
 0x179   :  { %v1354_v9 = vpop.eup %1353 }
 0x17a   :  { %v502_v12 = vmul.f32 %v1354_v9, %v501_v7 }
 0x17c   :  { %v504_v18 = vadd.f32 %v503_v14, %v502_v12 }
 0x17e   :  { %v513_v20 = vsel %vm512_vm11, %v504_v18, 0.0  ;;  %v1756_v19 = vsel %vm512_vm11, %v504_v18, %v1690_v37  ;;  %v231_v37 = vadd.f32 %v1654_v27, %v230_v23 }
 0x17f   :  { %v514_v21 = vpack.c.bf16 %v513_v20, %v513_v20  ;;  %v518_v22 = vpack.c.bf16 %v1756_v19, %v1756_v19 }
 0x180   :  { %241 = vst.msk [vmem:[#allocation4 + $0x30] sm:$0xff] %vm136_vm1, %v231_v37 }
 0x181   :  { %1268 = vst.msk [vmem:[%s1926_s15 + $0x4] sm:$0xf] %vm406_vm14, %v514_v21  ;;  %1269 = vmatmul.msk.bf16.vlgmr.msrb.gmra.mxu2 %vm136_vm1, %v518_v22  ;;  %1270 = vmatmul.msk.bf16.vlgmr.msra.gmra.mxu3 %vm136_vm1, %v518_v22 }
 0x182   :  { %1271 = vmatmul.msk.bf16.vlgmr.msra.gmra.mxu0 %vm136_vm1, %v518_v22  ;;  %772 = vmatpush.bf16.msrb.mxu2 %v1569_v8 }
 0x183   :  { %855 = vmatpush.bf16.msra.mxu3 %v1536_v0  ;;  %868 = vmatpush.bf16.msra.mxu0 %v1552_v4 }
 0x186   :  { %773 = vmatpush.bf16.msrb.mxu2 %v1588_v11 }
 0x187   :  { %856 = vmatpush.bf16.msra.mxu3 %v1547_v3  ;;  %869 = vmatpush.bf16.msra.mxu0 %v1580_v10 }
 0x1ff   :  { %v557_v26 = vpop.f32.mrf.mxu0 }
 0x200   :  { %v558_v59 = vadd.f32 %v1685_v58, %v557_v26  ;;  %v671_v26 = vld [vmem:[#allocation2 + $0x18] sm:$0xff] }
 0x204   :  { %v531_v29 = vpop.f32.mrf.mxu2  ;;  %v544_v30 = vpop.f32.mrf.mxu3 }
 0x205   :  { %v532_v31 = vadd.f32 %v1659_v28, %v531_v29  ;;  %v545_v32 = vadd.f32 %v1679_v45, %v544_v30 }
 0x207   :  { %v563_v35 = vadd.f32 %v562_v33, %v532_v31  ;;  %v585_v36 = vadd.f32 %v584_v34, %v545_v32  ;;  %v559_v38 = vpop.f32.mrf.mxu0  ;;  %v693_v34 = vld [vmem:[#allocation3 + $0x18] sm:$0xff] }
 0x209   :  { %v1272_v39 = vmul.f32 -1.442695, %v563_v35  ;;  %v1273_v5 = vmul.f32 -1.442695, %v585_v36 }
 0x20b   :  { %1355 = vpow2.f32 %v1272_v39 }
 0x20c   :  { %1357 = vpow2.f32 %v1273_v5  ;;  %v533_v40 = vpop.f32.mrf.mxu2  ;;  %v546_v27 = vpop.f32.mrf.mxu3 }
 0x211   :  { %v1356_v41 = vpop.eup %1355 }
 0x212   :  { %v1358_v42 = vpop.eup %1357  ;;  %v567_v43 = vadd.f32 1.0, %v1356_v41 }
 0x213   :  { %v589_v44 = vadd.f32 1.0, %v1358_v42 }
 0x214   :  { %1359 = vrcp.f32 %v567_v43  ;;  %v579_v51 = vand.u32 2147483648, %v567_v43  ;;  %v577_v54 = vand.u32 2147483647, %v567_v43  ;;  %vm573_vm13 = vweird.f32 %v567_v43 }
 0x215   :  { %1361 = vrcp.f32 %v589_v44  ;;  %v601_v63 = vand.u32 2147483648, %v589_v44  ;;  %vm595_vm3 = vweird.f32 %v589_v44  ;;  %v599_v2 = vand.u32 2147483647, %v589_v44 }
 0x216   :  { %v580_v57 = vor.u32 1.1754944e-38, %v579_v51  ;;  %vm578_vm0 = vcmp.eq.f32.partialorder %v577_v54, 8.507059e+37 }
 0x217   :  { %v602_v12 = vor.u32 1.1754944e-38, %v601_v63  ;;  %vm600_vm5 = vcmp.eq.f32.partialorder %v599_v2, 8.507059e+37 }
 0x21a   :  { %v1360_v46 = vpop.eup %1359 }
 0x21b   :  { %v1362_v47 = vpop.eup %1361  ;;  %v569_v48 = vmul.f32 %v1360_v46, %v567_v43  ;;  %vm574_vm12 = vweird.f32 %v1360_v46  ;;  %v1288_v43 = vld [vmem:[%s1912_s1 + $0x20] sm:$0xff] }
 0x21c   :  { %v591_v49 = vmul.f32 %v1362_v47, %v589_v44  ;;  %vm575_vm15 = vmor %vm573_vm13, %vm574_vm12  ;;  %vm596_vm2 = vweird.f32 %v1362_v47  ;;  %vm834_vm7 = vcmp.gt.f32.partialorder %v1288_v43, 0.0 }
 0x21d   :  { %v570_v50 = vsub.f32 1.0, %v569_v48  ;;  %vm597_vm4 = vmor %vm595_vm3, %vm596_vm2  ;;  %v1295_v48 = vld [vmem:[%s1912_s1 + $0x28] sm:$0xff] }
 0x21e   :  { %v592_v52 = vsub.f32 1.0, %v591_v49  ;;  %vm943_vm8 = vcmp.gt.f32.partialorder %v1295_v48, 0.0 }
 0x21f   :  { %v571_v53 = vmul.f32 %v1360_v46, %v570_v50 }
 0x220   :  { %v593_v55 = vmul.f32 %v1362_v47, %v592_v52 }
 0x221   :  { %v572_v56 = vadd.f32 %v1360_v46, %v571_v53 }
 0x222   :  { %v594_v62 = vadd.f32 %v1362_v47, %v593_v55 }
 0x223   :  { %v576_v60 = vsel %vm575_vm15, %v1360_v46, %v572_v56  ;;  %v944_v56 = vsel %vm943_vm8, 1, %v1446_v13 }
 0x224   :  { %v581_v61 = vsel %vm578_vm0, %v580_v57, %v576_v60  ;;  %v598_v9 = vsel %vm597_vm4, %v1362_v47, %v594_v62  ;;  %v835_v47 = vsel %vm834_vm7, 1, %v1446_v13 }
 0x225   :  { %v607_v1 = vmul.f32 %v581_v61, %v558_v59  ;;  %v603_v14 = vsel %vm600_vm5, %v602_v12, %v598_v9  ;;  %837 = vperm.xlu2 %1328, %v835_v47  }
 0x226   :  { %v610_v15 = vsub.f32 1.0, %v603_v14  ;;  %v612_v20 = vmul.f32 %v603_v14, %v1756_v19 }
 0x227   :  { %v608_v7 = vadd.f32 %v607_v1, %v606_v6 }
 0x229   :  { %1363 = vtanh.f32 %v608_v7  ;;  %v715_v7 = vld [vmem:[#allocation4 + $0x18] sm:$0xff] }
 0x22d   :  { %946 = vperm.xlu2 %1328, %v944_v56  }
 0x22f   :  { %v1364_v16 = vpop.eup %1363 }
 0x230   :  { %v611_v18 = vmul.f32 %v1364_v16, %v610_v15 }
 0x232   :  { %v613_v21 = vadd.f32 %v612_v20, %v611_v18 }
 0x234   :  { %v622_v22 = vsel %vm621_vm6, %v613_v21, 0.0  ;;  %v1782_v23 = vsel %vm621_vm6, %v613_v21, %v1756_v19  ;;  %v729_v21 = vpop.permute.xlu1 %728 }
 0x235   :  { %v623_v37 = vpack.c.bf16 %v622_v22, %v622_v22  ;;  %v627_v24 = vpack.c.bf16 %v1782_v23, %v1782_v23  ;;  %vm730_vm3 = vcmp.eq.s32.totalorder %v729_v21, 1 }
 0x237   :  { %1275 = vst.msk [vmem:[%s1926_s15 + $0x8] sm:$0xf] %vm406_vm14, %v623_v37  ;;  %1276 = vmatmul.msk.bf16.vlgmr.msra.gmra.mxu1 %vm136_vm1, %v627_v24  ;;  %1277 = vmatmul.msk.bf16.vlgmr.msra.gmra.mxu2 %vm136_vm1, %v627_v24 }
 0x238   :  { %1278 = vmatmul.msk.bf16.vlgmr.msrb.gmra.mxu3 %vm136_vm1, %v627_v24  ;;  %881 = vmatpush.bf16.msra.mxu1 %v1569_v8 }
 0x239   :  { %964 = vmatpush.bf16.msra.mxu2 %v1536_v0  ;;  %977 = vmatpush.bf16.msrb.mxu3 %v1552_v4 }
 0x23c   :  { %882 = vmatpush.bf16.msra.mxu1 %v1588_v11 }
 0x23d   :  { %965 = vmatpush.bf16.msra.mxu2 %v1547_v3  ;;  %978 = vmatpush.bf16.msrb.mxu3 %v1580_v10 }
 0x2b4   :  { %v640_v19 = vpop.f32.mrf.mxu1 }
 0x2b5   :  { %v641_v25 = vadd.f32 %v1659_v28, %v640_v19 }
 0x2b7   :  { %v672_v29 = vadd.f32 %v671_v26, %v641_v25 }
 0x2b9   :  { %v1279_v30 = vmul.f32 -1.442695, %v672_v29 }
 0x2ba   :  { %v653_v31 = vpop.f32.mrf.mxu2 }
 0x2bb   :  { %1365 = vpow2.f32 %v1279_v30  ;;  %v654_v32 = vadd.f32 %v1679_v45, %v653_v31  ;;  %v666_v33 = vpop.f32.mrf.mxu3  ;;  %v780_v31 = vld [vmem:[#allocation2 + $0x20] sm:$0xff] }
 0x2bc   :  { %v642_v35 = vpop.f32.mrf.mxu1  ;;  %v667_v60 = vadd.f32 %v1685_v58, %v666_v33 }
 0x2bd   :  { %v694_v36 = vadd.f32 %v693_v34, %v654_v32  ;;  %v802_v32 = vld [vmem:[#allocation3 + $0x20] sm:$0xff] }
 0x2bf   :  { %v1280_v38 = vmul.f32 -1.442695, %v694_v36 }
 0x2c1   :  { %v1366_v39 = vpop.eup %1365  ;;  %1367 = vpow2.f32 %v1280_v38 }
 0x2c2   :  { %v676_v5 = vadd.f32 1.0, %v1366_v39  ;;  %v655_v40 = vpop.f32.mrf.mxu2 }
 0x2c3   :  { %v668_v27 = vpop.f32.mrf.mxu3 }
 0x2c4   :  { %1369 = vrcp.f32 %v676_v5  ;;  %v688_v50 = vand.u32 2147483648, %v676_v5  ;;  %v686_v52 = vand.u32 2147483647, %v676_v5  ;;  %vm682_vm10 = vweird.f32 %v676_v5 }
 0x2c6   :  { %v689_v57 = vor.u32 1.1754944e-38, %v688_v50  ;;  %vm687_vm12 = vcmp.eq.f32.partialorder %v686_v52, 8.507059e+37 }
 0x2c7   :  { %v1368_v41 = vpop.eup %1367 }
 0x2c8   :  { %v698_v42 = vadd.f32 1.0, %v1368_v41 }
 0x2ca   :  { %v1370_v44 = vpop.eup %1369  ;;  %1371 = vrcp.f32 %v698_v42  ;;  %v710_v1 = vand.u32 2147483648, %v698_v42  ;;  %v708_v6 = vand.u32 2147483647, %v698_v42  ;;  %vm704_vm15 = vweird.f32 %v698_v42 }
 0x2cb   :  { %v678_v46 = vmul.f32 %v1370_v44, %v676_v5  ;;  %vm683_vm9 = vweird.f32 %v1370_v44 }
 0x2cc   :  { %vm684_vm11 = vmor %vm682_vm10, %vm683_vm9  ;;  %v711_v13 = vor.u32 1.1754944e-38, %v710_v1  ;;  %vm709_vm2 = vcmp.eq.f32.partialorder %v708_v6, 8.507059e+37  ;;  %v838_v6 = vpop.permute.xlu2 %837 }
 0x2cd   :  { %v679_v49 = vsub.f32 1.0, %v678_v46 }
 0x2cf   :  { %v680_v51 = vmul.f32 %v1370_v44, %v679_v49 }
 0x2d0   :  { %v1372_v53 = vpop.eup %1371 }
 0x2d1   :  { %v700_v54 = vmul.f32 %v1372_v53, %v698_v42  ;;  %v681_v55 = vadd.f32 %v1370_v44, %v680_v51  ;;  %vm705_vm13 = vweird.f32 %v1372_v53 }
 0x2d2   :  { %vm706_vm0 = vmor %vm704_vm15, %vm705_vm13 }
 0x2d3   :  { %v701_v59 = vsub.f32 1.0, %v700_v54  ;;  %v685_v61 = vsel %vm684_vm11, %v1370_v44, %v681_v55 }
 0x2d4   :  { %v690_v62 = vsel %vm687_vm12, %v689_v57, %v685_v61  ;;  %v824_v57 = vld [vmem:[#allocation4 + $0x20] sm:$0xff]  ;;  %vm839_vm12 = vcmp.eq.s32.totalorder %v838_v6, 1 }
 0x2d5   :  { %v702_v63 = vmul.f32 %v1372_v53, %v701_v59  ;;  %v716_v2 = vmul.f32 %v690_v62, %v667_v60 }
 0x2d7   :  { %v703_v9 = vadd.f32 %v1372_v53, %v702_v63  ;;  %v717_v12 = vadd.f32 %v716_v2, %v715_v7 }
 0x2d9   :  { %v707_v14 = vsel %vm706_vm0, %v1372_v53, %v703_v9  ;;  %1373 = vtanh.f32 %v717_v12 }
 0x2da   :  { %v712_v15 = vsel %vm709_vm2, %v711_v13, %v707_v14 }
 0x2db   :  { %v719_v16 = vsub.f32 1.0, %v712_v15  ;;  %v721_v20 = vmul.f32 %v712_v15, %v1782_v23 }
 0x2df   :  { %v1374_v17 = vpop.eup %1373 }
 0x2e0   :  { %v720_v18 = vmul.f32 %v1374_v17, %v719_v16  ;;  %v1415_v17 = vld [vmem:[%s1918_s7 + $0x8] sm:$0xff] }
 0x2e2   :  { %v722_v22 = vadd.f32 %v721_v20, %v720_v18  ;;  %v1416_v18 = vld [vmem:[%s1918_s7] sm:$0xff] }
 0x2e4   :  { %v731_v37 = vsel %vm730_vm3, %v722_v22, 0.0  ;;  %v1812_v24 = vsel %vm730_vm3, %v722_v22, %v1782_v23 }
 0x2e5   :  { %v732_v19 = vpack.c.bf16 %v731_v37, %v731_v37  ;;  %v736_v25 = vpack.c.bf16 %v1812_v24, %v1812_v24  ;;  %v911_v37 = vld [vmem:[#allocation3 + $0x28] sm:$0xff] }
 0x2e7   :  { %1282 = vst.msk [vmem:[%s1926_s15 + $0xc] sm:$0xf] %vm406_vm14, %v732_v19  ;;  %1283 = vmatmul.msk.bf16.vlgmr.msrb.gmra.mxu0 %vm136_vm1, %v736_v25  ;;  %1284 = vmatmul.msk.bf16.vlgmr.msrb.gmra.mxu1 %vm136_vm1, %v736_v25 }
 0x2e8   :  { %1285 = vmatmul.msk.bf16.vlgmr.msrb.gmra.mxu2 %vm136_vm1, %v736_v25  ;;  %990 = vmatpush.bf16.msrb.mxu0 %v1569_v8 }
 0x2e9   :  { %1073 = vmatpush.bf16.msrb.mxu1 %v1536_v0  ;;  %1086 = vmatpush.bf16.msrb.mxu2 %v1552_v4 }
 0x2ec   :  { %991 = vmatpush.bf16.msrb.mxu0 %v1588_v11 }
 0x2ed   :  { %1074 = vmatpush.bf16.msrb.mxu1 %v1547_v3  ;;  %1087 = vmatpush.bf16.msrb.mxu2 %v1580_v10 }
 0x364   :  { %v749_v23 = vpop.f32.mrf.mxu0  ;;  %v762_v26 = vpop.f32.mrf.mxu1 }
 0x365   :  { %v750_v29 = vadd.f32 %v1659_v28, %v749_v23  ;;  %v763_v30 = vadd.f32 %v1679_v45, %v762_v26  ;;  %v889_v26 = vld [vmem:[#allocation2 + $0x28] sm:$0xff] }
 0x367   :  { %v781_v33 = vadd.f32 %v780_v31, %v750_v29  ;;  %v803_v8 = vadd.f32 %v802_v32, %v763_v30 }
 0x369   :  { %v1286_v34 = vmul.f32 -1.442695, %v781_v33  ;;  %v1287_v0 = vmul.f32 -1.442695, %v803_v8 }
 0x36b   :  { %1375 = vpow2.f32 %v1286_v34  ;;  %v775_v4 = vpop.f32.mrf.mxu2 }
 0x36c   :  { %1377 = vpow2.f32 %v1287_v0  ;;  %v751_v11 = vpop.f32.mrf.mxu0  ;;  %v764_v35 = vpop.f32.mrf.mxu1  ;;  %v776_v51 = vadd.f32 %v1685_v58, %v775_v4 }
 0x371   :  { %v1376_v3 = vpop.eup %1375 }
 0x372   :  { %v1378_v36 = vpop.eup %1377  ;;  %v785_v10 = vadd.f32 1.0, %v1376_v3 }
 0x373   :  { %v807_v38 = vadd.f32 1.0, %v1378_v36  ;;  %v777_v39 = vpop.f32.mrf.mxu2 }
 0x374   :  { %1379 = vrcp.f32 %v785_v10  ;;  %v797_v43 = vand.u32 2147483648, %v785_v10  ;;  %v795_v47 = vand.u32 2147483647, %v785_v10  ;;  %vm791_vm5 = vweird.f32 %v785_v10 }
 0x375   :  { %1381 = vrcp.f32 %v807_v38  ;;  %v819_v56 = vand.u32 2147483648, %v807_v38  ;;  %vm813_vm9 = vweird.f32 %v807_v38  ;;  %v817_v59 = vand.u32 2147483647, %v807_v38 }
 0x376   :  { %v798_v50 = vor.u32 1.1754944e-38, %v797_v43  ;;  %vm796_vm7 = vcmp.eq.f32.partialorder %v795_v47, 8.507059e+37 }
 0x377   :  { %v820_v62 = vor.u32 1.1754944e-38, %v819_v56  ;;  %vm818_vm11 = vcmp.eq.f32.partialorder %v817_v59, 8.507059e+37 }
 0x37a   :  { %v1380_v5 = vpop.eup %1379 }
 0x37b   :  { %v1382_v40 = vpop.eup %1381  ;;  %v787_v27 = vmul.f32 %v1380_v5, %v785_v10  ;;  %vm792_vm4 = vweird.f32 %v1380_v5 }
 0x37c   :  { %v809_v41 = vmul.f32 %v1382_v40, %v807_v38  ;;  %vm793_vm6 = vmor %vm791_vm5, %vm792_vm4  ;;  %vm814_vm8 = vweird.f32 %v1382_v40 }
 0x37d   :  { %v788_v42 = vsub.f32 1.0, %v787_v27  ;;  %vm815_vm10 = vmor %vm813_vm9, %vm814_vm8 }
 0x37e   :  { %v810_v44 = vsub.f32 1.0, %v809_v41 }
 0x37f   :  { %v789_v46 = vmul.f32 %v1380_v5, %v788_v42 }
 0x380   :  { %v811_v48 = vmul.f32 %v1382_v40, %v810_v44 }
 0x381   :  { %v790_v49 = vadd.f32 %v1380_v5, %v789_v46 }
 0x382   :  { %v812_v54 = vadd.f32 %v1382_v40, %v811_v48 }
 0x383   :  { %v794_v52 = vsel %vm793_vm6, %v1380_v5, %v790_v49  ;;  %v933_v49 = vld [vmem:[#allocation4 + $0x28] sm:$0xff] }
 0x384   :  { %v799_v53 = vsel %vm796_vm7, %v798_v50, %v794_v52  ;;  %v816_v61 = vsel %vm815_vm10, %v1382_v40, %v812_v54 }
 0x385   :  { %v825_v55 = vmul.f32 %v799_v53, %v776_v51  ;;  %v821_v63 = vsel %vm818_vm11, %v820_v62, %v816_v61 }
 0x386   :  { %v828_v1 = vsub.f32 1.0, %v821_v63  ;;  %v830_v9 = vmul.f32 %v821_v63, %v1812_v24 }
 0x387   :  { %v826_v60 = vadd.f32 %v825_v55, %v824_v57 }
 0x389   :  { %1383 = vtanh.f32 %v826_v60 }
 0x38f   :  { %v1384_v2 = vpop.eup %1383 }
 0x390   :  { %v829_v7 = vmul.f32 %v1384_v2, %v828_v1 }
 0x392   :  { %v831_v12 = vadd.f32 %v830_v9, %v829_v7  ;;  %v1870_v7 = vld [vmem:[%s1922_s11] ss:$0 sm:$0xff] }
 0x394   :  { %v840_v13 = vsel %vm839_vm12, %v831_v12, 0.0  ;;  %v1834_v14 = vsel %vm839_vm12, %v831_v12, %v1812_v24  ;;  %v1876_v12 = vld [vmem:[%s1923_s12] ss:$0 sm:$0xff] }
 0x395   :  { %v841_v15 = vpack.c.bf16 %v840_v13, %v840_v13  ;;  %v845_v16 = vpack.c.bf16 %v1834_v14, %v1834_v14 }
 0x397   :  { %1289 = vst.msk [vmem:[%s1926_s15 + $0x10] sm:$0xf] %vm406_vm14, %v841_v15  ;;  %1290 = vmatmul.msk.bf16.vlgmr.msra.gmra.mxu3 %vm136_vm1, %v845_v16  ;;  %1291 = vmatmul.msk.bf16.vlgmr.msra.gmra.mxu0 %vm136_vm1, %v845_v16  ;;  %v1020_v15 = vld [vmem:[#allocation3 + $0x30] sm:$0xff] }
 0x398   :  { %1292 = vmatmul.msk.bf16.vlgmr.msra.gmra.mxu1 %vm136_vm1, %v845_v16  ;;  %1099 = vmatpush.bf16.msra.mxu3 %v1415_v17 }
 0x39c   :  { %1100 = vmatpush.bf16.msra.mxu3 %v1416_v18 }
 0x414   :  { %v871_v20 = vpop.f32.mrf.mxu0 }
 0x415   :  { %v872_v21 = vadd.f32 %v1679_v45, %v871_v20  ;;  %v884_v22 = vpop.f32.mrf.mxu1 }
 0x416   :  { %v885_v41 = vadd.f32 %v1685_v58, %v884_v22  ;;  %v947_v58 = vpop.permute.xlu2 %946 }
 0x417   :  { %v912_v24 = vadd.f32 %v911_v37, %v872_v21  ;;  %vm948_vm7 = vcmp.eq.s32.totalorder %v947_v58, 1 }
 0x419   :  { %v1294_v19 = vmul.f32 -1.442695, %v912_v24 }
 0x41a   :  { %v858_v25 = vpop.f32.mrf.mxu3 }
 0x41b   :  { %1385 = vpow2.f32 %v1294_v19  ;;  %v859_v23 = vadd.f32 %v1659_v28, %v858_v25 }
 0x41c   :  { %v873_v29 = vpop.f32.mrf.mxu0 }
 0x41d   :  { %v890_v30 = vadd.f32 %v889_v26, %v859_v23  ;;  %v886_v31 = vpop.f32.mrf.mxu1 }
 0x41f   :  { %v1293_v32 = vmul.f32 -1.442695, %v890_v30 }
 0x421   :  { %v1386_v33 = vpop.eup %1385  ;;  %1387 = vpow2.f32 %v1293_v32 }
 0x422   :  { %v916_v8 = vadd.f32 1.0, %v1386_v33  ;;  %v860_v34 = vpop.f32.mrf.mxu3 }
 0x424   :  { %1389 = vrcp.f32 %v916_v8  ;;  %v928_v46 = vand.u32 2147483648, %v916_v8  ;;  %vm922_vm4 = vweird.f32 %v916_v8  ;;  %v926_v48 = vand.u32 2147483647, %v916_v8 }
 0x426   :  { %v929_v52 = vor.u32 1.1754944e-38, %v928_v46  ;;  %vm927_vm6 = vcmp.eq.f32.partialorder %v926_v48, 8.507059e+37 }
 0x427   :  { %v1388_v0 = vpop.eup %1387 }
 0x428   :  { %v894_v45 = vadd.f32 1.0, %v1388_v0 }
 0x42a   :  { %1391 = vrcp.f32 %v894_v45  ;;  %v1390_v4 = vpop.eup %1389  ;;  %v906_v28 = vand.u32 2147483648, %v894_v45  ;;  %v904_v39 = vand.u32 2147483647, %v894_v45  ;;  %vm900_vm15 = vweird.f32 %v894_v45 }
 0x42b   :  { %v918_v11 = vmul.f32 %v1390_v4, %v916_v8  ;;  %vm923_vm3 = vweird.f32 %v1390_v4 }
 0x42c   :  { %v907_v27 = vor.u32 1.1754944e-38, %v906_v28  ;;  %vm905_vm2 = vcmp.eq.f32.partialorder %v904_v39, 8.507059e+37  ;;  %vm924_vm5 = vmor %vm922_vm4, %vm923_vm3 }
 0x42d   :  { %v919_v36 = vsub.f32 1.0, %v918_v11 }
 0x42f   :  { %v920_v5 = vmul.f32 %v1390_v4, %v919_v36 }
 0x430   :  { %v1392_v35 = vpop.eup %1391 }
 0x431   :  { %v896_v3 = vmul.f32 %v1392_v35, %v894_v45  ;;  %vm901_vm13 = vweird.f32 %v1392_v35  ;;  %v921_v43 = vadd.f32 %v1390_v4, %v920_v5  ;;  %v1042_v5 = vld [vmem:[#allocation4 + $0x30] sm:$0xff] }
 0x432   :  { %vm902_vm0 = vmor %vm900_vm15, %vm901_vm13 }
 0x433   :  { %v897_v10 = vsub.f32 1.0, %v896_v3  ;;  %v925_v51 = vsel %vm924_vm5, %v1390_v4, %v921_v43 }
 0x434   :  { %v930_v53 = vsel %vm927_vm6, %v929_v52, %v925_v51 }
 0x435   :  { %v898_v38 = vmul.f32 %v1392_v35, %v897_v10  ;;  %v937_v54 = vsub.f32 1.0, %v930_v53  ;;  %v939_v57 = vmul.f32 %v930_v53, %v1834_v14 }
 0x437   :  { %v899_v40 = vadd.f32 %v1392_v35, %v898_v38 }
 0x439   :  { %v903_v42 = vsel %vm902_vm0, %v1392_v35, %v899_v40  ;;  %v1882_v35 = vld [vmem:[%s1924_s13] ss:$0 sm:$0xff] }
 0x43a   :  { %v908_v44 = vsel %vm905_vm2, %v907_v27, %v903_v42 }
 0x43b   :  { %v934_v47 = vmul.f32 %v908_v44, %v885_v41 }
 0x43d   :  { %v935_v50 = vadd.f32 %v934_v47, %v933_v49  ;;  %v1056_v47 = vpop.permute.xlu0 %1055 }
 0x43e   :  { %vm1057_vm2 = vcmp.eq.s32.totalorder %v1056_v47, 1 }
 0x43f   :  { %1393 = vtanh.f32 %v935_v50 }
 0x445   :  { %v1394_v55 = vpop.eup %1393 }
 0x446   :  { %v938_v56 = vmul.f32 %v1394_v55, %v937_v54 }
 0x448   :  { %v940_v59 = vadd.f32 %v939_v57, %v938_v56  ;;  %v1107_v56 = vld [vmem:[#allocation2 + $0x38] sm:$0xff] }
 0x44a   :  { %v949_v60 = vsel %vm948_vm7, %v940_v59, 0.0  ;;  %v1856_v61 = vsel %vm948_vm7, %v940_v59, %v1834_v14  ;;  %v998_v14 = vld [vmem:[#allocation2 + $0x30] sm:$0xff] }
 0x44b   :  { %v950_v62 = vpack.c.bf16 %v949_v60, %v949_v60  ;;  %v954_v63 = vpack.c.bf16 %v1856_v61, %v1856_v61 }
 0x44d   :  { %1296 = vst.msk [vmem:[%s1926_s15 + $0x14] sm:$0xf] %vm406_vm14, %v950_v62  ;;  %1297 = vmatmul.msk.bf16.vlgmr.msra.gmra.mxu2 %vm136_vm1, %v954_v63  ;;  %1298 = vmatmul.msk.bf16.vlgmr.msrb.gmra.mxu3 %vm136_vm1, %v954_v63 }
 0x44e   :  { %1299 = vmatmul.msk.bf16.vlgmr.msrb.gmra.mxu0 %vm136_vm1, %v954_v63  ;;  %v1129_v63 = vld [vmem:[#allocation3 + $0x38] sm:$0xff] }
 0x4cb   :  { %v993_v1 = vpop.f32.mrf.mxu0 }
 0x4cc   :  { %v994_v3 = vadd.f32 %v1882_v35, %v993_v1 }
 0x4d0   :  { %v967_v2 = vpop.f32.mrf.mxu2  ;;  %v980_v6 = vpop.f32.mrf.mxu3 }
 0x4d1   :  { %v968_v9 = vadd.f32 %v1870_v7, %v967_v2  ;;  %v981_v13 = vadd.f32 %v1876_v12, %v980_v6 }
 0x4d3   :  { %v999_v16 = vadd.f32 %v998_v14, %v968_v9  ;;  %v1021_v17 = vadd.f32 %v1020_v15, %v981_v13  ;;  %v995_v18 = vpop.f32.mrf.mxu0 }
 0x4d5   :  { %v1300_v20 = vmul.f32 -1.442695, %v999_v16  ;;  %v1301_v21 = vmul.f32 -1.442695, %v1021_v17 }
 0x4d7   :  { %1395 = vpow2.f32 %v1300_v20 }
 0x4d8   :  { %1397 = vpow2.f32 %v1301_v21  ;;  %v969_v22 = vpop.f32.mrf.mxu2  ;;  %v982_v37 = vpop.f32.mrf.mxu3 }
 0x4dd   :  { %v1396_v24 = vpop.eup %1395 }
 0x4de   :  { %v1398_v19 = vpop.eup %1397  ;;  %v1003_v25 = vadd.f32 1.0, %v1396_v24 }
 0x4df   :  { %v1025_v23 = vadd.f32 1.0, %v1398_v19 }
 0x4e0   :  { %1399 = vrcp.f32 %v1003_v25  ;;  %v1015_v33 = vand.u32 2147483648, %v1003_v25  ;;  %v1013_v0 = vand.u32 2147483647, %v1003_v25  ;;  %vm1009_vm9 = vweird.f32 %v1003_v25 }
 0x4e1   :  { %1401 = vrcp.f32 %v1025_v23  ;;  %v1037_v39 = vand.u32 2147483648, %v1025_v23  ;;  %vm1031_vm13 = vweird.f32 %v1025_v23  ;;  %v1035_v40 = vand.u32 2147483647, %v1025_v23 }
 0x4e2   :  { %v1016_v11 = vor.u32 1.1754944e-38, %v1015_v33  ;;  %vm1014_vm11 = vcmp.eq.f32.partialorder %v1013_v0, 8.507059e+37 }
 0x4e3   :  { %v1038_v42 = vor.u32 1.1754944e-38, %v1037_v39  ;;  %vm1036_vm0 = vcmp.eq.f32.partialorder %v1035_v40, 8.507059e+37 }
 0x4e6   :  { %v1400_v26 = vpop.eup %1399 }
 0x4e7   :  { %v1402_v29 = vpop.eup %1401  ;;  %v1005_v30 = vmul.f32 %v1400_v26, %v1003_v25  ;;  %vm1010_vm8 = vweird.f32 %v1400_v26 }
 0x4e8   :  { %v1027_v31 = vmul.f32 %v1402_v29, %v1025_v23  ;;  %vm1011_vm10 = vmor %vm1009_vm9, %vm1010_vm8  ;;  %vm1032_vm12 = vweird.f32 %v1402_v29 }
 0x4e9   :  { %v1006_v32 = vsub.f32 1.0, %v1005_v30  ;;  %vm1033_vm15 = vmor %vm1031_vm13, %vm1032_vm12 }
 0x4ea   :  { %v1028_v8 = vsub.f32 1.0, %v1027_v31 }
 0x4eb   :  { %v1007_v34 = vmul.f32 %v1400_v26, %v1006_v32 }
 0x4ec   :  { %v1029_v45 = vmul.f32 %v1402_v29, %v1028_v8  ;;  %v1151_v8 = vld [vmem:[#allocation4 + $0x38] sm:$0xff] }
 0x4ed   :  { %v1008_v4 = vadd.f32 %v1400_v26, %v1007_v34 }
 0x4ee   :  { %v1030_v28 = vadd.f32 %v1402_v29, %v1029_v45 }
 0x4ef   :  { %v1012_v36 = vsel %vm1011_vm10, %v1400_v26, %v1008_v4 }
 0x4f0   :  { %v1017_v10 = vsel %vm1014_vm11, %v1016_v11, %v1012_v36  ;;  %v1034_v41 = vsel %vm1033_vm15, %v1402_v29, %v1030_v28 }
 0x4f1   :  { %v1043_v38 = vmul.f32 %v1017_v10, %v994_v3  ;;  %v1039_v43 = vsel %vm1036_vm0, %v1038_v42, %v1034_v41  ;;  %v1165_v10 = vpop.permute.xlu1 %1164 }
 0x4f2   :  { %v1046_v44 = vsub.f32 1.0, %v1039_v43  ;;  %v1048_v49 = vmul.f32 %v1039_v43, %v1856_v61  ;;  %vm1166_vm11 = vcmp.eq.s32.totalorder %v1165_v10, 1 }
 0x4f3   :  { %v1044_v27 = vadd.f32 %v1043_v38, %v1042_v5 }
 0x4f5   :  { %1403 = vtanh.f32 %v1044_v27 }
 0x4fb   :  { %v1404_v46 = vpop.eup %1403 }
 0x4fc   :  { %v1047_v48 = vmul.f32 %v1404_v46, %v1046_v44 }
 0x4fe   :  { %v1049_v50 = vadd.f32 %v1048_v49, %v1047_v48 }
 0x500   :  { %v1058_v51 = vsel %vm1057_vm2, %v1049_v50, 0.0  ;;  %v1887_v52 = vsel %vm1057_vm2, %v1049_v50, %v1856_v61 }
 0x501   :  { %v1059_v53 = vpack.c.bf16 %v1058_v51, %v1058_v51  ;;  %v1063_v54 = vpack.c.bf16 %v1887_v52, %v1887_v52 }
 0x503   :  { %1303 = vst.msk [vmem:[%s1926_s15 + $0x18] sm:$0xf] %vm406_vm14, %v1059_v53  ;;  %1304 = vmatmul.msk.bf16.vlgmr.msrb.gmra.mxu1 %vm136_vm1, %v1063_v54  ;;  %1305 = vmatmul.msk.bf16.vlgmr.msrb.gmra.mxu2 %vm136_vm1, %v1063_v54 }
 0x504   :  { %1306 = vmatmul.msk.bf16.vlgmr.msra.gmra.mxu3 %vm136_vm1, %v1063_v54 }
 0x580   :  { %v1076_v55 = vpop.f32.mrf.mxu1 }
 0x581   :  { %v1077_v58 = vadd.f32 %v1870_v7, %v1076_v55 }
 0x583   :  { %v1108_v57 = vadd.f32 %v1107_v56, %v1077_v58 }
 0x585   :  { %v1307_v59 = vmul.f32 -1.442695, %v1108_v57 }
 0x586   :  { %v1089_v60 = vpop.f32.mrf.mxu2 }
 0x587   :  { %1405 = vpow2.f32 %v1307_v59  ;;  %v1090_v61 = vadd.f32 %v1876_v12, %v1089_v60  ;;  %v1102_v62 = vpop.f32.mrf.mxu3 }
 0x588   :  { %v1078_v1 = vpop.f32.mrf.mxu1  ;;  %v1103_v26 = vadd.f32 %v1882_v35, %v1102_v62 }
 0x589   :  { %v1130_v2 = vadd.f32 %v1129_v63, %v1090_v61 }
 0x58b   :  { %v1308_v6 = vmul.f32 -1.442695, %v1130_v2 }
 0x58d   :  { %v1406_v9 = vpop.eup %1405  ;;  %1407 = vpow2.f32 %v1308_v6 }
 0x58e   :  { %v1112_v13 = vadd.f32 1.0, %v1406_v9  ;;  %v1091_v14 = vpop.f32.mrf.mxu2 }
 0x58f   :  { %v1104_v15 = vpop.f32.mrf.mxu3 }
 0x590   :  { %1409 = vrcp.f32 %v1112_v13  ;;  %v1124_v21 = vand.u32 2147483648, %v1112_v13  ;;  %v1122_v12 = vand.u32 2147483647, %v1112_v13  ;;  %vm1118_vm4 = vweird.f32 %v1112_v13 }
 0x592   :  { %v1125_v25 = vor.u32 1.1754944e-38, %v1124_v21  ;;  %vm1123_vm6 = vcmp.eq.f32.partialorder %v1122_v12, 8.507059e+37 }
 0x593   :  { %v1408_v16 = vpop.eup %1407 }
 0x594   :  { %v1134_v7 = vadd.f32 1.0, %v1408_v16 }
 0x596   :  { %v1410_v17 = vpop.eup %1409  ;;  %1411 = vrcp.f32 %v1134_v7  ;;  %v1146_v33 = vand.u32 2147483648, %v1134_v7  ;;  %v1144_v34 = vand.u32 2147483647, %v1134_v7  ;;  %vm1140_vm8 = vweird.f32 %v1134_v7 }
 0x597   :  { %v1114_v18 = vmul.f32 %v1410_v17, %v1112_v13  ;;  %vm1119_vm3 = vweird.f32 %v1410_v17 }
 0x598   :  { %vm1120_vm5 = vmor %vm1118_vm4, %vm1119_vm3  ;;  %v1147_v11 = vor.u32 1.1754944e-38, %v1146_v33  ;;  %vm1145_vm10 = vcmp.eq.f32.partialorder %v1144_v34, 8.507059e+37 }
 0x599   :  { %v1115_v20 = vsub.f32 1.0, %v1114_v18 }
 0x59b   :  { %v1116_v22 = vmul.f32 %v1410_v17, %v1115_v20 }
 0x59c   :  { %v1412_v37 = vpop.eup %1411 }
 0x59d   :  { %v1136_v24 = vmul.f32 %v1412_v37, %v1134_v7  ;;  %v1117_v19 = vadd.f32 %v1410_v17, %v1116_v22  ;;  %vm1141_vm7 = vweird.f32 %v1412_v37 }
 0x59e   :  { %vm1142_vm9 = vmor %vm1140_vm8, %vm1141_vm7 }
 0x59f   :  { %v1137_v23 = vsub.f32 1.0, %v1136_v24  ;;  %v1121_v29 = vsel %vm1120_vm5, %v1410_v17, %v1117_v19 }
 0x5a0   :  { %v1126_v30 = vsel %vm1123_vm6, %v1125_v25, %v1121_v29 }
 0x5a1   :  { %v1138_v31 = vmul.f32 %v1412_v37, %v1137_v23  ;;  %v1152_v32 = vmul.f32 %v1126_v30, %v1103_v26 }
 0x5a3   :  { %v1153_v0 = vadd.f32 %v1152_v32, %v1151_v8  ;;  %v1139_v45 = vadd.f32 %v1412_v37, %v1138_v31 }
 0x5a5   :  { %1413 = vtanh.f32 %v1153_v0  ;;  %v1143_v4 = vsel %vm1142_vm9, %v1412_v37, %v1139_v45 }
 0x5a6   :  { %v1148_v3 = vsel %vm1145_vm10, %v1147_v11, %v1143_v4 }
 0x5a7   :  { %v1155_v36 = vsub.f32 1.0, %v1148_v3  ;;  %v1157_v38 = vmul.f32 %v1148_v3, %v1887_v52 }
 0x5ab   :  { %v1414_v35 = vpop.eup %1413 }
 0x5ac   :  { %v1156_v28 = vmul.f32 %v1414_v35, %v1155_v36 }
 0x5ae   :  { %v1158_v39 = vadd.f32 %v1157_v38, %v1156_v28 }
 0x5b0   :  { %v1167_v5 = vsel %vm1166_vm11, %v1158_v39, 0.0  ;;  %v1171_v40 = vsel %vm1166_vm11, %v1158_v39, %v1887_v52 }
 0x5b1   :  { %v1168_v27 = vpack.c.bf16 %v1167_v5, %v1167_v5  ;;  %1172 = vst.msk [vmem:[#allocation5] sm:$0xff] %vm136_vm1, %v1171_v40 }
 0x5b2   :  { %1185 = dma.vmem_to_hbm [thread:$0]  %s1181_s30, 128, %s1183_s2, [#allocation6]  }
 0x5b3   :  { %1310 = vst.msk [vmem:[%s1926_s15 + $0x1c] sm:$0xf] %vm406_vm14, %v1168_v27 }
 0x5b4   :  { %1444 = dma.done.wait [#allocation6], 128  }
 0x5b5   :  { %1445 = vsyncadd [#allocation6], 4294967168 }
 0x5b6   :  { %1192 = vsyncpa [#allocation6], 1 }

</bundles_post_ra>
